<compile_context>
chip_gen: v7x
topology: tpu7x:2x2x1
jax: 0.10.0
libtpu: 0.0.40
codegen_flags: <defaults>
</compile_context>

<pallas_src>
import functools

import jax
import jax.numpy as jnp
import numpy as np
from jax.experimental import pallas as pl
from jax.experimental.pallas import tpu as pltpu


# Explicit scoped-VMEM budget: above the v5e/v6e/v7x defaults, below v7x's
# 64 MiB physical per-TC capacity (leaves headroom).
_VMEM_LIMIT = 48 * 1024 * 1024


# ----------------------------- helpers -----------------------------

def _pick_tile(dim, pref, align):
    """Largest legal tile <= pref.

    Full dim when it fits; otherwise the largest multiple of `align` that
    divides `dim`; fall back to the full dim (always legal) rather than
    emitting a sub-(8,128) tile.
    """
    if dim <= pref:
        return dim
    t = (pref // align) * align
    while t >= align:
        if dim % t == 0:
            return t
        t -= align
    # TODO(synk): pad the array instead of falling back to a full-dim tile.
    return dim


def _gelu_new(x):
    return 0.5 * x * (1.0 + jnp.tanh(
        0.7978845608028654 * (x + 0.044715 * x * x * x)))


# ----------------------------- LayerNorm kernel -----------------------------

def layernorm_kernel(x_ref, g_ref, b_ref, o_ref, *, eps):
    x = x_ref[...].astype(jnp.float32)
    mean = jnp.mean(x, axis=-1, keepdims=True)
    var = jnp.mean(jnp.square(x - mean), axis=-1, keepdims=True)
    inv = jax.lax.rsqrt(var + eps)
    o_ref[...] = ((x - mean) * inv * g_ref[...] + b_ref[...]).astype(o_ref.dtype)


def pallas_layernorm(x2d, gamma, beta, eps, out_dtype=jnp.bfloat16, tm=1024):
    M, E = x2d.shape
    tm = _pick_tile(M, tm, 8)
    return pl.pallas_call(
        functools.partial(layernorm_kernel, eps=eps),
        out_shape=jax.ShapeDtypeStruct((M, E), out_dtype),
        grid=(M // tm,),
        in_specs=[pl.BlockSpec((tm, E), lambda i: (i, 0)),
                  pl.BlockSpec((1, E), lambda i: (0, 0)),
                  pl.BlockSpec((1, E), lambda i: (0, 0))],
        out_specs=pl.BlockSpec((tm, E), lambda i: (i, 0)),
        compiler_params=pltpu.CompilerParams(
            dimension_semantics=("parallel",),
            vmem_limit_bytes=_VMEM_LIMIT),
    )(x2d, gamma.reshape(1, E), beta.reshape(1, E))


# ----------------------------- tiled matmul kernel -----------------------------

def matmul_kernel(x_ref, w_ref, o_ref, acc_ref):
    @pl.when(pl.program_id(2) == 0)
    def _():
        acc_ref[...] = jnp.zeros(acc_ref.shape, acc_ref.dtype)

    acc_ref[...] += jnp.dot(x_ref[...], w_ref[...],
                            preferred_element_type=jnp.float32)

    @pl.when(pl.program_id(2) == pl.num_programs(2) - 1)
    def _():
        o_ref[...] = acc_ref[...].astype(o_ref.dtype)


def pallas_linear(x, w, out_dtype=jnp.bfloat16, tm=512, tn=512, tk=1024):
    M, K = x.shape
    _, N = w.shape
    tm = _pick_tile(M, tm, 8)
    tn = _pick_tile(N, tn, 128)
    tk = _pick_tile(K, tk, 128)
    return pl.pallas_call(
        matmul_kernel,
        out_shape=jax.ShapeDtypeStruct((M, N), out_dtype),
        grid=(M // tm, N // tn, K // tk),
        in_specs=[pl.BlockSpec((tm, tk), lambda i, j, k: (i, k)),
                  pl.BlockSpec((tk, tn), lambda i, j, k: (k, j))],
        out_specs=pl.BlockSpec((tm, tn), lambda i, j, k: (i, j)),
        scratch_shapes=[pltpu.VMEM((tm, tn), jnp.float32)],
        compiler_params=pltpu.CompilerParams(
            dimension_semantics=("parallel", "parallel", "arbitrary"),
            vmem_limit_bytes=_VMEM_LIMIT),
    )(x, w)


# ----------------------------- fused MLP kernel -----------------------------
# out = gelu_new(ln @ w_in + b_in) @ w_out + b_out + attn_proj(bf16) + residual(f32)
# The 4E-wide hidden activation lives only in VMEM (one ti-wide tile at a time).

def mlp_kernel(x_ref, wi_ref, bi_ref, wo_ref, bo_ref, a1_ref, a2_ref,
               o_ref, acc_ref):
    k = pl.program_id(1)

    @pl.when(k == 0)
    def _():
        acc_ref[...] = jnp.zeros(acc_ref.shape, acc_ref.dtype)

    h = jnp.dot(x_ref[...], wi_ref[...], preferred_element_type=jnp.float32)
    h = _gelu_new(h + bi_ref[...].astype(jnp.float32))
    acc_ref[...] += jnp.dot(h.astype(x_ref.dtype), wo_ref[...],
                            preferred_element_type=jnp.float32)

    @pl.when(k == pl.num_programs(1) - 1)
    def _():
        out = (acc_ref[...] + bo_ref[...].astype(jnp.float32)
               + a1_ref[...].astype(jnp.float32)
               + a2_ref[...].astype(jnp.float32))
        o_ref[...] = out.astype(o_ref.dtype)


def pallas_mlp(x, w_in, b_in, w_out, b_out, add_bf16, add_f32, *,
               tm=256, ti=512, out_dtype=jnp.float32):
    # TODO(synk): at production E on v7x (64 MiB VMEM) drop ti to 256 / tm to 128.
    M, E = x.shape
    inner = w_in.shape[1]
    tm = _pick_tile(M, tm, 8)
    ti = _pick_tile(inner, ti, 128)
    return pl.pallas_call(
        mlp_kernel,
        out_shape=jax.ShapeDtypeStruct((M, E), out_dtype),
        grid=(M // tm, inner // ti),
        in_specs=[pl.BlockSpec((tm, E), lambda i, k: (i, 0)),
                  pl.BlockSpec((E, ti), lambda i, k: (0, k)),
                  pl.BlockSpec((1, ti), lambda i, k: (0, k)),
                  pl.BlockSpec((ti, E), lambda i, k: (k, 0)),
                  pl.BlockSpec((1, E), lambda i, k: (0, 0)),
                  pl.BlockSpec((tm, E), lambda i, k: (i, 0)),
                  pl.BlockSpec((tm, E), lambda i, k: (i, 0))],
        out_specs=pl.BlockSpec((tm, E), lambda i, k: (i, 0)),
        scratch_shapes=[pltpu.VMEM((tm, E), jnp.float32)],
        compiler_params=pltpu.CompilerParams(
            dimension_semantics=("parallel", "arbitrary"),
            vmem_limit_bytes=_VMEM_LIMIT),
    )(x, w_in, b_in.reshape(1, inner), w_out, b_out.reshape(1, E),
      add_bf16, add_f32)


# ----------------------------- flash attention kernel -----------------------------
# Grid: (B, H, L) where L walks a precomputed lower-triangle (qi, ki) table ->
# fully masked KV blocks are never visited / DMA'd.  Rotary is applied inside
# the kernel: sin/cos tables are resident VMEM blocks (loaded once) and
# rotate_every_two is a (head_dim, head_dim) permutation matmul.  Q is already
# pre-scaled by 1/sqrt(head_dim) (folded into w_qkv); its rotated form is
# cached in scratch and reused for every KV block of the row.

def flash_attn_kernel(qi_tab, ki_tab, q_ref, k_ref, v_ref, sin_ref, cos_ref,
                      rot_ref, o_ref, qrot_ref, m_ref, l_ref, acc_ref,
                      *, t_blk, masked_bias):
    t = pl.program_id(2)
    qi = qi_tab[t]
    ki = ki_tab[t]

    @pl.when(ki == 0)
    def _():
        # New q row: rotate q once, cache it; reset online-softmax state.
        q_start = pl.multiple_of(qi * t_blk, t_blk)
        sin_q = sin_ref[pl.ds(q_start, t_blk), :]
        cos_q = cos_ref[pl.ds(q_start, t_blk), :]
        q = q_ref[0]
        q_perm = jnp.dot(q, rot_ref[...], preferred_element_type=jnp.float32)
        qrot_ref[...] = (q.astype(jnp.float32) * cos_q
                         + q_perm * sin_q).astype(qrot_ref.dtype)
        m_ref[...] = jnp.full(m_ref.shape, -jnp.inf, m_ref.dtype)
        l_ref[...] = jnp.zeros(l_ref.shape, l_ref.dtype)
        acc_ref[...] = jnp.zeros(acc_ref.shape, acc_ref.dtype)

    # Rotary on the current K block.
    k_start = pl.multiple_of(ki * t_blk, t_blk)
    sin_k = sin_ref[pl.ds(k_start, t_blk), :]
    cos_k = cos_ref[pl.ds(k_start, t_blk), :]
    k = k_ref[0]
    k_perm = jnp.dot(k, rot_ref[...], preferred_element_type=jnp.float32)
    k_rot = (k.astype(jnp.float32) * cos_k + k_perm * sin_k).astype(k.dtype)
    v = v_ref[0]

    # Scores (q already scaled); contract last dims -> no explicit K transpose.
    s = jax.lax.dot_general(qrot_ref[...], k_rot, (((1,), (1,)), ((), ())),
                            preferred_element_type=jnp.float32)

    def online_update(scores):
        m_prev = m_ref[...]
        m_new = jnp.maximum(m_prev, jnp.max(scores, axis=-1, keepdims=True))
        alpha = jnp.exp(m_prev - m_new)
        p = jnp.exp(scores - m_new)
        l_ref[...] = alpha * l_ref[...] + jnp.sum(p, axis=-1, keepdims=True)
        acc_ref[...] = alpha * acc_ref[...] + jax.lax.dot_general(
            p.astype(v.dtype), v, (((1,), (0,)), ((), ())),
            preferred_element_type=jnp.float32)
        m_ref[...] = m_new

    @pl.when(ki < qi)          # interior block: fully below the diagonal, no mask
    def _():
        online_update(s)

    @pl.when(ki == qi)         # diagonal block: mask, then finalize (last of row)
    def _():
        row = jax.lax.broadcasted_iota(jnp.int32, (t_blk, t_blk), 0)
        col = jax.lax.broadcasted_iota(jnp.int32, (t_blk, t_blk), 1)
        online_update(jnp.where(col <= row, s, masked_bias))
        inv_l = pl.reciprocal(l_ref[...], approx=True)
        o_ref[0] = (acc_ref[...] * inv_l).astype(o_ref.dtype)


def pallas_flash_attention(qkv3, sin_full, cos_full, rot, *, n_head, head_dim,
                           t_pref=256, out_dtype=jnp.bfloat16):
    B, T, threeE = qkv3.shape
    H = n_head
    E = H * head_dim
    assert threeE == 3 * E
    # TODO(synk): head_dim not a multiple of 128 needs a padded / (B,H,T,D) path.
    assert head_dim % 128 == 0
    t_blk = _pick_tile(T, t_pref, 8)
    n_q = T // t_blk

    # Lower-triangle block schedule (tq == tk == t_blk).
    qi_list, ki_list = [], []
    for qi in range(n_q):
        for ki in range(qi + 1):
            qi_list.append(qi)
            ki_list.append(ki)
    qi_tab = jnp.asarray(qi_list, jnp.int32)
    ki_tab = jnp.asarray(ki_list, jnp.int32)
    n_steps = len(qi_list)

    return pl.pallas_call(
        functools.partial(flash_attn_kernel, t_blk=t_blk, masked_bias=-1e9),
        out_shape=jax.ShapeDtypeStruct((B, T, E), out_dtype),
        grid_spec=pltpu.PrefetchScalarGridSpec(
            num_scalar_prefetch=2,
            grid=(B, H, n_steps),
            in_specs=[
                # q / k / v are all views into the (B, T, 3E) qkv output:
                # columns are laid out [Q | V | K] (mp_num shuffle folded in).
                pl.BlockSpec((1, t_blk, head_dim),
                             lambda b, h, t, qt, kt: (b, qt[t], h)),
                pl.BlockSpec((1, t_blk, head_dim),
                             lambda b, h, t, qt, kt: (b, kt[t], 2 * H + h)),
                pl.BlockSpec((1, t_blk, head_dim),
                             lambda b, h, t, qt, kt: (b, kt[t], H + h)),
                # rotary tables stay resident (index map constant -> loaded once)
                pl.BlockSpec((T, head_dim), lambda b, h, t, qt, kt: (0, 0)),
                pl.BlockSpec((T, head_dim), lambda b, h, t, qt, kt: (0, 0)),
                pl.BlockSpec((head_dim, head_dim),
                             lambda b, h, t, qt, kt: (0, 0)),
            ],
            out_specs=pl.BlockSpec((1, t_blk, head_dim),
                                   lambda b, h, t, qt, kt: (b, qt[t], h)),
            scratch_shapes=[pltpu.VMEM((t_blk, head_dim), jnp.bfloat16),  # rotated q
                            pltpu.VMEM((t_blk, 1), jnp.float32),          # m
                            pltpu.VMEM((t_blk, 1), jnp.float32),          # l
                            pltpu.VMEM((t_blk, head_dim), jnp.float32)]), # acc
        compiler_params=pltpu.CompilerParams(
            dimension_semantics=("parallel", "parallel", "arbitrary"),
            vmem_limit_bytes=_VMEM_LIMIT),
    )(qi_tab, ki_tab, qkv3, qkv3, qkv3, sin_full, cos_full, rot)


# ----------------------------- rotary tables & parameter prep -----------------------------

def _build_rotary_tables(seq_len, head_dim, rotary_dim):
    """Full-width (T, head_dim) sin/cos (repeat_interleave(2) pattern, identity
    beyond rotary_dim) and the rotate_every_two permutation matrix."""
    half = rotary_dim // 2
    inv_freq = 1.0 / (10000.0 ** (np.arange(0, rotary_dim, 2, dtype=np.float64)
                                  / rotary_dim))
    sinusoid = np.einsum("i,j->ij", np.arange(seq_len, dtype=np.float64), inv_freq)
    sin = np.sin(sinusoid).astype(np.float32)          # (T, half)
    cos = np.cos(sinusoid).astype(np.float32)
    sin_full = np.zeros((seq_len, head_dim), np.float32)
    cos_full = np.ones((seq_len, head_dim), np.float32)
    sin_full[:, :rotary_dim] = np.repeat(sin, 2, axis=-1)
    cos_full[:, :rotary_dim] = np.repeat(cos, 2, axis=-1)
    rot = np.zeros((head_dim, head_dim), np.float32)
    for j in range(0, rotary_dim, 2):
        rot[j + 1, j] = -1.0       # even output col <- -x_odd
        rot[j, j + 1] = 1.0        # odd  output col <-  x_even
    return (jnp.asarray(sin_full), jnp.asarray(cos_full),
            jnp.asarray(rot, jnp.bfloat16))


def prepare_kernel_params(p, *, embed_dim, n_head, rotary_dim, seq_len, mp_num=8):
    """Cast weights to bf16, fold the ProGen mp_num column shuffle and the
    1/sqrt(head_dim) query scale into w_qkv, build rotary tables."""
    E = embed_dim
    head_dim = E // n_head
    local = E // mp_num
    idx = np.arange(3 * E).reshape(mp_num, 3, local)
    perm = np.concatenate([idx[:, 0].reshape(-1),    # query columns
                           idx[:, 1].reshape(-1),    # value columns
                           idx[:, 2].reshape(-1)])   # key columns
    w_qkv = jnp.asarray(p["w_qkv"], jnp.float32)[:, perm]
    inv_scale = 1.0 / float(np.sqrt(head_dim))
    w_qkv = w_qkv.at[:, :E].multiply(inv_scale)      # fold 1/sqrt(d) into Q
    sin_full, cos_full, rot = _build_rotary_tables(seq_len, head_dim, rotary_dim)
    return {
        "ln_g": p["ln_g"],
        "ln_b": p["ln_b"],
        "w_qkv": w_qkv.astype(jnp.bfloat16),
        "w_out": p["w_out"].astype(jnp.bfloat16),
        "w_fc_in": p["w_fc_in"].astype(jnp.bfloat16),
        "b_fc_in": p["b_fc_in"],
        "w_fc_out": p["w_fc_out"].astype(jnp.bfloat16),
        "b_fc_out": p["b_fc_out"],
        "rope_sin": sin_full,
        "rope_cos": cos_full,
        "rope_rot": rot,
    }


# ----------------------------- ProGenBlock forward (Pallas path) -----------------------------

def progen_block_forward(x, kp, *, n_head, ln_eps=1e-5):
    B, T, E = x.shape
    head_dim = E // n_head
    M = B * T
    x2 = x.reshape(M, E)

    # ln_1 (tiled, bf16 output feeding both the attention and the MLP branch)
    ln = pallas_layernorm(x2, kp["ln_g"], kp["ln_b"], ln_eps)          # (M, E) bf16

    # qkv projection (no bias); permuted+scaled weight -> [Q | V | K] slabs
    qkv = pallas_linear(ln, kp["w_qkv"], out_dtype=jnp.bfloat16)       # (M, 3E)
    qkv3 = qkv.reshape(B, T, 3 * E)                                    # free reshape

    # fused causal flash attention with in-kernel rotary; q/k/v fed straight
    # from qkv3 via BlockSpec index maps; output head-merged (B, T, E) bf16
    attn = pallas_flash_attention(qkv3, kp["rope_sin"], kp["rope_cos"],
                                  kp["rope_rot"], n_head=n_head,
                                  head_dim=head_dim)

    # out_proj (no bias), kept in bf16 (added in the MLP epilogue)
    attn_proj = pallas_linear(attn.reshape(M, E), kp["w_out"],
                              out_dtype=jnp.bfloat16)                  # (M, E)

    # fused MLP (fc_in + gelu_new + fc_out) with fused final combine:
    # out = mlp(ln) + attn_proj + residual
    out = pallas_mlp(ln, kp["w_fc_in"], kp["b_fc_in"],
                     kp["w_fc_out"], kp["b_fc_out"], attn_proj, x2)    # (M, E) f32
    return out.reshape(B, T, E)


# ----------------------------- pure-JAX fp32 reference (PyTorch semantics) -----------------------------

def rotate_every_two(x):
    x1 = x[..., ::2]
    x2 = x[..., 1::2]
    return jnp.stack((-x2, x1), axis=-1).reshape(x.shape)


def fixed_pos_embedding(dim, seq_len):
    inv_freq = 1.0 / (10000.0 ** (jnp.arange(0, dim, 2, dtype=jnp.float32) / dim))
    sinusoid = jnp.einsum("i,j->ij",
                          jnp.arange(seq_len, dtype=jnp.float32), inv_freq)
    return jnp.sin(sinusoid), jnp.cos(sinusoid)


def apply_rotary_pos_emb(x, sincos):
    sin, cos = sincos
    sin = jnp.repeat(sin, 2, axis=-1)[None, :, None, :]
    cos = jnp.repeat(cos, 2, axis=-1)[None, :, None, :]
    return x * cos + rotate_every_two(x) * sin


def progen_block_reference(x, p, *, n_head, rotary_dim, ln_eps=1e-5):
    B, T, E = x.shape
    head_dim = E // n_head
    mp_num = 8
    local = E // mp_num
    residual = x

    mean = x.mean(-1, keepdims=True)
    var = ((x - mean) ** 2).mean(-1, keepdims=True)
    ln = (x - mean) / jnp.sqrt(var + ln_eps) * p["ln_g"] + p["ln_b"]

    qkv = ln @ p["w_qkv"]
    qkv_split = qkv.reshape(B, T, mp_num, 3 * local)
    query = qkv_split[..., :local]
    value = qkv_split[..., local:2 * local]
    key = qkv_split[..., 2 * local:]

    def split_heads(t):
        return t.reshape(B, T, E).reshape(B, T, n_head, head_dim)

    query, key, value = split_heads(query), split_heads(key), split_heads(value)
    value = value.transpose(0, 2, 1, 3)

    sincos = fixed_pos_embedding(rotary_dim, T)
    key = jnp.concatenate(
        [apply_rotary_pos_emb(key[..., :rotary_dim], sincos), key[..., rotary_dim:]],
        axis=-1).transpose(0, 2, 1, 3)
    query = jnp.concatenate(
        [apply_rotary_pos_emb(query[..., :rotary_dim], sincos), query[..., rotary_dim:]],
        axis=-1).transpose(0, 2, 1, 3)

    s = jnp.einsum("bhqd,bhkd->bhqk", query, key) / jnp.sqrt(jnp.float32(head_dim))
    causal = jnp.tril(jnp.ones((T, T), bool))
    s = jnp.where(causal, s, -1e9)
    pw = jax.nn.softmax(s, axis=-1)
    attn = jnp.einsum("bhqk,bhkd->bhqd", pw, value)
    attn = attn.transpose(0, 2, 1, 3).reshape(B, T, E)
    attn_out = attn @ p["w_out"]

    h = ln @ p["w_fc_in"] + p["b_fc_in"]
    h = _gelu_new(h)
    mlp = h @ p["w_fc_out"] + p["b_fc_out"]
    return attn_out + mlp + residual


# ----------------------------- main -----------------------------

if __name__ == "__main__":
    B, T, E = 2, 16, 256
    n_head = 2
    head_dim = E // n_head       # 128 -> lane-dense per-head attention blocks
    rotary_dim = 32              # even, <= head_dim
    inner = 4 * E                # n_inner = None -> 4 * embed_dim

    key0 = jax.random.PRNGKey(0)
    ks = jax.random.split(key0, 8)
    params = {
        "ln_g": jnp.ones((E,), jnp.float32),
        "ln_b": jnp.zeros((E,), jnp.float32),
        "w_qkv": 0.02 * jax.random.normal(ks[0], (E, 3 * E), jnp.float32),
        "w_out": 0.02 * jax.random.normal(ks[1], (E, E), jnp.float32),
        "w_fc_in": 0.02 * jax.random.normal(ks[2], (E, inner), jnp.float32),
        "b_fc_in": 0.01 * jax.random.normal(ks[3], (inner,), jnp.float32),
        "w_fc_out": 0.02 * jax.random.normal(ks[4], (inner, E), jnp.float32),
        "b_fc_out": 0.01 * jax.random.normal(ks[5], (E,), jnp.float32),
    }
    x = jax.random.normal(ks[6], (B, T, E), jnp.float32)

    kparams = prepare_kernel_params(params, embed_dim=E, n_head=n_head,
                                    rotary_dim=rotary_dim, seq_len=T)

    fwd = jax.jit(functools.partial(progen_block_forward, n_head=n_head))
    out = jax.block_until_ready(fwd(x, kparams))

    assert out.shape == (B, T, E)
    assert bool(jnp.all(jnp.isfinite(out)))

    # sanity: fp32 pure-JAX reference of the original module (bf16 tolerance)
    ref = progen_block_reference(x, params, n_head=n_head, rotary_dim=rotary_dim)
    err = float(jnp.max(jnp.abs(out - ref)))
    assert err < 5e-2, f"max abs error vs reference: {err}"

    print("KERNEL_OK")
</pallas_src>

<mosaic_0001>
module attributes {stable_mosaic.version = 11 : i64} {
  func.func @matmul_kernel(%arg0: i32, %arg1: i32, %arg2: i32, %arg3: memref<32x256xbf16, #tpu.memory_space<vmem>>, %arg4: memref<256x256xbf16, #tpu.memory_space<vmem>>, %arg5: memref<32x256xbf16, #tpu.memory_space<vmem>>, %arg6: memref<32x256xf32, #tpu.memory_space<vmem>>) attributes {dimension_semantics = [#tpu.dimension_semantics<parallel>, #tpu.dimension_semantics<parallel>, #tpu.dimension_semantics<arbitrary>], iteration_bounds = array<i64: 1, 1, 1>, scalar_prefetch = 0 : i64, scratch_operands = 1 : i64, tpu.core_type = #tpu.core_type<tc>, window_params = [{transform_indices = @transform_0, window_bounds = array<i64: 32, 256>}, {transform_indices = @transform_1, window_bounds = array<i64: 256, 256>}, {transform_indices = @transform_2, window_bounds = array<i64: 32, 256>}]} {
    %c0_i32 = arith.constant 0 : i32
    %0 = arith.cmpi eq, %arg2, %c0_i32 : i32
    %1 = arith.extui %0 : i1 to i32
    %c0_i32_0 = arith.constant 0 : i32
    %2 = arith.cmpi ne, %1, %c0_i32_0 : i32
    scf.if %2 {
      %cst_10 = arith.constant 0.000000e+00 : f32
      %12 = vector.broadcast %cst_10 : f32 to vector<32x256xf32>
      %c0_11 = arith.constant 0 : index
      %c0_12 = arith.constant 0 : index
      %13 = vector.load %arg6[%c0_11, %c0_12] : memref<32x256xf32, #tpu.memory_space<vmem>>, vector<32x256xf32>
      tpu.vector_store %arg6[%c0_11, %c0_12], %12 {strides = array<i32>} : memref<32x256xf32, #tpu.memory_space<vmem>>, vector<32x256xf32>,
    } else {
    }
    %c0 = arith.constant 0 : index
    %c0_1 = arith.constant 0 : index
    %3 = vector.load %arg6[%c0, %c0_1] : memref<32x256xf32, #tpu.memory_space<vmem>>, vector<32x256xf32>
    %c0_2 = arith.constant 0 : index
    %c0_3 = arith.constant 0 : index
    %4 = vector.load %arg3[%c0_2, %c0_3] : memref<32x256xbf16, #tpu.memory_space<vmem>>, vector<32x256xbf16>
    %c0_4 = arith.constant 0 : index
    %c0_5 = arith.constant 0 : index
    %5 = vector.load %arg4[%c0_4, %c0_5] : memref<256x256xbf16, #tpu.memory_space<vmem>>, vector<256x256xbf16>
    %cst = arith.constant dense<0.000000e+00> : vector<32x256xf32>
    %6 = tpu.matmul %4, %5, %cst {dimension_numbers = #tpu.dot_dimension_numbers<[1], [0], [0], [1], [0, 0, 1, 1], [], []>} : vector<32x256xbf16>, vector<256x256xbf16>, vector<32x256xf32> -> vector<32x256xf32>
    %7 = arith.addf %3, %6 : vector<32x256xf32>
    %c0_6 = arith.constant 0 : index
    %c0_7 = arith.constant 0 : index
    %8 = vector.load %arg6[%c0_6, %c0_7] : memref<32x256xf32, #tpu.memory_space<vmem>>, vector<32x256xf32>
    tpu.vector_store %arg6[%c0_6, %c0_7], %7 {strides = array<i32>} : memref<32x256xf32, #tpu.memory_space<vmem>>, vector<32x256xf32>,
    %c0_i32_8 = arith.constant 0 : i32
    %9 = arith.cmpi eq, %arg2, %c0_i32_8 : i32
    %10 = arith.extui %9 : i1 to i32
    %c0_i32_9 = arith.constant 0 : i32
    %11 = arith.cmpi ne, %10, %c0_i32_9 : i32
    scf.if %11 {
      %c0_10 = arith.constant 0 : index
      %c0_11 = arith.constant 0 : index
      %12 = vector.load %arg6[%c0_10, %c0_11] : memref<32x256xf32, #tpu.memory_space<vmem>>, vector<32x256xf32>
      %13 = arith.truncf %12 : vector<32x256xf32> to vector<32x256xbf16>
      %c0_12 = arith.constant 0 : index
      %c0_13 = arith.constant 0 : index
      %14 = vector.load %arg5[%c0_12, %c0_13] : memref<32x256xbf16, #tpu.memory_space<vmem>>, vector<32x256xbf16>
      tpu.vector_store %arg5[%c0_12, %c0_13], %13 {strides = array<i32>} : memref<32x256xbf16, #tpu.memory_space<vmem>>, vector<32x256xbf16>,
    } else {
    }
    return
  }
  func.func @transform_0(%arg0: i32, %arg1: i32, %arg2: i32) -> (i32, i32) {
    %c0_i32 = arith.constant 0 : i32
    return %arg0, %arg2 : i32, i32
  }
  func.func @transform_1(%arg0: i32, %arg1: i32, %arg2: i32) -> (i32, i32) {
    %c0_i32 = arith.constant 0 : i32
    return %arg2, %arg1 : i32, i32
  }
  func.func @transform_2(%arg0: i32, %arg1: i32, %arg2: i32) -> (i32, i32) {
    %c0_i32 = arith.constant 0 : i32
    return %arg0, %arg1 : i32, i32
  }
}

module attributes {stable_mosaic.version = 11 : i64} {
  func.func @flash_attn_kernel(%arg0: i32, %arg1: i32, %arg2: i32, %arg3: memref<1xi32, #tpu.memory_space<smem>>, %arg4: memref<1xi32, #tpu.memory_space<smem>>, %arg5: memref<1x16x128xbf16, #tpu.memory_space<vmem>>, %arg6: memref<1x16x128xbf16, #tpu.memory_space<vmem>>, %arg7: memref<1x16x128xbf16, #tpu.memory_space<vmem>>, %arg8: memref<16x128xf32, #tpu.memory_space<vmem>>, %arg9: memref<16x128xf32, #tpu.memory_space<vmem>>, %arg10: memref<128x128xbf16, #tpu.memory_space<vmem>>, %arg11: memref<1x16x128xbf16, #tpu.memory_space<vmem>>, %arg12: memref<16x128xbf16, #tpu.memory_space<vmem>>, %arg13: memref<16x1xf32, #tpu.memory_space<vmem>>, %arg14: memref<16x1xf32, #tpu.memory_space<vmem>>, %arg15: memref<16x128xf32, #tpu.memory_space<vmem>>) attributes {dimension_semantics = [#tpu.dimension_semantics<parallel>, #tpu.dimension_semantics<parallel>, #tpu.dimension_semantics<arbitrary>], iteration_bounds = array<i64: 2, 2, 1>, scalar_prefetch = 2 : i64, scratch_operands = 4 : i64, tpu.core_type = #tpu.core_type<tc>, window_params = [{transform_indices = @transform_0, window_bounds = array<i64: 1, 16, 128>}, {transform_indices = @transform_1, window_bounds = array<i64: 1, 16, 128>}, {transform_indices = @transform_2, window_bounds = array<i64: 1, 16, 128>}, {pipeline_mode = #tpu.pipeline_mode<synchronous>, transform_indices = @transform_3, window_bounds = array<i64: 16, 128>}, {pipeline_mode = #tpu.pipeline_mode<synchronous>, transform_indices = @transform_4, window_bounds = array<i64: 16, 128>}, {pipeline_mode = #tpu.pipeline_mode<synchronous>, transform_indices = @transform_5, window_bounds = array<i64: 128, 128>}, {transform_indices = @transform_6, window_bounds = array<i64: 1, 16, 128>}]} {
    %0 = arith.index_cast %arg2 : i32 to index
    %1 = memref.load %arg3[%0] : memref<1xi32, #tpu.memory_space<smem>>
    %2 = arith.index_cast %arg2 : i32 to index
    %3 = memref.load %arg4[%2] : memref<1xi32, #tpu.memory_space<smem>>
    %c0_i32 = arith.constant 0 : i32
    %4 = arith.cmpi eq, %3, %c0_i32 : i32
    %5 = arith.extui %4 : i1 to i32
    %c0_i32_0 = arith.constant 0 : i32
    %6 = arith.cmpi ne, %5, %c0_i32_0 : i32
    scf.if %6 {
      %c16_i32_15 = arith.constant 16 : i32
      %32 = arith.muli %1, %c16_i32_15 : i32
      %33 = tpu.assume_multiple %32, 16 : i32
      %34 = arith.index_cast %33 : i32 to index
      %c0_16 = arith.constant 0 : index
      %35 = vector.load %arg8[%34, %c0_16] : memref<16x128xf32, #tpu.memory_space<vmem>>, vector<16x128xf32>
      %36 = arith.index_cast %33 : i32 to index
      %c0_17 = arith.constant 0 : index
      %37 = vector.load %arg9[%36, %c0_17] : memref<16x128xf32, #tpu.memory_space<vmem>>, vector<16x128xf32>
      %c0_18 = arith.constant 0 : index
      %c0_19 = arith.constant 0 : index
      %c0_20 = arith.constant 0 : index
      %38 = vector.load %arg5[%c0_18, %c0_19, %c0_20] : memref<1x16x128xbf16, #tpu.memory_space<vmem>>, vector<1x16x128xbf16>
      %39 = vector.shape_cast %38 : vector<1x16x128xbf16> to vector<16x128xbf16>
      %c0_21 = arith.constant 0 : index
      %c0_22 = arith.constant 0 : index
      %40 = vector.load %arg10[%c0_21, %c0_22] : memref<128x128xbf16, #tpu.memory_space<vmem>>, vector<128x128xbf16>
      %cst_23 = arith.constant dense<0.000000e+00> : vector<16x128xf32>
      %41 = tpu.matmul %39, %40, %cst_23 {dimension_numbers = #tpu.dot_dimension_numbers<[1], [0], [0], [1], [0, 0, 1, 1], [], []>} : vector<16x128xbf16>, vector<128x128xbf16>, vector<16x128xf32> -> vector<16x128xf32>
      %42 = arith.extf %39 : vector<16x128xbf16> to vector<16x128xf32>
      %43 = arith.mulf %42, %37 : vector<16x128xf32>
      %44 = arith.mulf %41, %35 : vector<16x128xf32>
      %45 = arith.addf %43, %44 : vector<16x128xf32>
      %46 = arith.truncf %45 : vector<16x128xf32> to vector<16x128xbf16>
      %c0_24 = arith.constant 0 : index
      %c0_25 = arith.constant 0 : index
      %47 = vector.load %arg12[%c0_24, %c0_25] : memref<16x128xbf16, #tpu.memory_space<vmem>>, vector<16x128xbf16>
      tpu.vector_store %arg12[%c0_24, %c0_25], %46 {strides = array<i32>} : memref<16x128xbf16, #tpu.memory_space<vmem>>, vector<16x128xbf16>,
      %cst_26 = arith.constant 0xFF800000 : f32
      %48 = vector.broadcast %cst_26 : f32 to vector<16x1xf32>
      %c0_27 = arith.constant 0 : index
      %c0_28 = arith.constant 0 : index
      %49 = vector.load %arg13[%c0_27, %c0_28] : memref<16x1xf32, #tpu.memory_space<vmem>>, vector<16x1xf32>
      tpu.vector_store %arg13[%c0_27, %c0_28], %48 {strides = array<i32>} : memref<16x1xf32, #tpu.memory_space<vmem>>, vector<16x1xf32>,
      %cst_29 = arith.constant 0.000000e+00 : f32
      %50 = vector.broadcast %cst_29 : f32 to vector<16x1xf32>
      %c0_30 = arith.constant 0 : index
      %c0_31 = arith.constant 0 : index
      %51 = vector.load %arg14[%c0_30, %c0_31] : memref<16x1xf32, #tpu.memory_space<vmem>>, vector<16x1xf32>
      tpu.vector_store %arg14[%c0_30, %c0_31], %50 {strides = array<i32>} : memref<16x1xf32, #tpu.memory_space<vmem>>, vector<16x1xf32>,
      %cst_32 = arith.constant 0.000000e+00 : f32
      %52 = vector.broadcast %cst_32 : f32 to vector<16x128xf32>
      %c0_33 = arith.constant 0 : index
      %c0_34 = arith.constant 0 : index
      %53 = vector.load %arg15[%c0_33, %c0_34] : memref<16x128xf32, #tpu.memory_space<vmem>>, vector<16x128xf32>
      tpu.vector_store %arg15[%c0_33, %c0_34], %52 {strides = array<i32>} : memref<16x128xf32, #tpu.memory_space<vmem>>, vector<16x128xf32>,
    } else {
    }
    %c16_i32 = arith.constant 16 : i32
    %7 = arith.muli %3, %c16_i32 : i32
    %8 = tpu.assume_multiple %7, 16 : i32
    %9 = arith.index_cast %8 : i32 to index
    %c0 = arith.constant 0 : index
    %10 = vector.load %arg8[%9, %c0] : memref<16x128xf32, #tpu.memory_space<vmem>>, vector<16x128xf32>
    %11 = arith.index_cast %8 : i32 to index
    %c0_1 = arith.constant 0 : index
    %12 = vector.load %arg9[%11, %c0_1] : memref<16x128xf32, #tpu.memory_space<vmem>>, vector<16x128xf32>
    %c0_2 = arith.constant 0 : index
    %c0_3 = arith.constant 0 : index
    %c0_4 = arith.constant 0 : index
    %13 = vector.load %arg6[%c0_2, %c0_3, %c0_4] : memref<1x16x128xbf16, #tpu.memory_space<vmem>>, vector<1x16x128xbf16>
    %14 = vector.shape_cast %13 : vector<1x16x128xbf16> to vector<16x128xbf16>
    %c0_5 = arith.constant 0 : index
    %c0_6 = arith.constant 0 : index
    %15 = vector.load %arg10[%c0_5, %c0_6] : memref<128x128xbf16, #tpu.memory_space<vmem>>, vector<128x128xbf16>
    %cst = arith.constant dense<0.000000e+00> : vector<16x128xf32>
    %16 = tpu.matmul %14, %15, %cst {dimension_numbers = #tpu.dot_dimension_numbers<[1], [0], [0], [1], [0, 0, 1, 1], [], []>} : vector<16x128xbf16>, vector<128x128xbf16>, vector<16x128xf32> -> vector<16x128xf32>
    %17 = arith.extf %14 : vector<16x128xbf16> to vector<16x128xf32>
    %18 = arith.mulf %17, %12 : vector<16x128xf32>
    %19 = arith.mulf %16, %10 : vector<16x128xf32>
    %20 = arith.addf %18, %19 : vector<16x128xf32>
    %21 = arith.truncf %20 : vector<16x128xf32> to vector<16x128xbf16>
    %c0_7 = arith.constant 0 : index
    %c0_8 = arith.constant 0 : index
    %c0_9 = arith.constant 0 : index
    %22 = vector.load %arg7[%c0_7, %c0_8, %c0_9] : memref<1x16x128xbf16, #tpu.memory_space<vmem>>, vector<1x16x128xbf16>
    %23 = vector.shape_cast %22 : vector<1x16x128xbf16> to vector<16x128xbf16>
    %c0_10 = arith.constant 0 : index
    %c0_11 = arith.constant 0 : index
    %24 = vector.load %arg12[%c0_10, %c0_11] : memref<16x128xbf16, #tpu.memory_space<vmem>>, vector<16x128xbf16>
    %cst_12 = arith.constant dense<0.000000e+00> : vector<16x16xf32>
    %25 = tpu.matmul %24, %21, %cst_12 {dimension_numbers = #tpu.dot_dimension_numbers<[1], [1], [0], [0], [0, 0, 1, 0], [], []>} : vector<16x128xbf16>, vector<16x128xbf16>, vector<16x16xf32> -> vector<16x16xf32>
    %26 = arith.cmpi slt, %3, %1 : i32
    %27 = arith.extui %26 : i1 to i32
    %c0_i32_13 = arith.constant 0 : i32
    %28 = arith.cmpi ne, %27, %c0_i32_13 : i32
    scf.if %28 {
      %c0_15 = arith.constant 0 : index
      %c0_16 = arith.constant 0 : index
      %32 = vector.load %arg13[%c0_15, %c0_16] : memref<16x1xf32, #tpu.memory_space<vmem>>, vector<16x1xf32>
      %cst_17 = arith.constant dense<0xFF800000> : vector<16xf32>
      %33 = vector.multi_reduction <maximumf>, %25, %cst_17 [1] : vector<16x16xf32> to vector<16xf32>
      %34 = vector.shape_cast %33 : vector<16xf32> to vector<16x1xf32>
      %35 = arith.maximumf %32, %34 : vector<16x1xf32>
      %36 = arith.subf %32, %35 : vector<16x1xf32>
      %37 = math.exp %36 : vector<16x1xf32>
      %38 = vector.broadcast %35 : vector<16x1xf32> to vector<16x16xf32>
      %39 = arith.subf %25, %38 : vector<16x16xf32>
      %40 = math.exp %39 : vector<16x16xf32>
      %c0_18 = arith.constant 0 : index
      %c0_19 = arith.constant 0 : index
      %41 = vector.load %arg14[%c0_18, %c0_19] : memref<16x1xf32, #tpu.memory_space<vmem>>, vector<16x1xf32>
      %42 = arith.mulf %37, %41 : vector<16x1xf32>
      %cst_20 = arith.constant dense<0.000000e+00> : vector<16xf32>
      %43 = vector.multi_reduction <add>, %40, %cst_20 [1] : vector<16x16xf32> to vector<16xf32>
      %44 = vector.shape_cast %43 : vector<16xf32> to vector<16x1xf32>
      %45 = arith.addf %42, %44 : vector<16x1xf32>
      %c0_21 = arith.constant 0 : index
      %c0_22 = arith.constant 0 : index
      %46 = vector.load %arg14[%c0_21, %c0_22] : memref<16x1xf32, #tpu.memory_space<vmem>>, vector<16x1xf32>
      tpu.vector_store %arg14[%c0_21, %c0_22], %45 {strides = array<i32>} : memref<16x1xf32, #tpu.memory_space<vmem>>, vector<16x1xf32>,
      %c0_23 = arith.constant 0 : index
      %c0_24 = arith.constant 0 : index
      %47 = vector.load %arg15[%c0_23, %c0_24] : memref<16x128xf32, #tpu.memory_space<vmem>>, vector<16x128xf32>
      %48 = vector.broadcast %37 : vector<16x1xf32> to vector<16x128xf32>
      %49 = arith.mulf %48, %47 : vector<16x128xf32>
      %50 = arith.truncf %40 : vector<16x16xf32> to vector<16x16xbf16>
      %cst_25 = arith.constant dense<0.000000e+00> : vector<16x128xf32>
      %51 = tpu.matmul %50, %23, %cst_25 {dimension_numbers = #tpu.dot_dimension_numbers<[1], [0], [0], [1], [0, 0, 1, 1], [], []>} : vector<16x16xbf16>, vector<16x128xbf16>, vector<16x128xf32> -> vector<16x128xf32>
      %52 = arith.addf %49, %51 : vector<16x128xf32>
      %c0_26 = arith.constant 0 : index
      %c0_27 = arith.constant 0 : index
      %53 = vector.load %arg15[%c0_26, %c0_27] : memref<16x128xf32, #tpu.memory_space<vmem>>, vector<16x128xf32>
      tpu.vector_store %arg15[%c0_26, %c0_27], %52 {strides = array<i32>} : memref<16x128xf32, #tpu.memory_space<vmem>>, vector<16x128xf32>,
      %c0_28 = arith.constant 0 : index
      %c0_29 = arith.constant 0 : index
      %54 = vector.load %arg13[%c0_28, %c0_29] : memref<16x1xf32, #tpu.memory_space<vmem>>, vector<16x1xf32>
      tpu.vector_store %arg13[%c0_28, %c0_29], %35 {strides = array<i32>} : memref<16x1xf32, #tpu.memory_space<vmem>>, vector<16x1xf32>,
    } else {
    }
    %29 = arith.cmpi eq, %3, %1 : i32
    %30 = arith.extui %29 : i1 to i32
    %c0_i32_14 = arith.constant 0 : i32
    %31 = arith.cmpi ne, %30, %c0_i32_14 : i32
    scf.if %31 {
      %32 = tpu.iota {dimensions = array<i32: 0>} : vector<16x16xi32>
      %33 = tpu.iota {dimensions = array<i32: 1>} : vector<16x16xi32>
      %34 = arith.cmpi sle, %33, %32 : vector<16x16xi32>
      %cst_15 = arith.constant -1.000000e+09 : f32
      %35 = vector.broadcast %cst_15 : f32 to vector<16x16xf32>
      %36 = arith.select %34, %25, %35 : vector<16x16xi1>, vector<16x16xf32>
      %c0_16 = arith.constant 0 : index
      %c0_17 = arith.constant 0 : index
      %37 = vector.load %arg13[%c0_16, %c0_17] : memref<16x1xf32, #tpu.memory_space<vmem>>, vector<16x1xf32>
      %cst_18 = arith.constant dense<0xFF800000> : vector<16xf32>
      %38 = vector.multi_reduction <maximumf>, %36, %cst_18 [1] : vector<16x16xf32> to vector<16xf32>
      %39 = vector.shape_cast %38 : vector<16xf32> to vector<16x1xf32>
      %40 = arith.maximumf %37, %39 : vector<16x1xf32>
      %41 = arith.subf %37, %40 : vector<16x1xf32>
      %42 = math.exp %41 : vector<16x1xf32>
      %43 = vector.broadcast %40 : vector<16x1xf32> to vector<16x16xf32>
      %44 = arith.subf %36, %43 : vector<16x16xf32>
      %45 = math.exp %44 : vector<16x16xf32>
      %c0_19 = arith.constant 0 : index
      %c0_20 = arith.constant 0 : index
      %46 = vector.load %arg14[%c0_19, %c0_20] : memref<16x1xf32, #tpu.memory_space<vmem>>, vector<16x1xf32>
      %47 = arith.mulf %42, %46 : vector<16x1xf32>
      %cst_21 = arith.constant dense<0.000000e+00> : vector<16xf32>
      %48 = vector.multi_reduction <add>, %45, %cst_21 [1] : vector<16x16xf32> to vector<16xf32>
      %49 = vector.shape_cast %48 : vector<16xf32> to vector<16x1xf32>
      %50 = arith.addf %47, %49 : vector<16x1xf32>
      %c0_22 = arith.constant 0 : index
      %c0_23 = arith.constant 0 : index
      %51 = vector.load %arg14[%c0_22, %c0_23] : memref<16x1xf32, #tpu.memory_space<vmem>>, vector<16x1xf32>
      tpu.vector_store %arg14[%c0_22, %c0_23], %50 {strides = array<i32>} : memref<16x1xf32, #tpu.memory_space<vmem>>, vector<16x1xf32>,
      %c0_24 = arith.constant 0 : index
      %c0_25 = arith.constant 0 : index
      %52 = vector.load %arg15[%c0_24, %c0_25] : memref<16x128xf32, #tpu.memory_space<vmem>>, vector<16x128xf32>
      %53 = vector.broadcast %42 : vector<16x1xf32> to vector<16x128xf32>
      %54 = arith.mulf %53, %52 : vector<16x128xf32>
      %55 = arith.truncf %45 : vector<16x16xf32> to vector<16x16xbf16>
      %cst_26 = arith.constant dense<0.000000e+00> : vector<16x128xf32>
      %56 = tpu.matmul %55, %23, %cst_26 {dimension_numbers = #tpu.dot_dimension_numbers<[1], [0], [0], [1], [0, 0, 1, 1], [], []>} : vector<16x16xbf16>, vector<16x128xbf16>, vector<16x128xf32> -> vector<16x128xf32>
      %57 = arith.addf %54, %56 : vector<16x128xf32>
      %c0_27 = arith.constant 0 : index
      %c0_28 = arith.constant 0 : index
      %58 = vector.load %arg15[%c0_27, %c0_28] : memref<16x128xf32, #tpu.memory_space<vmem>>, vector<16x128xf32>
      tpu.vector_store %arg15[%c0_27, %c0_28], %57 {strides = array<i32>} : memref<16x128xf32, #tpu.memory_space<vmem>>, vector<16x128xf32>,
      %c0_29 = arith.constant 0 : index
      %c0_30 = arith.constant 0 : index
      %59 = vector.load %arg13[%c0_29, %c0_30] : memref<16x1xf32, #tpu.memory_space<vmem>>, vector<16x1xf32>
      tpu.vector_store %arg13[%c0_29, %c0_30], %40 {strides = array<i32>} : memref<16x1xf32, #tpu.memory_space<vmem>>, vector<16x1xf32>,
      %c0_31 = arith.constant 0 : index
      %c0_32 = arith.constant 0 : index
      %60 = vector.load %arg14[%c0_31, %c0_32] : memref<16x1xf32, #tpu.memory_space<vmem>>, vector<16x1xf32>
      %61 = tpu.reciprocal %60 {approx = true} : vector<16x1xf32> -> vector<16x1xf32>
      %c0_33 = arith.constant 0 : index
      %c0_34 = arith.constant 0 : index
      %62 = vector.load %arg15[%c0_33, %c0_34] : memref<16x128xf32, #tpu.memory_space<vmem>>, vector<16x128xf32>
      %63 = vector.broadcast %61 : vector<16x1xf32> to vector<16x128xf32>
      %64 = arith.mulf %62, %63 : vector<16x128xf32>
      %65 = arith.truncf %64 : vector<16x128xf32> to vector<16x128xbf16>
      %c0_35 = arith.constant 0 : index
      %c0_36 = arith.constant 0 : index
      %c0_37 = arith.constant 0 : index
      %66 = vector.load %arg11[%c0_35, %c0_36, %c0_37] : memref<1x16x128xbf16, #tpu.memory_space<vmem>>, vector<1x16x128xbf16>
      %67 = vector.shape_cast %66 : vector<1x16x128xbf16> to vector<16x128xbf16>
      %68 = vector.shape_cast %65 : vector<16x128xbf16> to vector<1x16x128xbf16>
      tpu.vector_store %arg11[%c0_35, %c0_36, %c0_37], %68 {strides = array<i32>} : memref<1x16x128xbf16, #tpu.memory_space<vmem>>, vector<1x16x128xbf16>,
    } else {
    }
    return
  }
  func.func @transform_0(%arg0: i32, %arg1: i32, %arg2: i32, %arg3: memref<1xi32, #tpu.memory_space<smem>>, %arg4: memref<1xi32, #tpu.memory_space<smem>>) -> (i32, i32, i32) {
    %0 = arith.index_cast %arg2 : i32 to index
    %1 = memref.load %arg3[%0] : memref<1xi32, #tpu.memory_space<smem>>
    %c0_i32 = arith.constant 0 : i32
    return %arg0, %1, %arg1 : i32, i32, i32
  }
  func.func @transform_1(%arg0: i32, %arg1: i32, %arg2: i32, %arg3: memref<1xi32, #tpu.memory_space<smem>>, %arg4: memref<1xi32, #tpu.memory_space<smem>>) -> (i32, i32, i32) {
    %0 = arith.index_cast %arg2 : i32 to index
    %1 = memref.load %arg4[%0] : memref<1xi32, #tpu.memory_space<smem>>
    %c4_i32 = arith.constant 4 : i32
    %2 = arith.addi %c4_i32, %arg1 : i32
    %c0_i32 = arith.constant 0 : i32
    return %arg0, %1, %2 : i32, i32, i32
  }
  func.func @transform_2(%arg0: i32, %arg1: i32, %arg2: i32, %arg3: memref<1xi32, #tpu.memory_space<smem>>, %arg4: memref<1xi32, #tpu.memory_space<smem>>) -> (i32, i32, i32) {
    %0 = arith.index_cast %arg2 : i32 to index
    %1 = memref.load %arg4[%0] : memref<1xi32, #tpu.memory_space<smem>>
    %c2_i32 = arith.constant 2 : i32
    %2 = arith.addi %c2_i32, %arg1 : i32
    %c0_i32 = arith.constant 0 : i32
    return %arg0, %1, %2 : i32, i32, i32
  }
  func.func @transform_3(%arg0: i32, %arg1: i32, %arg2: i32, %arg3: memref<1xi32, #tpu.memory_space<smem>>, %arg4: memref<1xi32, #tpu.memory_space<smem>>) -> (i32, i32) {
    %c0_i32 = arith.constant 0 : i32
    %c0_i32_0 = arith.constant 0 : i32
    %c0_i32_1 = arith.constant 0 : i32
    return %c0_i32, %c0_i32_0 : i32, i32
  }
  func.func @transform_4(%arg0: i32, %arg1: i32, %arg2: i32, %arg3: memref<1xi32, #tpu.memory_space<smem>>, %arg4: memref<1xi32, #tpu.memory_space<smem>>) -> (i32, i32) {
    %c0_i32 = arith.constant 0 : i32
    %c0_i32_0 = arith.constant 0 : i32
    %c0_i32_1 = arith.constant 0 : i32
    return %c0_i32, %c0_i32_0 : i32, i32
  }
  func.func @transform_5(%arg0: i32, %arg1: i32, %arg2: i32, %arg3: memref<1xi32, #tpu.memory_space<smem>>, %arg4: memref<1xi32, #tpu.memory_space<smem>>) -> (i32, i32) {
    %c0_i32 = arith.constant 0 : i32
    %c0_i32_0 = arith.constant 0 : i32
    %c0_i32_1 = arith.constant 0 : i32
    return %c0_i32, %c0_i32_0 : i32, i32
  }
  func.func @transform_6(%arg0: i32, %arg1: i32, %arg2: i32, %arg3: memref<1xi32, #tpu.memory_space<smem>>, %arg4: memref<1xi32, #tpu.memory_space<smem>>) -> (i32, i32, i32) {
    %0 = arith.index_cast %arg2 : i32 to index
    %1 = memref.load %arg3[%0] : memref<1xi32, #tpu.memory_space<smem>>
    %c0_i32 = arith.constant 0 : i32
    return %arg0, %1, %arg1 : i32, i32, i32
  }
}

module attributes {stable_mosaic.version = 11 : i64} {
  func.func @matmul_kernel(%arg0: i32, %arg1: i32, %arg2: i32, %arg3: memref<32x256xbf16, #tpu.memory_space<vmem>>, %arg4: memref<256x384xbf16, #tpu.memory_space<vmem>>, %arg5: memref<32x384xbf16, #tpu.memory_space<vmem>>, %arg6: memref<32x384xf32, #tpu.memory_space<vmem>>) attributes {dimension_semantics = [#tpu.dimension_semantics<parallel>, #tpu.dimension_semantics<parallel>, #tpu.dimension_semantics<arbitrary>], iteration_bounds = array<i64: 1, 2, 1>, scalar_prefetch = 0 : i64, scratch_operands = 1 : i64, tpu.core_type = #tpu.core_type<tc>, window_params = [{transform_indices = @transform_0, window_bounds = array<i64: 32, 256>}, {transform_indices = @transform_1, window_bounds = array<i64: 256, 384>}, {transform_indices = @transform_2, window_bounds = array<i64: 32, 384>}]} {
    %c0_i32 = arith.constant 0 : i32
    %0 = arith.cmpi eq, %arg2, %c0_i32 : i32
    %1 = arith.extui %0 : i1 to i32
    %c0_i32_0 = arith.constant 0 : i32
    %2 = arith.cmpi ne, %1, %c0_i32_0 : i32
    scf.if %2 {
      %cst_10 = arith.constant 0.000000e+00 : f32
      %12 = vector.broadcast %cst_10 : f32 to vector<32x384xf32>
      %c0_11 = arith.constant 0 : index
      %c0_12 = arith.constant 0 : index
      %13 = vector.load %arg6[%c0_11, %c0_12] : memref<32x384xf32, #tpu.memory_space<vmem>>, vector<32x384xf32>
      tpu.vector_store %arg6[%c0_11, %c0_12], %12 {strides = array<i32>} : memref<32x384xf32, #tpu.memory_space<vmem>>, vector<32x384xf32>,
    } else {
    }
    %c0 = arith.constant 0 : index
    %c0_1 = arith.constant 0 : index
    %3 = vector.load %arg6[%c0, %c0_1] : memref<32x384xf32, #tpu.memory_space<vmem>>, vector<32x384xf32>
    %c0_2 = arith.constant 0 : index
    %c0_3 = arith.constant 0 : index
    %4 = vector.load %arg3[%c0_2, %c0_3] : memref<32x256xbf16, #tpu.memory_space<vmem>>, vector<32x256xbf16>
    %c0_4 = arith.constant 0 : index
    %c0_5 = arith.constant 0 : index
    %5 = vector.load %arg4[%c0_4, %c0_5] : memref<256x384xbf16, #tpu.memory_space<vmem>>, vector<256x384xbf16>
    %cst = arith.constant dense<0.000000e+00> : vector<32x384xf32>
    %6 = tpu.matmul %4, %5, %cst {dimension_numbers = #tpu.dot_dimension_numbers<[1], [0], [0], [1], [0, 0, 1, 1], [], []>} : vector<32x256xbf16>, vector<256x384xbf16>, vector<32x384xf32> -> vector<32x384xf32>
    %7 = arith.addf %3, %6 : vector<32x384xf32>
    %c0_6 = arith.constant 0 : index
    %c0_7 = arith.constant 0 : index
    %8 = vector.load %arg6[%c0_6, %c0_7] : memref<32x384xf32, #tpu.memory_space<vmem>>, vector<32x384xf32>
    tpu.vector_store %arg6[%c0_6, %c0_7], %7 {strides = array<i32>} : memref<32x384xf32, #tpu.memory_space<vmem>>, vector<32x384xf32>,
    %c0_i32_8 = arith.constant 0 : i32
    %9 = arith.cmpi eq, %arg2, %c0_i32_8 : i32
    %10 = arith.extui %9 : i1 to i32
    %c0_i32_9 = arith.constant 0 : i32
    %11 = arith.cmpi ne, %10, %c0_i32_9 : i32
    scf.if %11 {
      %c0_10 = arith.constant 0 : index
      %c0_11 = arith.constant 0 : index
      %12 = vector.load %arg6[%c0_10, %c0_11] : memref<32x384xf32, #tpu.memory_space<vmem>>, vector<32x384xf32>
      %13 = arith.truncf %12 : vector<32x384xf32> to vector<32x384xbf16>
      %c0_12 = arith.constant 0 : index
      %c0_13 = arith.constant 0 : index
      %14 = vector.load %arg5[%c0_12, %c0_13] : memref<32x384xbf16, #tpu.memory_space<vmem>>, vector<32x384xbf16>
      tpu.vector_store %arg5[%c0_12, %c0_13], %13 {strides = array<i32>} : memref<32x384xbf16, #tpu.memory_space<vmem>>, vector<32x384xbf16>,
    } else {
    }
    return
  }
  func.func @transform_0(%arg0: i32, %arg1: i32, %arg2: i32) -> (i32, i32) {
    %c0_i32 = arith.constant 0 : i32
    return %arg0, %arg2 : i32, i32
  }
  func.func @transform_1(%arg0: i32, %arg1: i32, %arg2: i32) -> (i32, i32) {
    %c0_i32 = arith.constant 0 : i32
    return %arg2, %arg1 : i32, i32
  }
  func.func @transform_2(%arg0: i32, %arg1: i32, %arg2: i32) -> (i32, i32) {
    %c0_i32 = arith.constant 0 : i32
    return %arg0, %arg1 : i32, i32
  }
}

module attributes {stable_mosaic.version = 11 : i64} {
  func.func @layernorm_kernel(%arg0: i32, %arg1: memref<32x256xf32, #tpu.memory_space<vmem>>, %arg2: memref<1x256xf32, #tpu.memory_space<vmem>>, %arg3: memref<1x256xf32, #tpu.memory_space<vmem>>, %arg4: memref<32x256xbf16, #tpu.memory_space<vmem>>) attributes {dimension_semantics = [#tpu.dimension_semantics<parallel>], iteration_bounds = array<i64: 1>, scalar_prefetch = 0 : i64, scratch_operands = 0 : i64, tpu.core_type = #tpu.core_type<tc>, window_params = [{transform_indices = @transform_0, window_bounds = array<i64: 32, 256>}, {pipeline_mode = #tpu.pipeline_mode<synchronous>, transform_indices = @transform_1, window_bounds = array<i64: 1, 256>}, {pipeline_mode = #tpu.pipeline_mode<synchronous>, transform_indices = @transform_2, window_bounds = array<i64: 1, 256>}, {transform_indices = @transform_3, window_bounds = array<i64: 32, 256>}]} {
    %c0 = arith.constant 0 : index
    %c0_0 = arith.constant 0 : index
    %0 = vector.load %arg1[%c0, %c0_0] : memref<32x256xf32, #tpu.memory_space<vmem>>, vector<32x256xf32>
    %cst = arith.constant dense<0.000000e+00> : vector<32xf32>
    %1 = vector.multi_reduction <add>, %0, %cst [1] : vector<32x256xf32> to vector<32xf32>
    %2 = vector.shape_cast %1 : vector<32xf32> to vector<32x1xf32>
    %cst_1 = arith.constant 2.560000e+02 : f32
    %3 = vector.broadcast %cst_1 : f32 to vector<32x1xf32>
    %4 = arith.divf %2, %3 : vector<32x1xf32>
    %5 = vector.broadcast %4 : vector<32x1xf32> to vector<32x256xf32>
    %6 = arith.subf %0, %5 : vector<32x256xf32>
    %7 = arith.mulf %6, %6 : vector<32x256xf32>
    %cst_2 = arith.constant dense<0.000000e+00> : vector<32xf32>
    %8 = vector.multi_reduction <add>, %7, %cst_2 [1] : vector<32x256xf32> to vector<32xf32>
    %9 = vector.shape_cast %8 : vector<32xf32> to vector<32x1xf32>
    %cst_3 = arith.constant 2.560000e+02 : f32
    %10 = vector.broadcast %cst_3 : f32 to vector<32x1xf32>
    %11 = arith.divf %9, %10 : vector<32x1xf32>
    %cst_4 = arith.constant 9.99999974E-6 : f32
    %12 = vector.broadcast %cst_4 : f32 to vector<32x1xf32>
    %13 = arith.addf %11, %12 : vector<32x1xf32>
    %14 = math.rsqrt %13 : vector<32x1xf32>
    %15 = vector.broadcast %4 : vector<32x1xf32> to vector<32x256xf32>
    %16 = arith.subf %0, %15 : vector<32x256xf32>
    %17 = vector.broadcast %14 : vector<32x1xf32> to vector<32x256xf32>
    %18 = arith.mulf %16, %17 : vector<32x256xf32>
    %c0_5 = arith.constant 0 : index
    %c0_6 = arith.constant 0 : index
    %19 = vector.load %arg2[%c0_5, %c0_6] : memref<1x256xf32, #tpu.memory_space<vmem>>, vector<1x256xf32>
    %20 = vector.broadcast %19 : vector<1x256xf32> to vector<32x256xf32>
    %21 = arith.mulf %18, %20 : vector<32x256xf32>
    %c0_7 = arith.constant 0 : index
    %c0_8 = arith.constant 0 : index
    %22 = vector.load %arg3[%c0_7, %c0_8] : memref<1x256xf32, #tpu.memory_space<vmem>>, vector<1x256xf32>
    %23 = vector.broadcast %22 : vector<1x256xf32> to vector<32x256xf32>
    %24 = arith.addf %21, %23 : vector<32x256xf32>
    %25 = arith.truncf %24 : vector<32x256xf32> to vector<32x256xbf16>
    %c0_9 = arith.constant 0 : index
    %c0_10 = arith.constant 0 : index
    %26 = vector.load %arg4[%c0_9, %c0_10] : memref<32x256xbf16, #tpu.memory_space<vmem>>, vector<32x256xbf16>
    tpu.vector_store %arg4[%c0_9, %c0_10], %25 {strides = array<i32>} : memref<32x256xbf16, #tpu.memory_space<vmem>>, vector<32x256xbf16>,
    return
  }
  func.func @transform_0(%arg0: i32) -> (i32, i32) {
    %c0_i32 = arith.constant 0 : i32
    %c0_i32_0 = arith.constant 0 : i32
    return %arg0, %c0_i32 : i32, i32
  }
  func.func @transform_1(%arg0: i32) -> (i32, i32) {
    %c0_i32 = arith.constant 0 : i32
    %c0_i32_0 = arith.constant 0 : i32
    %c0_i32_1 = arith.constant 0 : i32
    return %c0_i32, %c0_i32_0 : i32, i32
  }
  func.func @transform_2(%arg0: i32) -> (i32, i32) {
    %c0_i32 = arith.constant 0 : i32
    %c0_i32_0 = arith.constant 0 : i32
    %c0_i32_1 = arith.constant 0 : i32
    return %c0_i32, %c0_i32_0 : i32, i32
  }
  func.func @transform_3(%arg0: i32) -> (i32, i32) {
    %c0_i32 = arith.constant 0 : i32
    %c0_i32_0 = arith.constant 0 : i32
    return %arg0, %c0_i32 : i32, i32
  }
}

module attributes {stable_mosaic.version = 11 : i64} {
  func.func @mlp_kernel(%arg0: i32, %arg1: i32, %arg2: memref<32x256xbf16, #tpu.memory_space<vmem>>, %arg3: memref<256x512xbf16, #tpu.memory_space<vmem>>, %arg4: memref<1x512xf32, #tpu.memory_space<vmem>>, %arg5: memref<512x256xbf16, #tpu.memory_space<vmem>>, %arg6: memref<1x256xf32, #tpu.memory_space<vmem>>, %arg7: memref<32x256xbf16, #tpu.memory_space<vmem>>, %arg8: memref<32x256xf32, #tpu.memory_space<vmem>>, %arg9: memref<32x256xf32, #tpu.memory_space<vmem>>, %arg10: memref<32x256xf32, #tpu.memory_space<vmem>>) attributes {dimension_semantics = [#tpu.dimension_semantics<parallel>, #tpu.dimension_semantics<arbitrary>], iteration_bounds = array<i64: 1, 2>, scalar_prefetch = 0 : i64, scratch_operands = 1 : i64, tpu.core_type = #tpu.core_type<tc>, window_params = [{transform_indices = @transform_0, window_bounds = array<i64: 32, 256>}, {transform_indices = @transform_1, window_bounds = array<i64: 256, 512>}, {transform_indices = @transform_2, window_bounds = array<i64: 1, 512>}, {transform_indices = @transform_3, window_bounds = array<i64: 512, 256>}, {pipeline_mode = #tpu.pipeline_mode<synchronous>, transform_indices = @transform_4, window_bounds = array<i64: 1, 256>}, {transform_indices = @transform_5, window_bounds = array<i64: 32, 256>}, {transform_indices = @transform_6, window_bounds = array<i64: 32, 256>}, {transform_indices = @transform_7, window_bounds = array<i64: 32, 256>}]} {
    %c0_i32 = arith.constant 0 : i32
    %0 = arith.cmpi eq, %arg1, %c0_i32 : i32
    %1 = arith.extui %0 : i1 to i32
    %c0_i32_0 = arith.constant 0 : i32
    %2 = arith.cmpi ne, %1, %c0_i32_0 : i32
    scf.if %2 {
      %cst_18 = arith.constant 0.000000e+00 : f32
      %31 = vector.broadcast %cst_18 : f32 to vector<32x256xf32>
      %c0_19 = arith.constant 0 : index
      %c0_20 = arith.constant 0 : index
      %32 = vector.load %arg10[%c0_19, %c0_20] : memref<32x256xf32, #tpu.memory_space<vmem>>, vector<32x256xf32>
      tpu.vector_store %arg10[%c0_19, %c0_20], %31 {strides = array<i32>} : memref<32x256xf32, #tpu.memory_space<vmem>>, vector<32x256xf32>,
    } else {
    }
    %c0 = arith.constant 0 : index
    %c0_1 = arith.constant 0 : index
    %3 = vector.load %arg2[%c0, %c0_1] : memref<32x256xbf16, #tpu.memory_space<vmem>>, vector<32x256xbf16>
    %c0_2 = arith.constant 0 : index
    %c0_3 = arith.constant 0 : index
    %4 = vector.load %arg3[%c0_2, %c0_3] : memref<256x512xbf16, #tpu.memory_space<vmem>>, vector<256x512xbf16>
    %cst = arith.constant dense<0.000000e+00> : vector<32x512xf32>
    %5 = tpu.matmul %3, %4, %cst {dimension_numbers = #tpu.dot_dimension_numbers<[1], [0], [0], [1], [0, 0, 1, 1], [], []>} : vector<32x256xbf16>, vector<256x512xbf16>, vector<32x512xf32> -> vector<32x512xf32>
    %c0_4 = arith.constant 0 : index
    %c0_5 = arith.constant 0 : index
    %6 = vector.load %arg4[%c0_4, %c0_5] : memref<1x512xf32, #tpu.memory_space<vmem>>, vector<1x512xf32>
    %7 = vector.broadcast %6 : vector<1x512xf32> to vector<32x512xf32>
    %8 = arith.addf %5, %7 : vector<32x512xf32>
    %cst_6 = arith.constant 5.000000e-01 : f32
    %9 = vector.broadcast %cst_6 : f32 to vector<32x512xf32>
    %10 = arith.mulf %9, %8 : vector<32x512xf32>
    %cst_7 = arith.constant 4.471500e-02 : f32
    %11 = vector.broadcast %cst_7 : f32 to vector<32x512xf32>
    %12 = arith.mulf %11, %8 : vector<32x512xf32>
    %13 = arith.mulf %12, %8 : vector<32x512xf32>
    %14 = arith.mulf %13, %8 : vector<32x512xf32>
    %15 = arith.addf %8, %14 : vector<32x512xf32>
    %cst_8 = arith.constant 0.797884583 : f32
    %16 = vector.broadcast %cst_8 : f32 to vector<32x512xf32>
    %17 = arith.mulf %16, %15 : vector<32x512xf32>
    %18 = math.tanh %17 : vector<32x512xf32>
    %cst_9 = arith.constant 1.000000e+00 : f32
    %19 = vector.broadcast %cst_9 : f32 to vector<32x512xf32>
    %20 = arith.addf %19, %18 : vector<32x512xf32>
    %21 = arith.mulf %10, %20 : vector<32x512xf32>
    %c0_10 = arith.constant 0 : index
    %c0_11 = arith.constant 0 : index
    %22 = vector.load %arg10[%c0_10, %c0_11] : memref<32x256xf32, #tpu.memory_space<vmem>>, vector<32x256xf32>
    %23 = arith.truncf %21 : vector<32x512xf32> to vector<32x512xbf16>
    %c0_12 = arith.constant 0 : index
    %c0_13 = arith.constant 0 : index
    %24 = vector.load %arg5[%c0_12, %c0_13] : memref<512x256xbf16, #tpu.memory_space<vmem>>, vector<512x256xbf16>
    %cst_14 = arith.constant dense<0.000000e+00> : vector<32x256xf32>
    %25 = tpu.matmul %23, %24, %cst_14 {dimension_numbers = #tpu.dot_dimension_numbers<[1], [0], [0], [1], [0, 0, 1, 1], [], []>} : vector<32x512xbf16>, vector<512x256xbf16>, vector<32x256xf32> -> vector<32x256xf32>
    %26 = arith.addf %22, %25 : vector<32x256xf32>
    %c0_15 = arith.constant 0 : index
    %c0_16 = arith.constant 0 : index
    %27 = vector.load %arg10[%c0_15, %c0_16] : memref<32x256xf32, #tpu.memory_space<vmem>>, vector<32x256xf32>
    tpu.vector_store %arg10[%c0_15, %c0_16], %26 {strides = array<i32>} : memref<32x256xf32, #tpu.memory_space<vmem>>, vector<32x256xf32>,
    %c1_i32 = arith.constant 1 : i32
    %28 = arith.cmpi eq, %arg1, %c1_i32 : i32
    %29 = arith.extui %28 : i1 to i32
    %c0_i32_17 = arith.constant 0 : i32
    %30 = arith.cmpi ne, %29, %c0_i32_17 : i32
    scf.if %30 {
      %c0_18 = arith.constant 0 : index
      %c0_19 = arith.constant 0 : index
      %31 = vector.load %arg10[%c0_18, %c0_19] : memref<32x256xf32, #tpu.memory_space<vmem>>, vector<32x256xf32>
      %c0_20 = arith.constant 0 : index
      %c0_21 = arith.constant 0 : index
      %32 = vector.load %arg6[%c0_20, %c0_21] : memref<1x256xf32, #tpu.memory_space<vmem>>, vector<1x256xf32>
      %33 = vector.broadcast %32 : vector<1x256xf32> to vector<32x256xf32>
      %34 = arith.addf %31, %33 : vector<32x256xf32>
      %c0_22 = arith.constant 0 : index
      %c0_23 = arith.constant 0 : index
      %35 = vector.load %arg7[%c0_22, %c0_23] : memref<32x256xbf16, #tpu.memory_space<vmem>>, vector<32x256xbf16>
      %36 = arith.extf %35 : vector<32x256xbf16> to vector<32x256xf32>
      %37 = arith.addf %34, %36 : vector<32x256xf32>
      %c0_24 = arith.constant 0 : index
      %c0_25 = arith.constant 0 : index
      %38 = vector.load %arg8[%c0_24, %c0_25] : memref<32x256xf32, #tpu.memory_space<vmem>>, vector<32x256xf32>
      %39 = arith.addf %37, %38 : vector<32x256xf32>
      %c0_26 = arith.constant 0 : index
      %c0_27 = arith.constant 0 : index
      %40 = vector.load %arg9[%c0_26, %c0_27] : memref<32x256xf32, #tpu.memory_space<vmem>>, vector<32x256xf32>
      tpu.vector_store %arg9[%c0_26, %c0_27], %39 {strides = array<i32>} : memref<32x256xf32, #tpu.memory_space<vmem>>, vector<32x256xf32>,
    } else {
    }
    return
  }
  func.func @transform_0(%arg0: i32, %arg1: i32) -> (i32, i32) {
    %c0_i32 = arith.constant 0 : i32
    %c0_i32_0 = arith.constant 0 : i32
    return %arg0, %c0_i32 : i32, i32
  }
  func.func @transform_1(%arg0: i32, %arg1: i32) -> (i32, i32) {
    %c0_i32 = arith.constant 0 : i32
    %c0_i32_0 = arith.constant 0 : i32
    return %c0_i32, %arg1 : i32, i32
  }
  func.func @transform_2(%arg0: i32, %arg1: i32) -> (i32, i32) {
    %c0_i32 = arith.constant 0 : i32
    %c0_i32_0 = arith.constant 0 : i32
    return %c0_i32, %arg1 : i32, i32
  }
  func.func @transform_3(%arg0: i32, %arg1: i32) -> (i32, i32) {
    %c0_i32 = arith.constant 0 : i32
    %c0_i32_0 = arith.constant 0 : i32
    return %arg1, %c0_i32 : i32, i32
  }
  func.func @transform_4(%arg0: i32, %arg1: i32) -> (i32, i32) {
    %c0_i32 = arith.constant 0 : i32
    %c0_i32_0 = arith.constant 0 : i32
    %c0_i32_1 = arith.constant 0 : i32
    return %c0_i32, %c0_i32_0 : i32, i32
  }
  func.func @transform_5(%arg0: i32, %arg1: i32) -> (i32, i32) {
    %c0_i32 = arith.constant 0 : i32
    %c0_i32_0 = arith.constant 0 : i32
    return %arg0, %c0_i32 : i32, i32
  }
  func.func @transform_6(%arg0: i32, %arg1: i32) -> (i32, i32) {
    %c0_i32 = arith.constant 0 : i32
    %c0_i32_0 = arith.constant 0 : i32
    return %arg0, %c0_i32 : i32, i32
  }
  func.func @transform_7(%arg0: i32, %arg1: i32) -> (i32, i32) {
    %c0_i32 = arith.constant 0 : i32
    %c0_i32_0 = arith.constant 0 : i32
    return %arg0, %c0_i32 : i32, i32
  }
}

</mosaic_0001>

<bundles_post_ra>
// kernel: progen_block_forward.8
= control target key start
LH: loop header
LB: loop body
LE: loop exit
PB: predicated region body
PF: predicated region fallthrough
CT: control target
= control target key end

     0   :  { %s624_s1 = inlined_call_operand.vmem [shape: bf16[256,256], index: 1, kind: input, shape index: {}]   ;;  %s625_s0 = inlined_call_operand.vmem [shape: bf16[32,256], index: 0, kind: input, shape index: {}]   ;;  %s626_s2 = inlined_call_operand.vmem [shape: bf16[32,256], index: 2, kind: output, shape index: {}]  }
   0x1   :  { %v435_v0 = vld [vmem:[%s624_s1 + $0x4] ss:$8 sps:$4 sm:$0xff]   ;;  %v437_v1 = vld [vmem:[%s624_s1] ss:$8 sps:$4 sm:$0xff]   ;;  %v438_v2 = vld [vmem:[%s624_s1 + $0x14] ss:$8 sps:$4 sm:$0xff]  }
   0x2   :  { %247 = vmatprep.subr.bf16.mxu0 %v435_v0  ;;  %403 = vmatprep.subr.bf16.mxu1 %v435_v0  ;;  %v440_v3 = vld [vmem:[%s624_s1 + $0x10] ss:$8 sps:$4 sm:$0xff]   ;;  %v441_v4 = vld [vmem:[%s624_s1 + $0x24] ss:$8 sps:$4 sm:$0xff]   ;;  %v443_v5 = vld [vmem:[%s624_s1 + $0x20] ss:$8 sps:$4 sm:$0xff]  }
   0x3   :  { %248 = vmatpush1.bf16.msra.mxu0 %v437_v1  ;;  %419 = vmatpush1.bf16.msra.mxu1 %v437_v1  ;;  %v444_v6 = vld [vmem:[%s624_s1 + $0x34] ss:$8 sps:$4 sm:$0xff]   ;;  %v446_v7 = vld [vmem:[%s624_s1 + $0x30] ss:$8 sps:$4 sm:$0xff]   ;;  %v447_v8 = vld [vmem:[%s624_s1 + $0x44] ss:$8 sps:$4 sm:$0xff]  }
   0x4   :  { %249 = vmatprep.subr.bf16.mxu0 %v438_v2  ;;  %404 = vmatprep.subr.bf16.mxu1 %v438_v2  ;;  %v449_v9 = vld [vmem:[%s624_s1 + $0x40] ss:$8 sps:$4 sm:$0xff]   ;;  %v450_v10 = vld [vmem:[%s624_s1 + $0x54] ss:$8 sps:$4 sm:$0xff]   ;;  %v452_v11 = vld [vmem:[%s624_s1 + $0x50] ss:$8 sps:$4 sm:$0xff]  }
   0x5   :  { %v453_v12 = vld [vmem:[%s624_s1 + $0x64] ss:$8 sps:$4 sm:$0xff]   ;;  %v455_v14 = vld [vmem:[%s624_s1 + $0x60] ss:$8 sps:$4 sm:$0xff]   ;;  %v488_v15 = vld [vmem:[%s625_s0 + $0x14] ss:$8 sps:$4 sm:$0xff]  }
   0x6   :  { %v485_v13 = vld [vmem:[%s625_s0 + $0x4] ss:$8 sps:$4 sm:$0xff]   ;;  %v456_v16 = vld [vmem:[%s624_s1 + $0x74] ss:$8 sps:$4 sm:$0xff]   ;;  %289 = vmatprep.mubr.bf16.mxu1 %v488_v15  ;;  %v458_v17 = vld [vmem:[%s624_s1 + $0x70] ss:$8 sps:$4 sm:$0xff]  }
   0x7   :  { %250 = vmatpush1.bf16.msra.mxu0 %v440_v3  ;;  %420 = vmatpush1.bf16.msra.mxu1 %v440_v3  ;;  %v459_v18 = vld [vmem:[%s624_s1 + $0x84] ss:$8 sps:$4 sm:$0xff]   ;;  %v461_v19 = vld [vmem:[%s624_s1 + $0x80] ss:$8 sps:$4 sm:$0xff]   ;;  %v462_v20 = vld [vmem:[%s624_s1 + $0x94] ss:$8 sps:$4 sm:$0xff]  }
   0x8   :  { %251 = vmatprep.subr.bf16.mxu0 %v441_v4  ;;  %405 = vmatprep.subr.bf16.mxu1 %v441_v4  ;;  %v464_v21 = vld [vmem:[%s624_s1 + $0x90] ss:$8 sps:$4 sm:$0xff]   ;;  %v465_v22 = vld [vmem:[%s624_s1 + $0xa4] ss:$8 sps:$4 sm:$0xff]   ;;  %v467_v23 = vld [vmem:[%s624_s1 + $0xa0] ss:$8 sps:$4 sm:$0xff]  }
   0x9   :  { %279 = vmatprep.mubr.bf16.mxu0 %v485_v13  ;;  %v468_v24 = vld [vmem:[%s624_s1 + $0xb4] ss:$8 sps:$4 sm:$0xff]   ;;  %v470_v25 = vld [vmem:[%s624_s1 + $0xb0] ss:$8 sps:$4 sm:$0xff]   ;;  %v471_v26 = vld [vmem:[%s624_s1 + $0xc4] ss:$8 sps:$4 sm:$0xff]  }
   0xa   :  { %v473_v27 = vld [vmem:[%s624_s1 + $0xc0] ss:$8 sps:$4 sm:$0xff]   ;;  %v474_v28 = vld [vmem:[%s624_s1 + $0xd4] ss:$8 sps:$4 sm:$0xff]   ;;  %v476_v29 = vld [vmem:[%s624_s1 + $0xd0] ss:$8 sps:$4 sm:$0xff]  }
   0xb   :  { %252 = vmatpush1.bf16.msra.mxu0 %v443_v5  ;;  %421 = vmatpush1.bf16.msra.mxu1 %v443_v5  ;;  %v477_v30 = vld [vmem:[%s624_s1 + $0xe4] ss:$8 sps:$4 sm:$0xff]   ;;  %v479_v31 = vld [vmem:[%s624_s1 + $0xe0] ss:$8 sps:$4 sm:$0xff]   ;;  %v480_v32 = vld [vmem:[%s624_s1 + $0xf4] ss:$8 sps:$4 sm:$0xff]  }
   0xc   :  { %253 = vmatprep.subr.bf16.mxu0 %v444_v6  ;;  %406 = vmatprep.subr.bf16.mxu1 %v444_v6  ;;  %v482_v33 = vld [vmem:[%s624_s1 + $0xf0] ss:$8 sps:$4 sm:$0xff]   ;;  %v483_v34 = vld [vmem:[%s625_s0] ss:$8 sps:$4 sm:$0xff]  }
   0xd   :  { %v486_v35 = vld [vmem:[%s625_s0 + $0x10] ss:$8 sps:$4 sm:$0xff]  }
   0xf   :  { %254 = vmatpush1.bf16.msra.mxu0 %v446_v7  ;;  %422 = vmatpush1.bf16.msra.mxu1 %v446_v7 }
  0x10   :  { %255 = vmatprep.subr.bf16.mxu0 %v447_v8  ;;  %407 = vmatprep.subr.bf16.mxu1 %v447_v8 }
  0x13   :  { %256 = vmatpush1.bf16.msra.mxu0 %v449_v9  ;;  %423 = vmatpush1.bf16.msra.mxu1 %v449_v9 }
  0x14   :  { %257 = vmatprep.subr.bf16.mxu0 %v450_v10  ;;  %408 = vmatprep.subr.bf16.mxu1 %v450_v10 }
  0x17   :  { %258 = vmatpush1.bf16.msra.mxu0 %v452_v11  ;;  %424 = vmatpush1.bf16.msra.mxu1 %v452_v11 }
  0x18   :  { %259 = vmatprep.subr.bf16.mxu0 %v453_v12  ;;  %409 = vmatprep.subr.bf16.mxu1 %v453_v12 }
  0x1b   :  { %260 = vmatpush1.bf16.msra.mxu0 %v455_v14  ;;  %425 = vmatpush1.bf16.msra.mxu1 %v455_v14 }
  0x1c   :  { %261 = vmatprep.subr.bf16.mxu0 %v456_v16  ;;  %410 = vmatprep.subr.bf16.mxu1 %v456_v16 }
  0x1f   :  { %262 = vmatpush1.bf16.msra.mxu0 %v458_v17  ;;  %426 = vmatpush1.bf16.msra.mxu1 %v458_v17 }
  0x20   :  { %263 = vmatprep.subr.bf16.mxu0 %v459_v18  ;;  %411 = vmatprep.subr.bf16.mxu1 %v459_v18 }
  0x23   :  { %264 = vmatpush1.bf16.msra.mxu0 %v461_v19  ;;  %427 = vmatpush1.bf16.msra.mxu1 %v461_v19 }
  0x24   :  { %265 = vmatprep.subr.bf16.mxu0 %v462_v20  ;;  %412 = vmatprep.subr.bf16.mxu1 %v462_v20 }
  0x27   :  { %266 = vmatpush1.bf16.msra.mxu0 %v464_v21  ;;  %428 = vmatpush1.bf16.msra.mxu1 %v464_v21 }
  0x28   :  { %267 = vmatprep.subr.bf16.mxu0 %v465_v22  ;;  %413 = vmatprep.subr.bf16.mxu1 %v465_v22 }
  0x2b   :  { %268 = vmatpush1.bf16.msra.mxu0 %v467_v23  ;;  %429 = vmatpush1.bf16.msra.mxu1 %v467_v23 }
  0x2c   :  { %269 = vmatprep.subr.bf16.mxu0 %v468_v24  ;;  %414 = vmatprep.subr.bf16.mxu1 %v468_v24 }
  0x2f   :  { %270 = vmatpush1.bf16.msra.mxu0 %v470_v25  ;;  %430 = vmatpush1.bf16.msra.mxu1 %v470_v25 }
  0x30   :  { %271 = vmatprep.subr.bf16.mxu0 %v471_v26  ;;  %415 = vmatprep.subr.bf16.mxu1 %v471_v26 }
  0x33   :  { %272 = vmatpush1.bf16.msra.mxu0 %v473_v27  ;;  %431 = vmatpush1.bf16.msra.mxu1 %v473_v27 }
  0x34   :  { %273 = vmatprep.subr.bf16.mxu0 %v474_v28  ;;  %416 = vmatprep.subr.bf16.mxu1 %v474_v28 }
  0x37   :  { %274 = vmatpush1.bf16.msra.mxu0 %v476_v29  ;;  %432 = vmatpush1.bf16.msra.mxu1 %v476_v29 }
  0x38   :  { %275 = vmatprep.subr.bf16.mxu0 %v477_v30  ;;  %417 = vmatprep.subr.bf16.mxu1 %v477_v30 }
  0x3b   :  { %276 = vmatpush1.bf16.msra.mxu0 %v479_v31  ;;  %433 = vmatpush1.bf16.msra.mxu1 %v479_v31 }
  0x3c   :  { %277 = vmatprep.subr.bf16.mxu0 %v480_v32  ;;  %418 = vmatprep.subr.bf16.mxu1 %v480_v32 }
  0x3f   :  { %278 = vmatpush1.bf16.msra.mxu0 %v482_v33  ;;  %434 = vmatpush1.bf16.msra.mxu1 %v482_v33 }
  0x42   :  { %280 = vmatmul.mubr.bf16.vlgmr.msra.gmra.mrb[0].mxu0 %v483_v34  ;;  %290 = vmatmul.mubr.bf16.vlgmr.msra.gmra.mrb[0].mxu1 %v486_v35 }
 0x115   :  { %v281_v36 = vpop.f32.mrb[0].mxu0  ;;  %v291_v37 = vpop.f32.mrb[0].mxu1 }
 0x116   :  { %v283_v38 = vpop.f32.mrb[1].mxu0  ;;  %v293_v39 = vpop.f32.mrb[1].mxu1 }
 0x117   :  { %v399_v40 = vpack.c.bf16 %v283_v38, %v281_v36  ;;  %v401_v41 = vpack.c.bf16 %v293_v39, %v291_v37  ;;  %v285_v42 = vpop.f32.mrb[2].mxu0  ;;  %v295_v43 = vpop.f32.mrb[2].mxu1 }
 0x118   :  { %v287_v44 = vpop.f32.mrb[3].mxu0  ;;  %v297_v45 = vpop.f32.mrb[3].mxu1 }
 0x119   :  { %351 = vst [vmem:[%s626_s2] sm:$0xff] %v399_v40  ;;  %353 = vst [vmem:[%s626_s2 + $0x10] sm:$0xff] %v401_v41  ;;  %v400_v46 = vpack.c.bf16 %v287_v44, %v285_v42  ;;  %v402_v47 = vpack.c.bf16 %v297_v45, %v295_v43 }
 0x11b   :  { %352 = vst [vmem:[%s626_s2 + $0x8] sm:$0xff] %v400_v46  ;;  %354 = vst [vmem:[%s626_s2 + $0x18] sm:$0xff] %v402_v47 }

// kernel: progen_block_forward.5
= control target key start
LH: loop header
LB: loop body
LE: loop exit
PB: predicated region body
PF: predicated region fallthrough
CT: control target
= control target key end

     0   :  { %8 = vsyncpa [#allocation3], 0  ;;  %s379_s0 = inlined_call_operand.hbm [shape: f32[32,256], index: 0, kind: input, shape index: {}]   ;;  %s380_s1 = inlined_call_operand.hbm [shape: f32[1,256], index: 1, kind: input, shape index: {}]   ;;  %s381_s2 = inlined_call_operand.hbm [shape: f32[1,256], index: 2, kind: input, shape index: {}]   ;;  %s382_s3 = inlined_call_operand.vmem [shape: bf16[32,256], index: 3, kind: output, shape index: {}]  }
   0x1   :  { %9 = vsyncpa [#allocation5], 0  ;;  %s289_s12 = smov [#allocation4]   ;;  %s290_s14 = smov [#allocation2]  }
   0x2   :  { %s28_s13 = sshll.u32 %s289_s12, 4  ;;  %s15_s15 = sshll.u32 %s290_s14, 4  ;;  %s29_s13 = int_to_ptr.vmem [resolvable:$true] %s28_s13  ;;  %s314_s15 = int_to_ptr.vmem [resolvable:$true] %s15_s15 }
   0x3   :  { %s219_s18 = scalar_lea.hbm %s380_s1, 32 }
   0x4   :  { %p220_p0 = scmp.ne.s32.totalorder %s380_s1, %s219_s18  ;;  %p223_p1 = scmp.lt.u32.totalorder %s219_s18, %s380_s1 }
   0x6   :  { %p225_p2 = pnand %p223_p1, %p220_p0 }
   0x8   :  { %228 = shalt.err (!%p225_p2)
}
   0x9   :  { %s229_s23 = scalar_lea.vmem %s29_s13, 32  ;;  %p234_p4 = scmp.lt.s32.totalorder %s29_s13, %s29_s13 }
   0xa   :  { %p230_p3 = scmp.ne.s32.totalorder %s29_s13, %s229_s23  ;;  %p235_p5 = scmp.lt.s32.totalorder %s229_s23, %s229_s23 }
   0xc   :  { %p236_p6 = por %p235_p5, %p234_p4 }
   0xe   :  { %p237_p7 = pnand %p236_p6, %p230_p3 }
  0x10   :  { %240 = shalt.err (!%p237_p7)
}
  0x11   :  { %31 = dma.hbm_to_vmem [thread:$0]  %s380_s1, 32, %s29_s13, [#allocation5]  }
  0x12   :  { %s241_s28 = scalar_lea.hbm %s379_s0, 1024 }
  0x13   :  { %p242_p8 = scmp.ne.s32.totalorder %s379_s0, %s241_s28  ;;  %p245_p9 = scmp.lt.u32.totalorder %s241_s28, %s379_s0 }
  0x15   :  { %p247_p10 = pnand %p245_p9, %p242_p8 }
  0x17   :  { %250 = shalt.err (!%p247_p10)
}
  0x18   :  { %s251_s6 = scalar_lea.vmem %s314_s15, 1024  ;;  %p256_p12 = scmp.lt.s32.totalorder %s314_s15, %s314_s15 }
  0x19   :  { %p252_p11 = scmp.ne.s32.totalorder %s314_s15, %s251_s6  ;;  %p257_p13 = scmp.lt.s32.totalorder %s251_s6, %s251_s6 }
  0x1b   :  { %p258_p0 = por %p257_p13, %p256_p12 }
  0x1d   :  { %p259_p1 = pnand %p258_p0, %p252_p11 }
  0x1f   :  { %262 = shalt.err (!%p259_p1)
}
  0x20   :  { %s291_s1 = smov 256   ;;  %s292_s7 = smov 16  }
  0x21   :  { %21 = dma.hbm_to_vmem [thread:$0]  %s379_s0, 1024, %s314_s15, [#allocation3], %s291_s1, %s291_s1, %s292_s7  }
  0x22   :  { %s293_s10 = smov [#allocation6]   ;;  %s263_s14 = scalar_lea.hbm %s381_s2, 32 }
  0x23   :  { %s38_s11 = sshll.u32 %s293_s10, 4  ;;  %p264_p2 = scmp.ne.s32.totalorder %s381_s2, %s263_s14  ;;  %s39_s11 = int_to_ptr.vmem [resolvable:$true] %s38_s11 }
  0x24   :  { %p267_p3 = scmp.lt.u32.totalorder %s263_s14, %s381_s2 }
  0x26   :  { %p269_p4 = pnand %p267_p3, %p264_p2 }
  0x28   :  { %272 = shalt.err (!%p269_p4)
}
  0x29   :  { %s273_s20 = scalar_lea.vmem %s39_s11, 32  ;;  %p278_p6 = scmp.lt.s32.totalorder %s39_s11, %s39_s11 }
  0x2a   :  { %p274_p5 = scmp.ne.s32.totalorder %s39_s11, %s273_s20  ;;  %p279_p7 = scmp.lt.s32.totalorder %s273_s20, %s273_s20 }
  0x2c   :  { %p280_p8 = por %p279_p7, %p278_p6 }
  0x2e   :  { %p281_p9 = pnand %p280_p8, %p274_p5 }
  0x30   :  { %284 = shalt.err (!%p281_p9)
}
  0x31   :  { %41 = dma.hbm_to_vmem [thread:$0]  %s381_s2, 32, %s39_s11, [#allocation5]  }
  0x32   :  { %285 = dma.done.wait [#allocation3], 1024  }
  0x33   :  { %286 = vsyncadd [#allocation3], 4294966272 }
  0x34   :  { %287 = dma.done.wait [#allocation5], 64  }
  0x35   :  { %288 = vsyncadd [#allocation5], 4294967232  ;;  %v51_v0 = vld [vmem:[#allocation2] sm:$0xff]  ;;  %v52_v1 = vld [vmem:[#allocation2 + $0x8] sm:$0xff]  ;;  %v126_v42 = vlaneseq }
  0x36   :  { %v55_v2 = vld [vmem:[#allocation2 + $0x20] sm:$0xff]  ;;  %v59_v3 = vadd.f32 %v52_v1, %v51_v0  ;;  %v56_v4 = vld [vmem:[#allocation2 + $0x28] sm:$0xff]  ;;  %v53_v5 = vld [vmem:[#allocation2 + $0x10] sm:$0xff] }
  0x37   :  { %v54_v6 = vld [vmem:[#allocation2 + $0x18] sm:$0xff]  ;;  %v65_v7 = vadd.f32 %v56_v4, %v55_v2  ;;  %v57_v8 = vld [vmem:[#allocation2 + $0x30] sm:$0xff]  ;;  %v127_v48 = vshrl.u32 %v126_v42, 7  ;;  %v124_v55 = vld [vmem:[#allocation4] sm:$0x3] }
  0x38   :  { %v58_v9 = vld [vmem:[#allocation2 + $0x38] sm:$0xff]  ;;  %60 = vadd.xlane.f32.xlu0 %v59_v3  ;;  %v62_v10 = vadd.f32 %v54_v6, %v53_v5  ;;  %v144_v57 = vld [vmem:[#allocation6] sm:$0x3] }
  0x39   :  { %66 = vadd.xlane.f32.xlu1 %v65_v7  ;;  %v68_v11 = vadd.f32 %v58_v9, %v57_v8  ;;  %v128_v53 = vsub.s32 0, %v127_v48  ;;  %v132_v54 = vsub.s32 1, %v127_v48 }
  0x3b   :  { %v129_v58 = vrot.slane %v124_v55, %v128_v53  ;;  %v133_v59 = vrot.slane %v124_v55, %v132_v54  ;;  %v149_v61 = vrot.slane %v144_v57, %v128_v53  ;;  %v153_v62 = vrot.slane %v144_v57, %v132_v54 }
  0x3c   :  { %63 = vadd.xlane.f32.xlu0 %v62_v10 }
  0x3d   :  { %69 = vadd.xlane.f32.xlu1 %v68_v11 }
  0xc5   :  { %v61_v12 = vpop.xlane.xlu0 %60 }
  0xc6   :  { %v72_v13 = vmul.f32 0.00390625, %v61_v12  ;;  %v67_v14 = vpop.xlane.xlu1 %66 }
  0xc7   :  { %v74_v15 = vmul.f32 0.00390625, %v67_v14 }
  0xc8   :  { %v76_v16 = vsub.f32 %v51_v0, %v72_v13  ;;  %v77_v17 = vsub.f32 %v52_v1, %v72_v13 }
  0xc9   :  { %v357_v18 = vsub.f32 %v55_v2, %v74_v15  ;;  %v359_v19 = vsub.f32 %v56_v4, %v74_v15  ;;  %v64_v20 = vpop.xlane.xlu0 %63 }
  0xca   :  { %v73_v21 = vmul.f32 0.00390625, %v64_v20  ;;  %v70_v22 = vpop.xlane.xlu1 %69  ;;  %v84_v23 = vmul.f32 %v76_v16, %v76_v16  ;;  %v85_v24 = vmul.f32 %v77_v17, %v77_v17 }
  0xcb   :  { %v75_v25 = vmul.f32 0.00390625, %v70_v22  ;;  %v88_v26 = vmul.f32 %v357_v18, %v357_v18  ;;  %v89_v27 = vmul.f32 %v359_v19, %v359_v19 }
  0xcc   :  { %v78_v28 = vsub.f32 %v53_v5, %v73_v21  ;;  %v79_v29 = vsub.f32 %v54_v6, %v73_v21  ;;  %v92_v30 = vadd.f32 %v85_v24, %v84_v23 }
  0xcd   :  { %v82_v31 = vsub.f32 %v57_v8, %v75_v25  ;;  %v83_v32 = vsub.f32 %v58_v9, %v75_v25  ;;  %v98_v33 = vadd.f32 %v89_v27, %v88_v26 }
  0xce   :  { %93 = vadd.xlane.f32.xlu0 %v92_v30  ;;  %v86_v34 = vmul.f32 %v78_v28, %v78_v28  ;;  %v87_v35 = vmul.f32 %v79_v29, %v79_v29 }
  0xcf   :  { %v90_v36 = vmul.f32 %v82_v31, %v82_v31  ;;  %v91_v37 = vmul.f32 %v83_v32, %v83_v32 }
  0xd0   :  { %v95_v38 = vadd.f32 %v87_v35, %v86_v34 }
  0xd1   :  { %v101_v39 = vadd.f32 %v91_v37, %v90_v36 }
  0xd2   :  { %99 = vadd.xlane.f32.xlu0 %v98_v33  ;;  %96 = vadd.xlane.f32.xlu1 %v95_v38 }
  0xd6   :  { %102 = vadd.xlane.f32.xlu1 %v101_v39 }
 0x15b   :  { %v94_v40 = vpop.xlane.xlu0 %93 }
 0x15c   :  { %v104_v41 = vmul.f32 0.00390625, %v94_v40 }
 0x15e   :  { %v108_v43 = vadd.f32 1e-05, %v104_v41 }
 0x15f   :  { %v97_v44 = vpop.xlane.xlu1 %96  ;;  %v100_v45 = vpop.xlane.xlu0 %99 }
 0x160   :  { %211 = vrsqrt.f32 %v108_v43  ;;  %v105_v46 = vmul.f32 0.00390625, %v97_v44  ;;  %v106_v47 = vmul.f32 0.00390625, %v100_v45 }
 0x162   :  { %v109_v49 = vadd.f32 1e-05, %v105_v46  ;;  %v110_v50 = vadd.f32 1e-05, %v106_v47 }
 0x163   :  { %v103_v51 = vpop.xlane.xlu1 %102 }
 0x164   :  { %213 = vrsqrt.f32 %v109_v49  ;;  %v107_v52 = vmul.f32 0.00390625, %v103_v51 }
 0x165   :  { %215 = vrsqrt.f32 %v110_v50 }
 0x166   :  { %v111_v56 = vadd.f32 1e-05, %v107_v52 }
 0x168   :  { %217 = vrsqrt.f32 %v111_v56 }
 0x16a   :  { %v212_v60 = vpop.eup %211 }
 0x16b   :  { %v116_v63 = vmul.f32 %v212_v60, %v76_v16  ;;  %v117_v0 = vmul.f32 %v212_v60, %v77_v17 }
 0x16d   :  { %v136_v1 = vmul.f32 %v129_v58, %v116_v63  ;;  %v137_v2 = vmul.f32 %v133_v59, %v117_v0 }
 0x16e   :  { %v214_v3 = vpop.eup %213 }
 0x16f   :  { %v216_v4 = vpop.eup %215  ;;  %v156_v5 = vadd.f32 %v149_v61, %v136_v1  ;;  %v157_v6 = vadd.f32 %v153_v62, %v137_v2  ;;  %v118_v7 = vmul.f32 %v214_v3, %v78_v28  ;;  %v119_v8 = vmul.f32 %v214_v3, %v79_v29 }
 0x170   :  { %v120_v9 = vmul.f32 %v216_v4, %v357_v18  ;;  %v121_v10 = vmul.f32 %v216_v4, %v359_v19 }
 0x171   :  { %v202_v11 = vpack.c.bf16 %v157_v6, %v156_v5  ;;  %v138_v12 = vmul.f32 %v129_v58, %v118_v7  ;;  %v139_v13 = vmul.f32 %v133_v59, %v119_v8 }
 0x172   :  { %v218_v14 = vpop.eup %217  ;;  %v140_v15 = vmul.f32 %v129_v58, %v120_v9  ;;  %v141_v20 = vmul.f32 %v133_v59, %v121_v10 }
 0x173   :  { %188 = vst [vmem:[%s382_s3] sm:$0xff] %v202_v11  ;;  %v158_v16 = vadd.f32 %v149_v61, %v138_v12  ;;  %v159_v17 = vadd.f32 %v153_v62, %v139_v13  ;;  %v122_v21 = vmul.f32 %v218_v14, %v82_v31  ;;  %v123_v22 = vmul.f32 %v218_v14, %v83_v32 }
 0x174   :  { %v160_v23 = vadd.f32 %v149_v61, %v140_v15  ;;  %v161_v24 = vadd.f32 %v153_v62, %v141_v20 }
 0x175   :  { %v203_v25 = vpack.c.bf16 %v159_v17, %v158_v16  ;;  %v142_v18 = vmul.f32 %v129_v58, %v122_v21  ;;  %v143_v26 = vmul.f32 %v133_v59, %v123_v22 }
 0x176   :  { %v204_v19 = vpack.c.bf16 %v161_v24, %v160_v23 }
 0x177   :  { %189 = vst [vmem:[%s382_s3 + $0x8] sm:$0xff] %v203_v25  ;;  %v162_v27 = vadd.f32 %v149_v61, %v142_v18  ;;  %v163_v28 = vadd.f32 %v153_v62, %v143_v26 }
 0x178   :  { %190 = vst [vmem:[%s382_s3 + $0x10] sm:$0xff] %v204_v19 }
 0x179   :  { %v205_v29 = vpack.c.bf16 %v163_v28, %v162_v27 }
 0x17b   :  { %191 = vst [vmem:[%s382_s3 + $0x18] sm:$0xff] %v205_v29 }
 0x17c   :  { %196 = vsyncpa [#allocation3], 1 }
 0x17d   :  { %197 = vsyncpa [#allocation5], 1 }

// kernel: progen_block_forward.6
= control target key start
LH: loop header
LB: loop body
LE: loop exit
PB: predicated region body
PF: predicated region fallthrough
CT: control target
= control target key end

     0   :  { %7 = vsyncpa [#allocation4], 0  ;;  %s1512_s0 = inlined_call_operand.vmem [shape: bf16[32,256], index: 0, kind: input, shape index: {}]   ;;  %s1513_s1 = inlined_call_operand.hbm [shape: bf16[256,768], index: 1, kind: input, shape index: {}]   ;;  %s1514_s2 = inlined_call_operand.vmem [shape: bf16[32,768], index: 2, kind: output, shape index: {}]  }
   0x1   :  { %9 = vsyncpa [#allocation4 + $0x1], 0  ;;  %s1296_s9 = smov 0   ;;  %s1298_s10 = smov 0  }
   0x2   :  { %s1300_s11 = smov 0   ;;  %s1302_s12 = smov 0  }
   0x3   :  { %s1304_s13 = smov 0   ;;  %s1306_s14 = smov 0  }
   0x4 LB: > { %s948_s15 = sadd.s32 4294967295, %s1275_s14   ;;  %s30_s16 = sadd.s32 1, %s1271_s13  ;;  %s1275_s14 = sphi %s1306_s14, %s15_s14   ;;  %s1271_s13 = sphi %s1304_s13, %s1525_s13   ;;  %s1267_s12 = sphi %s1302_s12, %s1524_s12   ;;  %s1263_s11 = sphi %s1300_s11, %s1523_s11   ;;  %s1259_s10 = sphi %s1298_s10, %s1522_s10   ;;  %s1255_s9 = sphi %s1296_s9, %s1521_s9  }
   0x5   : > { %p32_p0 = scmp.ge.s32.totalorder %s30_s16, 2  ;;  %s71_s17 = sadd.s32 1, %s1263_s11 }
   0x6   : > { %p78_p1 = scmp.ne.s32.totalorder %s1263_s11, %s1259_s10  ;;  %p79_p2 = scmp.eq.s32.totalorder %s1275_s14, 0 }
   0x7   : > { %s1527_s16 = smov (%p32_p0, %s30_s16), 0  ;;  %p84_p4 = scmp.ne.s32.totalorder %s1259_s10, %s1255_s9 }
   0x8   : > { %p1332_p3 = por %p79_p2, %p78_p1  ;;  %s67_s19 = ssub.s32 %s1271_s13, %s1527_s16 }
   0x9   : > { %p85_p5 = scmp.eq.s32.totalorder %s948_s15, 0  ;;  %p69_p6 = scmp.eq.s32.totalorder %s67_s19, 0 }
   0xa   : > { %p110_p7 = scmp.eq.s32.totalorder %s948_s15, 1  ;;  %p1073_p10 = scmp.lt.s32.totalorder %s1275_s14, 2 }
   0xb   : > { %p1339_p8 = por %p85_p5, %p84_p4  ;;  %s151_s23 = sand.u32 1, %s1263_s11  }
   0xc   : > { %s1344_s21 = scalar_select %p69_p6, %s1263_s11, %s71_s17  }
   0xd   : > { %p1346_p9 = por %p110_p7, %p78_p1  ;;  %s1026_s24 = smul.u32 192, %s1271_s13 }
   0xe   : > { %s1064_s25 = smul.u32 384, %s151_s23  ;;  %p1360_p11 = pnand %p1073_p10, %p1332_p3 }
   0xf   : > { %s1517_s22 = scalar_select %p1346_p9, 1, 0 }
  0x10   : > { %s1356_s28 = scalar_lea.hbm %s1513_s1, %s1026_s24  ;;  %s155_s30 = scalar_lea.vmem [#allocation3], %s1064_s25 }
  0x11   : > { %s165_s3 = sshll.u32 %s155_s30, 4  ;;  %s1367_s4 = scalar_lea.sflag [#allocation4], %s151_s23  ;;  %s1364_s3 = int_to_ptr.vmem [resolvable:$true] %s165_s3 }
  0x12   : > { %s1195_s5 = scalar_lea.hbm %s1356_s28, 6144  ;;  %p1197_p0 = pneg %p1360_p11 }
  0x13   : > { %p1196_p13 = scmp.ne.s32.totalorder %s1356_s28, %s1195_s5  ;;  %s1200_s8 = scalar_lea.hbm %s1513_s1, 12288 }
  0x14   : > { %p1201_p3 = scmp.lt.u32.totalorder %s1356_s28, %s1513_s1  ;;  %p1202_p4 = scmp.lt.u32.totalorder %s1200_s8, %s1195_s5 }
  0x15   : > { %p1198_p1 = pnand %p1197_p0, %p1196_p13  ;;  %p1204_p6 = scmp.lt.u32.totalorder %s1195_s5, %s1356_s28 }
  0x16   : > { %p1203_p5 = por %p1202_p4, %p1201_p3 }
  0x17   : > { %p1199_p2 = pneg %p1198_p1 }
  0x18   : > { %p1205_p7 = por %p1204_p6, %p1203_p5 }
  0x1a   : > { %p1206_p10 = pnand %p1205_p7, %p1199_p2 }
  0x1c   : > { %1209 = shalt.err (!%p1206_p10)
}
  0x1d   : > { %s1210_s17 = scalar_lea.vmem %s1364_s3, 6144  ;;  %s1277_s18 = smov [#allocation3]  }
  0x1e   : > { %p1211_p13 = scmp.ne.s32.totalorder %s1364_s3, %s1210_s17  ;;  %s1215_s19 = sshll.u32 %s1277_s18, 4  ;;  %s1216_s19 = int_to_ptr.vmem [resolvable:$false] %s1215_s19 }
  0x1f   : > { %s1217_s23 = scalar_lea.vmem %s1216_s19, 12288  ;;  %p1218_p9 = scmp.lt.s32.totalorder %s1364_s3, %s1216_s19 }
  0x20   : > { %p1213_p1 = pnand %p1211_p13, %p1197_p0  ;;  %p1219_p3 = scmp.lt.s32.totalorder %s1217_s23, %s1210_s17 }
  0x22   : > { %p1214_p12 = pneg %p1213_p1  ;;  %p1220_p4 = por %p1219_p3, %p1218_p9 }
  0x24   : > { %p1221_p5 = pnand %p1220_p4, %p1214_p12 }
  0x26   : > { %1224 = shalt.err (!%p1221_p5)
}
  0x27   : > { %s1278_s24 = smov 384   ;;  %s1279_s25 = smov 192  }
  0x28   : > { %s1280_s26 = smov 12   ;;  %p173_p0 = scmp.lt.s32.totalorder %s1275_s14, 3 }
  0x29   : > { %1072 = dma.hbm_to_vmem [thread:$0]  (!%p1360_p11), %s1356_s28, 6144, %s1364_s3, %s1367_s4, %s1278_s24, %s1279_s25, %s1280_s26  }
  0x2a   : > { %p1519_p2 = scmp.ge.s32.totalorder %s1275_s14, 1 }
  0x2c   : > { %p174_p6 = pnand %p1519_p2, %p173_p0 }
  0x2d   : > { %s1399_s27 = sand.u32 (!%p174_p6), 1, %s1259_s10  }
  0x2e   : > { %177 = sbr.rel (%p174_p6) target bundleno = 353 (0x161), region = 28  ;;  %s180_s5 = scalar_lea.sflag (!%p174_p6), [#allocation4], %s1399_s27 }
  0x2f   : > { %s1065_s30 = smul.u32 (!%p174_p6), 384, %s1399_s27 }
  0x31   : > { %s1403_s6 = scalar_lea.vmem (!%p174_p6), [#allocation3], %s1065_s30 }
  0x35   : > { %1250 = dma.done.wait (%p1339_p8), %s180_s5, 6144  }
  0x36   : > { %1252 = vsyncadd (%p1339_p8), %s180_s5, 4294961152  ;;  %v1125_v0 = vld [vmem:[%s1403_s6 + $0x4] ss:$12 sps:$4 sm:$0xff]   ;;  %v1127_v1 = vld [vmem:[%s1403_s6] ss:$12 sps:$4 sm:$0xff]   ;;  %s1066_s15 = smul.u32 48, %s1399_s27 }
  0x37   : > { %602 = vmatprep.subr.bf16.mxu0 %v1125_v0  ;;  %v1128_v2 = vld [vmem:[%s1403_s6 + $0x1c] ss:$12 sps:$4 sm:$0xff]   ;;  %v1130_v3 = vld [vmem:[%s1403_s6 + $0x18] ss:$12 sps:$4 sm:$0xff]   ;;  %v1131_v4 = vld [vmem:[%s1403_s6 + $0x34] ss:$12 sps:$4 sm:$0xff]  }
  0x38   : > { %603 = vmatpush1.bf16.msra.mxu0 %v1127_v1  ;;  %v1133_v5 = vld [vmem:[%s1403_s6 + $0x30] ss:$12 sps:$4 sm:$0xff]   ;;  %v1134_v6 = vld [vmem:[%s1403_s6 + $0x4c] ss:$12 sps:$4 sm:$0xff]   ;;  %v1146_v7 = vld [vmem:[%s1403_s6 + $0xc8] ss:$12 sps:$4 sm:$0xff]  }
  0x39   : > { %604 = vmatprep.subr.bf16.mxu0 %v1128_v2  ;;  %v1136_v8 = vld [vmem:[%s1403_s6 + $0x48] ss:$12 sps:$4 sm:$0xff]   ;;  %v1137_v9 = vld [vmem:[%s1403_s6 + $0x64] ss:$12 sps:$4 sm:$0xff]   ;;  %1036 = vmatprep.subr.bf16.mxu1 %v1146_v7  ;;  %v1151_v11 = vld [vmem:[%s1403_s6 + $0xe0] ss:$12 sps:$4 sm:$0xff]  }
  0x3a   : > { %v1149_v10 = vld [vmem:[%s1403_s6 + $0x8] ss:$12 sps:$4 sm:$0xff]   ;;  %v1139_v12 = vld [vmem:[%s1403_s6 + $0x60] ss:$12 sps:$4 sm:$0xff]   ;;  %v1156_v15 = vld [vmem:[%s1403_s6 + $0xf8] ss:$12 sps:$4 sm:$0xff]  }
  0x3b   : > { %1037 = vmatpush3.bf16.msra.mxu1 %v1149_v10  ;;  %v1140_v13 = vld [vmem:[%s1403_s6 + $0x7c] ss:$12 sps:$4 sm:$0xff]   ;;  %v1154_v14 = vld [vmem:[%s1403_s6 + $0x20] ss:$12 sps:$4 sm:$0xff]   ;;  %v1142_v16 = vld [vmem:[%s1403_s6 + $0x78] ss:$12 sps:$4 sm:$0xff]  }
  0x3c   : > { %605 = vmatpush1.bf16.msra.mxu0 %v1130_v3  ;;  %1038 = vmatprep.subr.bf16.mxu1 %v1151_v11  ;;  %v1159_v17 = vld [vmem:[%s1403_s6 + $0x38] ss:$12 sps:$4 sm:$0xff]   ;;  %v1143_v18 = vld [vmem:[%s1403_s6 + $0x94] ss:$12 sps:$4 sm:$0xff]   ;;  %v1161_v19 = vld [vmem:[%s1403_s6 + $0x110] ss:$12 sps:$4 sm:$0xff]  }
  0x3d   : > { %606 = vmatprep.subr.bf16.mxu0 %v1131_v4  ;;  %v1145_v20 = vld [vmem:[%s1403_s6 + $0x90] ss:$12 sps:$4 sm:$0xff]   ;;  %v1166_v22 = vld [vmem:[%s1403_s6 + $0x128] ss:$12 sps:$4 sm:$0xff]   ;;  %v1147_v23 = vld [vmem:[%s1403_s6 + $0xac] ss:$12 sps:$4 sm:$0xff]  }
  0x3e   : > { %v1164_v21 = vld [vmem:[%s1403_s6 + $0x50] ss:$12 sps:$4 sm:$0xff]   ;;  %v1150_v24 = vld [vmem:[%s1403_s6 + $0xa8] ss:$12 sps:$4 sm:$0xff]   ;;  %v1171_v26 = vld [vmem:[%s1403_s6 + $0x140] ss:$12 sps:$4 sm:$0xff]  }
  0x3f   : > { %1039 = vmatpush3.bf16.msra.mxu1 %v1154_v14  ;;  %v1169_v25 = vld [vmem:[%s1403_s6 + $0x68] ss:$12 sps:$4 sm:$0xff]   ;;  %v1152_v27 = vld [vmem:[%s1403_s6 + $0xc4] ss:$12 sps:$4 sm:$0xff]   ;;  %v1155_v28 = vld [vmem:[%s1403_s6 + $0xc0] ss:$12 sps:$4 sm:$0xff]  }
  0x40   : > { %607 = vmatpush1.bf16.msra.mxu0 %v1133_v5  ;;  %1040 = vmatprep.subr.bf16.mxu1 %v1156_v15  ;;  %v1174_v29 = vld [vmem:[%s1403_s6 + $0x80] ss:$12 sps:$4 sm:$0xff]   ;;  %v1176_v30 = vld [vmem:[%s1403_s6 + $0x158] ss:$12 sps:$4 sm:$0xff]   ;;  %v1157_v31 = vld [vmem:[%s1403_s6 + $0xdc] ss:$12 sps:$4 sm:$0xff]  }
  0x41   : > { %608 = vmatprep.subr.bf16.mxu0 %v1134_v6  ;;  %v1179_v32 = vld [vmem:[%s1403_s6 + $0x98] ss:$12 sps:$4 sm:$0xff]   ;;  %v1181_v34 = vld [vmem:[%s1403_s6 + $0x170] ss:$12 sps:$4 sm:$0xff]   ;;  %v1162_v35 = vld [vmem:[%s1403_s6 + $0xf4] ss:$12 sps:$4 sm:$0xff]  }
  0x42   : > { %v1160_v33 = vld [vmem:[%s1403_s6 + $0xd8] ss:$12 sps:$4 sm:$0xff]   ;;  %v1184_v37 = vld [vmem:[%s1403_s6 + $0xb0] ss:$12 sps:$4 sm:$0xff]   ;;  %v1186_v40 = vld [vmem:[%s1512_s0] ss:$8 sps:$4 sm:$0xff]  }
  0x43   : > { %1041 = vmatpush3.bf16.msra.mxu1 %v1159_v17  ;;  %v1188_v36 = vld [vmem:[%s1512_s0 + $0x4] ss:$8 sps:$4 sm:$0xff]   ;;  %v1165_v38 = vld [vmem:[%s1403_s6 + $0xf0] ss:$12 sps:$4 sm:$0xff]   ;;  %v1170_v42 = vld [vmem:[%s1403_s6 + $0x108] ss:$12 sps:$4 sm:$0xff]  }
  0x44   : > { %609 = vmatpush1.bf16.msra.mxu0 %v1136_v8  ;;  %1042 = vmatprep.subr.bf16.mxu1 %v1161_v19  ;;  %v1167_v39 = vld [vmem:[%s1403_s6 + $0x10c] ss:$12 sps:$4 sm:$0xff]   ;;  %v1192_v41 = vld [vmem:[%s1512_s0 + $0x14] ss:$8 sps:$4 sm:$0xff]   ;;  %v1172_v43 = vld [vmem:[%s1403_s6 + $0x124] ss:$12 sps:$4 sm:$0xff]  }
  0x45   : > { %610 = vmatprep.subr.bf16.mxu0 %v1137_v9  ;;  %687 = vmatprep.mubr.bf16.mxu1 %v1188_v36  ;;  %v1175_v44 = vld [vmem:[%s1403_s6 + $0x120] ss:$12 sps:$4 sm:$0xff]   ;;  %v1177_v45 = vld [vmem:[%s1403_s6 + $0x13c] ss:$12 sps:$4 sm:$0xff]   ;;  %v1194_v46 = vld [vmem:[%s1512_s0 + $0x10] ss:$8 sps:$4 sm:$0xff]  }
  0x46   : > { %634 = vmatprep.mubr.bf16.mxu0 %v1188_v36  ;;  %v1180_v47 = vld [vmem:[%s1403_s6 + $0x138] ss:$12 sps:$4 sm:$0xff]   ;;  %v1182_v48 = vld [vmem:[%s1403_s6 + $0x154] ss:$12 sps:$4 sm:$0xff]   ;;  %v1185_v49 = vld [vmem:[%s1403_s6 + $0x150] ss:$12 sps:$4 sm:$0xff]  }
  0x47   : > { %1043 = vmatpush3.bf16.msra.mxu1 %v1164_v21  ;;  %v1189_v50 = vld [vmem:[%s1403_s6 + $0x16c] ss:$12 sps:$4 sm:$0xff]   ;;  %v1191_v51 = vld [vmem:[%s1403_s6 + $0x168] ss:$12 sps:$4 sm:$0xff]   ;;  %s1470_s17 = scalar_lea.vmem [#allocation5], %s1066_s15  ;;  %p1520_p8 = scmp.ne.s32.totalorder %s1517_s22, 0 }
  0x48   : > { %611 = vmatpush1.bf16.msra.mxu0 %v1139_v12  ;;  %1044 = vmatprep.subr.bf16.mxu1 %v1166_v22  ;;  %s1035_s18 = smul.u32 (%p1520_p8), 12, %s1267_s12 }
  0x49   : > { %612 = vmatprep.subr.bf16.mxu0 %v1140_v13 }
  0x4a   : > { %s803_s22 = scalar_lea.vmem (%p1520_p8), %s1514_s2, %s1035_s18 }
  0x4b   : > { %1045 = vmatpush3.bf16.msra.mxu1 %v1169_v25 }
  0x4c   : > { %613 = vmatpush1.bf16.msra.mxu0 %v1142_v16  ;;  %1046 = vmatprep.subr.bf16.mxu1 %v1171_v26 }
  0x4d   : > { %614 = vmatprep.subr.bf16.mxu0 %v1143_v18 }
  0x4f   : > { %1047 = vmatpush3.bf16.msra.mxu1 %v1174_v29 }
  0x50   : > { %615 = vmatpush1.bf16.msra.mxu0 %v1145_v20  ;;  %1048 = vmatprep.subr.bf16.mxu1 %v1176_v30 }
  0x51   : > { %616 = vmatprep.subr.bf16.mxu0 %v1147_v23 }
  0x53   : > { %1049 = vmatpush3.bf16.msra.mxu1 %v1179_v32 }
  0x54   : > { %617 = vmatpush1.bf16.msra.mxu0 %v1150_v24  ;;  %1050 = vmatprep.subr.bf16.mxu1 %v1181_v34 }
  0x55   : > { %618 = vmatprep.subr.bf16.mxu0 %v1152_v27 }
  0x57   : > { %1051 = vmatpush3.bf16.msra.mxu1 %v1184_v37 }
  0x58   : > { %619 = vmatpush1.bf16.msra.mxu0 %v1155_v28 }
  0x59   : > { %620 = vmatprep.subr.bf16.mxu0 %v1157_v31 }
  0x5a   : > { %688 = vmatmul.mubr.bf16.vlgmr.msra.gmra.mrb[0].mxu1 %v1186_v40 }
  0x5b   : > { %695 = vmatprep.mubr.bf16.mxu1 %v1192_v41 }
  0x5c   : > { %621 = vmatpush1.bf16.msra.mxu0 %v1160_v33 }
  0x5d   : > { %622 = vmatprep.subr.bf16.mxu0 %v1162_v35 }
  0x60   : > { %623 = vmatpush1.bf16.msra.mxu0 %v1165_v38 }
  0x61   : > { %624 = vmatprep.subr.bf16.mxu0 %v1167_v39 }
  0x62   : > { %696 = vmatmul.mubr.bf16.gmra.mrb[4].mxu1 %v1194_v46 }
  0x64   : > { %625 = vmatpush1.bf16.msra.mxu0 %v1170_v42 }
  0x65   : > { %626 = vmatprep.subr.bf16.mxu0 %v1172_v43 }
  0x68   : > { %627 = vmatpush1.bf16.msra.mxu0 %v1175_v44 }
  0x69   : > { %628 = vmatprep.subr.bf16.mxu0 %v1177_v45 }
  0x6c   : > { %629 = vmatpush1.bf16.msra.mxu0 %v1180_v47 }
  0x6d   : > { %630 = vmatprep.subr.bf16.mxu0 %v1182_v48 }
  0x70   : > { %631 = vmatpush1.bf16.msra.mxu0 %v1185_v49 }
  0x71   : > { %632 = vmatprep.subr.bf16.mxu0 %v1189_v50 }
  0x74   : > { %633 = vmatpush1.bf16.msra.mxu0 %v1191_v51 }
  0x77   : > { %635 = vmatmul.mubr.bf16.vlgmr.msra.gmra.mrb[0].mxu0 %v1186_v40 }
  0x78   : > { %644 = vmatprep.mubr.bf16.mxu0 %v1192_v41 }
  0x7f   : > { %645 = vmatmul.mubr.bf16.gmra.mrb[4].mxu0 %v1194_v46 }
 0x12d   : > { %v1052_v52 = vpop.f32.mrb[0].mxu1 }
 0x12e   : > { %v1053_v53 = vpop.f32.mrb[1].mxu1 }
 0x12f   : > { %v1054_v54 = vadd.f32 %v1053_v53, %v1052_v52  ;;  %v1055_v55 = vpop.f32.mrb[2].mxu1 }
 0x130   : > { %v1056_v56 = vpop.f32.mrb[3].mxu1 }
 0x131   : > { %v1028_v57 = vpack.c.bf16 %v1054_v54, %v1054_v54  ;;  %v1057_v58 = vadd.f32 %v1056_v56, %v1055_v55 }
 0x133   : > { %784 = vst [vmem:[%s1470_s17 + $0x8] sm:$0xf] %v1028_v57  ;;  %v1030_v59 = vpack.c.bf16 %v1057_v58, %v1057_v58 }
 0x135   : > { %786 = vst [vmem:[%s1470_s17 + $0x14] sm:$0xf] %v1030_v59  ;;  %v1058_v60 = vpop.f32.mrb[4].mxu1 }
 0x136   : > { %v1059_v61 = vpop.f32.mrb[5].mxu1 }
 0x137   : > { %v1060_v62 = vadd.f32 %v1059_v61, %v1058_v60  ;;  %v1061_v63 = vpop.f32.mrb[6].mxu1 }
 0x138   : > { %v1062_v0 = vpop.f32.mrb[7].mxu1 }
 0x139   : > { %v1032_v1 = vpack.c.bf16 %v1060_v62, %v1060_v62  ;;  %v1063_v2 = vadd.f32 %v1062_v0, %v1061_v63 }
 0x13a   : > { %v1016_v20 = vld [vmem:[%s1470_s17 + $0x8] sm:$0xf] (%p1520_p8) }
 0x13b   : > { %788 = vst [vmem:[%s1470_s17 + $0x20] sm:$0xf] %v1032_v1  ;;  %v1034_v3 = vpack.c.bf16 %v1063_v2, %v1063_v2  ;;  %1017 = vst [vmem:[%s803_s22 + $0x8] sm:$0xf] (%p1520_p8), %v1016_v20 }
 0x13c   : > { %v1018_v21 = vld [vmem:[%s1470_s17 + $0x14] sm:$0xf] (%p1520_p8) }
 0x13d   : > { %790 = vst [vmem:[%s1470_s17 + $0x2c] sm:$0xf] %v1034_v3  ;;  %1019 = vst [vmem:[%s803_s22 + $0x20] sm:$0xf] (%p1520_p8), %v1018_v21 }
 0x142   : > { %v1020_v22 = vld [vmem:[%s1470_s17 + $0x20] sm:$0xf] (%p1520_p8) }
 0x143   : > { %1021 = vst [vmem:[%s803_s22 + $0x38] sm:$0xf] (%p1520_p8), %v1020_v22 }
 0x144   : > { %v1022_v23 = vld [vmem:[%s1470_s17 + $0x2c] sm:$0xf] (%p1520_p8) }
 0x145   : > { %1023 = vst [vmem:[%s803_s22 + $0x50] sm:$0xf] (%p1520_p8), %v1022_v23 }
 0x14a   : > { %v636_v4 = vpop.f32.mrb[0].mxu0 }
 0x14b   : > { %v638_v5 = vpop.f32.mrb[1].mxu0 }
 0x14c   : > { %v1027_v6 = vpack.c.bf16 %v638_v5, %v636_v4  ;;  %v640_v7 = vpop.f32.mrb[2].mxu0 }
 0x14d   : > { %v642_v8 = vpop.f32.mrb[3].mxu0 }
 0x14e   : > { %783 = vst [vmem:[%s1470_s17] sm:$0xff] %v1027_v6  ;;  %v1029_v9 = vpack.c.bf16 %v642_v8, %v640_v7 }
 0x150   : > { %785 = vst [vmem:[%s1470_s17 + $0xc] sm:$0xff] %v1029_v9 }
 0x152   : > { %v646_v10 = vpop.f32.mrb[4].mxu0  ;;  %797 = sbr.rel (!%p1520_p8) target bundleno = 353 (0x161), region = 44 }
 0x153   : > { %v648_v11 = vpop.f32.mrb[5].mxu0 }
 0x154   : > { %v1031_v12 = vpack.c.bf16 %v648_v11, %v646_v10  ;;  %v650_v13 = vpop.f32.mrb[6].mxu0 }
 0x155   : > { %v652_v14 = vpop.f32.mrb[7].mxu0  ;;  %v818_v16 = vld [vmem:[%s1470_s17] sm:$0xff] (%p1520_p8) }
 0x156   : > { %787 = vst [vmem:[%s1470_s17 + $0x18] sm:$0xff] %v1031_v12  ;;  %v1033_v15 = vpack.c.bf16 %v652_v14, %v650_v13  ;;  %819 = vst [vmem:[%s803_s22] sm:$0xff] (%p1520_p8), %v818_v16 }
 0x157   : > { %v820_v17 = vld [vmem:[%s1470_s17 + $0xc] sm:$0xff] (%p1520_p8) }
 0x158   : > { %789 = vst [vmem:[%s1470_s17 + $0x24] sm:$0xff] %v1033_v15  ;;  %821 = vst [vmem:[%s803_s22 + $0x18] sm:$0xff] (%p1520_p8), %v820_v17 }
 0x15d   : > { %v822_v18 = vld [vmem:[%s1470_s17 + $0x18] sm:$0xff] }
 0x15e   : > { %823 = vst [vmem:[%s803_s22 + $0x30] sm:$0xff] %v822_v18 }
 0x15f   : > { %v824_v19 = vld [vmem:[%s1470_s17 + $0x24] sm:$0xff] }
 0x160   : > { %825 = vst [vmem:[%s803_s22 + $0x48] sm:$0xff] %v824_v19 }
 0x161 PF: > { %s15_s14 = sadd.s32 1, %s1275_s14   ;;  %s1521_s9 = smov %s1259_s10 }
 0x162   : > { %p12_p9 = scmp.ge.s32.totalorder %s15_s14, 4   ;;  %s1522_s10 = smov %s1263_s11 }
 0x163   : > { %s1523_s11 = smov %s1344_s21  ;;  %s1524_s12 = smov %s1271_s13 }
 0x164   : > { %s1525_s13 = smov %s1527_s16  ;;  %14 = sbr.rel (!%p12_p9) target bundleno = 4 (0x4), region = 111 }
 0x16b   :  { %856 = vsyncpa [#allocation4], 1 }
 0x16c   :  { %858 = vsyncpa [#allocation4 + $0x1], 1 }

// kernel: progen_block_forward.7
= control target key start
LH: loop header
LB: loop body
LE: loop exit
PB: predicated region body
PF: predicated region fallthrough
CT: control target
= control target key end

     0   :  { %s2285_s0 = inlined_call_operand.<no memory space> [shape: s32[1], index: 0, kind: input, shape index: {}, may-alias: {0,1}]   ;;  %s2286_s1 = inlined_call_operand.<no memory space> [shape: s32[1], index: 1, kind: input, shape index: {}, may-alias: {0,1}]   ;;  %s2287_s2 = inlined_call_operand.vmem [shape: bf16[2,16,768], index: 2, kind: input, shape index: {}, may-alias: {2,3,4}]   ;;  %s2288_s3 = inlined_call_operand.vmem [shape: bf16[2,16,768], index: 3, kind: input, shape index: {}, may-alias: {2,3,4}]   ;;  %s2289_s4 = inlined_call_operand.vmem [shape: bf16[2,16,768], index: 4, kind: input, shape index: {}, may-alias: {2,3,4}]   ;;  %s2290_s5 = inlined_call_operand.vmem [shape: f32[16,128], index: 5, kind: input, shape index: {}]   ;;  %s2291_s6 = inlined_call_operand.hbm [shape: f32[16,128], index: 6, kind: input, shape index: {}]   ;;  %s2292_s7 = inlined_call_operand.hbm [shape: bf16[128,128], index: 7, kind: input, shape index: {}]   ;;  %s2293_s8 = inlined_call_operand.vmem [shape: bf16[2,16,256], index: 8, kind: output, shape index: {}]  }
   0x1   :  { %2305 = sst [smem:[#allocation32_spill]] %s2290_s5 }
   0x2   :  { %2306 = sst [smem:[#allocation33_spill]] %s2293_s8 }
   0x3   :  { %13 = sst [smem:[#allocation7]] %s2285_s0 }
   0x4   :  { %14 = sst [smem:[#allocation8]] %s2286_s1 }
   0x5   :  { %15 = vsyncpa [#allocation13], 0 }
   0x6   :  { %16 = vsyncpa [#allocation15], 0  ;;  %s1918_s9 = smov 0   ;;  %s1920_s10 = smov 0  }
   0x7   :  { %s1922_s11 = smov 0   ;;  %s1924_s12 = smov 0  }
   0x8   :  { %s1926_s13 = smov 0   ;;  %s1928_s14 = smov 0  }
   0x9   :  { %s1930_s15 = smov 0   ;;  %s1932_s0 = smov 0  }
   0xa   :  { %s1934_s16 = smov 0   ;;  %s1936_s1 = smov 0  }
   0xb   :  { %s1938_s17 = smov 0   ;;  %s1940_s18 = smov 0  }
   0xc   :  { %s1942_s19 = smov 0  }
   0xd LB: > { %2307 = sst [smem:[#allocation19_spill]] %s1800_s9  ;;  %s37_s21 = sadd.s32 1, %s1840_s17  ;;  %s1848_s19 = sphi %s1942_s19, %s22_s19   ;;  %s1844_s18 = sphi %s1940_s18, %s2361_s18   ;;  %s1840_s17 = sphi %s1938_s17, %s2360_s17   ;;  %s1836_s1 = sphi %s1936_s1, %s2359_s1   ;;  %s1832_s16 = sphi %s1934_s16, %s2358_s16   ;;  %s1828_s0 = sphi %s1932_s0, %s2357_s0   ;;  %s1824_s15 = sphi %s1930_s15, %s2356_s15   ;;  %s1820_s14 = sphi %s1928_s14, %s2355_s14   ;;  %s1816_s13 = sphi %s1926_s13, %s2354_s13   ;;  %s1812_s12 = sphi %s1924_s12, %s2353_s12   ;;  %s1808_s11 = sphi %s1922_s11, %s2352_s11   ;;  %s1804_s10 = sphi %s1920_s10, %s2346_s10   ;;  %s1800_s9 = sphi %s1918_s9, %s2345_s9  }
   0xe   : > { %2308 = sst [smem:[#allocation20_spill]] %s1804_s10  ;;  %p39_p0 = scmp.ge.s32.totalorder %s37_s21, 2 }
   0xf   : > { %2309 = sst [smem:[#allocation21_spill]] %s1816_s13  ;;  %s41_s22 = sadd.s32 1, %s1844_s18 }
  0x10   : > { %2310 = sst [smem:[#allocation22_spill]] %s1832_s16  ;;  %s54_s23 = sadd.s32 1, %s1828_s0 }
  0x11   : > { %2311 = sst [smem:[#allocation23_spill]] %s1836_s1  ;;  %s2363_s21 = smov (%p39_p0, %s37_s21), 0 }
  0x12   : > { %2312 = sst [smem:[#allocation24_spill]] %s2363_s21  ;;  %s2365_s22 = smov (!%p39_p0, %s41_s22), %s1844_s18 }
  0x13   : > { %s50_s24 = ssub.s32 %s1840_s17, %s2363_s21  ;;  %p61_p1 = scmp.ne.s32.totalorder %s1828_s0, %s1824_s15 }
  0x14   : > { %p43_p2 = scmp.ge.s32.totalorder %s2365_s22, 2  ;;  %p62_p3 = scmp.eq.s32.totalorder %s1848_s19, 0 }
  0x15   : > { %s78_s25 = sadd.s32 4, %s1840_s17  ;;  %s80_s28 = sadd.s32 4, %s2363_s21 }
  0x16   : > { %s2367_s22 = smov (%p43_p2, %s2365_s22), 0  ;;  %p2000_p4 = por %p62_p3, %p61_p1 }
  0x17   : > { %2313 = sst [smem:[#allocation25_spill]] %s2367_s22  ;;  %s47_s27 = ssub.s32 %s1844_s18, %s2367_s22 }
  0x18   : > { %s2314_s26 = scalar_select %p2000_p4, 1, 0 }
  0x19   : > { %s84_s29 = ssub.s32 %s78_s25, %s80_s28  ;;  %s51_s30 = sor.u32 %s50_s24, %s47_s27 }
  0x1a   : > { %s88_s20 = sadd.s32 1, %s1820_s14  ;;  %p52_p5 = scmp.eq.s32.totalorder %s51_s30, 0 }
  0x1b   : > { %p95_p6 = scmp.ne.s32.totalorder %s1820_s14, %s1816_s13  ;;  %s85_s16 = sor.u32 %s84_s29, %s47_s27 }
  0x1c   : > { %s2012_s8 = scalar_select %p52_p5, %s1828_s0, %s54_s23  }
  0x1d   : > { %p2016_p7 = por %p95_p6, %p62_p3  ;;  %p86_p8 = scmp.eq.s32.totalorder %s85_s16, 0 }
  0x1e   : > { %2315 = sst [smem:[#allocation26_spill]] %s2012_s8  ;;  %s112_s24 = sadd.s32 2, %s1840_s17 }
  0x1f   : > { %s2316_s22 = scalar_select %p2016_p7, 1, 0 }
  0x20   : > { %s114_s25 = sadd.s32 2, %s2363_s21  ;;  %s122_s28 = sadd.s32 1, %s1812_s12 }
  0x21   : > { %s2024_s1 = scalar_select %p86_p8, %s1820_s14, %s88_s20  }
  0x22   : > { %s118_s23 = ssub.s32 %s112_s24, %s114_s25  ;;  %p129_p9 = scmp.ne.s32.totalorder %s1812_s12, %s1808_s11 }
  0x23   : > { %2317 = sst [smem:[#allocation27_spill]] %s2024_s1  ;;  %s119_s8 = sor.u32 %s118_s23, %s47_s27 }
  0x24   : > { %p120_p10 = scmp.eq.s32.totalorder %s119_s8, 0  ;;  %p2030_p11 = por %p129_p9, %p62_p3 }
  0x25   : > { %s217_s5 = sadd.s32 1, %s1804_s10  ;;  %p227_p12 = scmp.ne.s32.totalorder %s1804_s10, %s1800_s9 }
  0x26   : > { %s2318_s29 = scalar_select %p2030_p11, 1, 0 }
  0x27   : > { %s2036_s13 = scalar_select %p120_p10, %s1812_s12, %s122_s28  }
  0x28   : > { %s2040_s16 = scalar_select %p52_p5, %s1804_s10, %s217_s5  }
  0x29   : > { %2319 = sst [smem:[#allocation28_spill]] %s2036_s13  ;;  %s2321_s21 = sadd.s32 4294967295, %s1848_s19  }
  0x2a   : > { %2320 = sst [smem:[#allocation29_spill]] %s2040_s16  ;;  %p228_p13 = scmp.eq.s32.totalorder %s2321_s21, 3 }
  0x2b   : > { %p1347_p0 = scmp.ge.s32.totalorder %s1848_s19, 1  ;;  %p241_p1 = scmp.lt.s32.totalorder %s1848_s19, 5 }
  0x2c   : > { %p2048_p2 = por %p228_p13, %p227_p12  ;;  %s2325_s27 = smov %s2321_s21 }
  0x2d   : > { %p2052_p6 = pnand %p1347_p0, %p241_p1  ;;  %p2058_p3 = scmp.eq.s32.totalorder %s2325_s27, 0 }
  0x2e   : > { %s2322_s20 = scalar_select %p2048_p2, 1, 0 }
  0x2f   : > { %s2324_s8 = scalar_select %p2052_p6, 1, 0 }
  0x30   : > { %2323 = sst [smem:[#allocation30_spill]] %s2322_s20  ;;  %p1506_p5 = pneg %p2052_p6 }
  0x31   : > { %s2326_s24 = scalar_select %p2058_p3, 1, 0 }
  0x32   : > { %s1850_s5 = smov [#allocation12]   ;;  %p2066_p8 = pnand %p2058_p3, %p1506_p5 }
  0x33   : > { %2327 = sst [smem:[#allocation31_spill]] %s2326_s24  ;;  %s256_s21 = sshll.u32 %s1850_s5, 4  ;;  %s257_s21 = int_to_ptr.vmem [resolvable:$true] %s256_s21 }
  0x34   : > { %s1851_s25 = smov [#allocation14]   ;;  %s1682_s1 = scalar_lea.hbm %s2291_s6, 256 }
  0x35   : > { %s269_s28 = sshll.u32 %s1851_s25, 4  ;;  %p1683_p9 = scmp.ne.s32.totalorder %s2291_s6, %s1682_s1  ;;  %s2070_s28 = int_to_ptr.vmem [resolvable:$true] %s269_s28 }
  0x36   : > { %p1684_p10 = pneg %p2066_p8  ;;  %p1689_p0 = scmp.lt.u32.totalorder %s1682_s1, %s2291_s6 }
  0x38   : > { %p1685_p12 = pnand %p1684_p10, %p1683_p9 }
  0x3a   : > { %p1686_p13 = pneg %p1685_p12 }
  0x3c   : > { %p1691_p1 = pnand %p1689_p0, %p1686_p13 }
  0x3e   : > { %1694 = shalt.err (!%p1691_p1)
}
  0x3f   : > { %s1695_s25 = scalar_lea.vmem %s257_s21, 256  ;;  %p1703_p6 = scmp.lt.s32.totalorder %s257_s21, %s257_s21 }
  0x40   : > { %p1696_p5 = scmp.ne.s32.totalorder %s257_s21, %s1695_s25  ;;  %p1704_p11 = scmp.lt.s32.totalorder %s1695_s25, %s1695_s25 }
  0x42   : > { %p1698_p2 = pnand %p1696_p5, %p1684_p10  ;;  %p1705_p7 = por %p1704_p11, %p1703_p6 }
  0x44   : > { %p1699_p3 = pneg %p1698_p2 }
  0x46   : > { %p1706_p4 = pnand %p1705_p7, %p1699_p3 }
  0x48   : > { %1709 = shalt.err (!%p1706_p4)
}
  0x49   : > { %s1852_s13 = smov 128   ;;  %s1853_s16 = smov 8  }
  0x4a   : > { %1509 = dma.hbm_to_vmem [thread:$0]  (!%p2066_p8), %s2291_s6, 256, %s257_s21, [#allocation13], %s1852_s13, %s1852_s13, %s1853_s16  }
  0x4b   : > { %s1710_s5 = scalar_lea.hbm %s2292_s7, 1024 }
  0x4c   : > { %p1711_p2 = scmp.ne.s32.totalorder %s2292_s7, %s1710_s5  ;;  %p1717_p11 = scmp.lt.u32.totalorder %s1710_s5, %s2292_s7 }
  0x4e   : > { %p1713_p4 = pnand %p1711_p2, %p1684_p10 }
  0x50   : > { %p1714_p7 = pneg %p1713_p4 }
  0x52   : > { %p1719_p6 = pnand %p1717_p11, %p1714_p7 }
  0x54   : > { %1722 = shalt.err (!%p1719_p6)
}
  0x55   : > { %s1723_s21 = scalar_lea.vmem %s2070_s28, 1024  ;;  %p1731_p13 = scmp.lt.s32.totalorder %s2070_s28, %s2070_s28 }
  0x56   : > { %p1724_p3 = scmp.ne.s32.totalorder %s2070_s28, %s1723_s21  ;;  %p1732_p0 = scmp.lt.s32.totalorder %s1723_s21, %s1723_s21 }
  0x58   : > { %p1726_p9 = pnand %p1724_p3, %p1684_p10  ;;  %p1733_p1 = por %p1732_p0, %p1731_p13 }
  0x5a   : > { %p1727_p12 = pneg %p1726_p9 }
  0x5c   : > { %p1734_p5 = pnand %p1733_p1, %p1727_p12 }
  0x5e   : > { %1737 = shalt.err (!%p1734_p5)
}
  0x5f   : > { %s1854_s9 = smov 64   ;;  %s1855_s20 = smov 4  }
  0x60   : > { %1512 = dma.hbm_to_vmem [thread:$0]  (!%p2066_p8), %s2292_s7, 1024, %s2070_s28, [#allocation15], %s1854_s9, %s1854_s9, %s1855_s20  }
  0x61   : > { %p1350_p2 = scmp.ge.s32.totalorder %s1848_s19, 4 }
  0x62   : > { %p2329_p10 = scmp.ne.s32.totalorder (!%p1350_p2), %s2314_s26, 0 }
  0x63   : > { %279 = sbr.rel (%p1350_p2) target bundleno = 150 (0x96), region = 28 }
  0x6a   : > { %282 = sbr.rel (!%p2329_p10) target bundleno = 120 (0x78), region = 32  ;;  %s287_s16 = sld [smem:[#allocation7]] (%p2329_p10) }
  0x6b   : > { %s284_s10 = sand.u32 (%p2329_p10), 1, %s1828_s0   ;;  %s1497_s1 = smul.u32 (%p2329_p10), 12, %s1844_s18 }
  0x6c   : > { %s1351_s27 = sshll.u32 (%p2329_p10), %s284_s10, 3 }
  0x6d   : > { %s286_s9 = scalar_lea.vmem (%p2329_p10), [#allocation9], %s1351_s27 }
  0x70   : > { %s1496_s23 = smul.u32 (%p2329_p10), 12, %s287_s16 }
  0x72   : > { %s290_s5 = sadd.s32 %s1840_s17, %s1496_s23 }
  0x73   : > { %s292_s30 = sadd.s32 %s1497_s1, %s290_s5 }
  0x74   : > { %s1354_s25 = sshll.u32 %s292_s30, 2 }
  0x75   : > { %s294_s28 = scalar_lea.vmem %s2287_s2, %s1354_s25 }
  0x76   : > { %v310_v0 = vld [vmem:[%s294_s28] sm:$0xf]  ;;  %v312_v1 = vld [vmem:[%s294_s28 + $0x18] sm:$0xf] }
  0x77   : > { %311 = vst [vmem:[%s286_s9] sm:$0xf] %v310_v0  ;;  %313 = vst [vmem:[%s286_s9 + $0x4] sm:$0xf] %v312_v1 }
  0x78 PF: > { %p2330_p8 = scmp.ne.s32.totalorder %s2316_s22, 0 }
  0x79   : > { %s345_s26 = sld [smem:[#allocation8]] (%p2330_p8)  ;;  %s342_s20 = sand.u32 (%p2330_p8), 1, %s1820_s14  }
  0x7a   : > { %340 = sbr.rel (!%p2330_p8) target bundleno = 135 (0x87), region = 73  ;;  %s1355_s10 = sshll.u32 (%p2330_p8), %s342_s20, 3 }
  0x7b   : > { %s1218_s13 = smul.u32 (%p2330_p8), 12, %s1844_s18  ;;  %s344_s21 = scalar_lea.vmem (%p2330_p8), [#allocation10], %s1355_s10 }
  0x7f   : > { %s1216_s16 = smul.u32 (%p2330_p8), 12, %s345_s26 }
  0x81   : > { %s1217_s1 = sadd.s32 %s1840_s17, %s1216_s16 }
  0x82   : > { %s1219_s23 = sadd.s32 %s1218_s13, %s1217_s1 }
  0x83   : > { %s1356_s5 = sshll.u32 %s1219_s23, 2 }
  0x84   : > { %s1221_s27 = scalar_lea.vmem %s2288_s3, %s1356_s5 }
  0x85   : > { %v1357_v2 = vld [vmem:[%s1221_s27 + $0x10] sm:$0xf]  ;;  %v1358_v3 = vld [vmem:[%s1221_s27 + $0x28] sm:$0xf] }
  0x86   : > { %370 = vst [vmem:[%s344_s21] sm:$0xf] %v1357_v2  ;;  %372 = vst [vmem:[%s344_s21 + $0x4] sm:$0xf] %v1358_v3 }
  0x87 PF: > { %p2331_p4 = scmp.ne.s32.totalorder %s2318_s29, 0 }
  0x88   : > { %s404_s22 = sld [smem:[#allocation8]] (%p2331_p4)  ;;  %s401_s24 = sand.u32 (%p2331_p4), 1, %s1812_s12  }
  0x89   : > { %399 = sbr.rel (!%p2331_p4) target bundleno = 150 (0x96), region = 114  ;;  %s1359_s26 = sshll.u32 (%p2331_p4), %s401_s24, 3 }
  0x8a   : > { %s1227_s28 = smul.u32 (%p2331_p4), 12, %s1844_s18  ;;  %s403_s5 = scalar_lea.vmem (%p2331_p4), [#allocation11], %s1359_s26 }
  0x8e   : > { %s1225_s9 = smul.u32 (%p2331_p4), 12, %s404_s22 }
  0x90   : > { %s1226_s20 = sadd.s32 %s1840_s17, %s1225_s9 }
  0x91   : > { %s1228_s13 = sadd.s32 %s1227_s28, %s1226_s20 }
  0x92   : > { %s1360_s16 = sshll.u32 %s1228_s13, 2 }
  0x93   : > { %s1230_s10 = scalar_lea.vmem %s2289_s4, %s1360_s16 }
  0x94   : > { %v1361_v4 = vld [vmem:[%s1230_s10 + $0x8] sm:$0xf]  ;;  %v1362_v5 = vld [vmem:[%s1230_s10 + $0x20] sm:$0xf] }
  0x95   : > { %429 = vst [vmem:[%s403_s5] sm:$0xf] %v1361_v4  ;;  %431 = vst [vmem:[%s403_s5 + $0x4] sm:$0xf] %v1362_v5 }
  0x96 PF: > { %p2332_p7 = scmp.ne.s32.totalorder %s2324_s8, 0 }
  0x97   : > { %s2333_s29 = sld [smem:[#allocation21_spill]] (!%p2332_p7)  ;;  %s2334_s30 = sld [smem:[#allocation31_spill]] (!%p2332_p7) }
  0x98   : > { %461 = sbr.rel (%p2332_p7) target bundleno = 2023 (0x7e7), region = 155  ;;  %s464_s25 = sand.u32 (!%p2332_p7), 1, %s1824_s15  }
  0x99   : > { %s2148_s21 = sshll.u32 (!%p2332_p7), %s464_s25, 3  ;;  %s478_s24 = sand.u32 (!%p2332_p7), 1, %s1808_s11  }
  0x9a   : > { %s2153_s28 = sshll.u32 (!%p2332_p7), %s478_s24, 3  ;;  %s466_s9 = scalar_lea.vmem (!%p2332_p7), [#allocation9], %s2148_s21 }
  0x9b   : > { %s480_s8 = scalar_lea.vmem (!%p2332_p7), [#allocation11], %s2153_s28 }
  0x9d   : > { %s471_s27 = sand.u32 (!%p2332_p7), 1, %s2333_s29   ;;  %p2335_p11 = scmp.ne.s32.totalorder (!%p2332_p7), %s2334_s30, 0 }
  0x9e   : > { %s2150_s22 = sshll.u32 (!%p2332_p7), %s471_s27, 3 }
  0x9f   : > { %s473_s26 = scalar_lea.vmem [#allocation10], %s2150_s22 }
  0xa0   : > { %1791 = dma.done.wait (%p2335_p11), [#allocation13], 256  }
  0xa1   : > { %1793 = vsyncadd (%p2335_p11), [#allocation13], 4294967040 }
  0xa2   : > { %1795 = dma.done.wait (%p2335_p11), [#allocation15], 1024  }
  0xa3   : > { %1797 = vsyncadd (%p2335_p11), [#allocation15], 4294966272  ;;  %s2336_s15 = sld [smem:[#allocation19_spill]]  ;;  %s2167_s11 = sld [smem:[#allocation7]] }
  0xa4   : > { %s2169_s13 = sld [smem:[#allocation8]] }
  0xa9   : > { %s519_s20 = sand.u32 1, %s2336_s15  }
  0xaa   : > { %s1369_s16 = sshll.u32 %s519_s20, 3  ;;  %p1370_p6 = scmp.ne.s32.totalorder %s2169_s13, 0 }
  0xab   : > { %s2171_s1 = scalar_lea.vmem [#allocation16], %s1369_s16  ;;  %vm669_vm0 = vcmask (!%p1370_p6), 7168   ;;  %v1638_v6 = vld [vmem:[#allocation14] sm:$0xff] (!%p1370_p6)   ;;  %v1856_v7 = vmov (!%p1370_p6), 0.0   ;;  %v1857_v8 = vmov (!%p1370_p6), -inf   ;;  %v1639_v9 = vld [vmem:[#allocation14 + $0x8] sm:$0xff] (!%p1370_p6)  }
  0xac   : > { %538 = sbr.rel (%p1370_p6) target bundleno = 425 (0x1a9), region = 179  ;;  %1438 = vmatprep.subr.bf16.mxu0 (!%p1370_p6), %v1856_v7  ;;  %670 = vst.msk [vmem:[#allocation3] sm:$0xff] (!%p1370_p6), %vm669_vm0, %v1857_v8  ;;  %671 = vst.msk [vmem:[#allocation3 + $0x8] sm:$0xff] (!%p1370_p6), %vm669_vm0, %v1857_v8  ;;  %vm1858_vm1 = vmmov (!%p1370_p6), 0   ;;  %v1640_v10 = vld [vmem:[#allocation14 + $0x10] sm:$0xff] (!%p1370_p6)   ;;  %v1641_v11 = vld [vmem:[#allocation14 + $0x18] sm:$0xff] (!%p1370_p6)  }
  0xad   : > { %672 = vst.msk [vmem:[#allocation4] sm:$0xff] (!%p1370_p6), %vm669_vm0, %v1856_v7  ;;  %673 = vst.msk [vmem:[#allocation4 + $0x8] sm:$0xff] (!%p1370_p6), %vm669_vm0, %v1856_v7  ;;  %1439 = vmatpush3.bf16.msra.mxu0 (!%p1370_p6), %v1638_v6  ;;  %1454 = vmatprep.mubr.msk.bf16.mxu0 (!%p1370_p6), %vm1858_vm1, %v1856_v7  ;;  %v1642_v12 = vld [vmem:[#allocation14 + $0x20] sm:$0xff] (!%p1370_p6)   ;;  %v1643_v13 = vld [vmem:[#allocation14 + $0x28] sm:$0xff] (!%p1370_p6)   ;;  %s1371_s23 = sshll.u32 (!%p1370_p6), %s2167_s11, 4  ;;  %s2337_s29 = sld [smem:[#allocation32_spill]] (!%p1370_p6) }
  0xae   : > { %674 = vst [vmem:[#allocation5] sm:$0xff] (!%p1370_p6), %v1856_v7  ;;  %675 = vst [vmem:[#allocation5 + $0x8] sm:$0xff] (!%p1370_p6), %v1856_v7  ;;  %1440 = vmatprep.subr.bf16.mxu0 (!%p1370_p6), %v1856_v7  ;;  %v1644_v14 = vld [vmem:[#allocation14 + $0x30] sm:$0xff] (!%p1370_p6)   ;;  %v1645_v15 = vld [vmem:[#allocation14 + $0x38] sm:$0xff] (!%p1370_p6)   ;;  %s543_s25 = scalar_lea.vmem (!%p1370_p6), [#allocation12], %s1371_s23 }
  0xaf   : > { %v546_v16 = vld [vmem:[%s466_s9] sm:$0xff] (!%p1370_p6)   ;;  %v545_v21 = vld [vmem:[%s543_s25 + $0x8] sm:$0xff] (!%p1370_p6) }
  0xb0   : > { %v659_v17 = vunpack.c.l.bf16 (!%p1370_p6), %v546_v16  ;;  %v544_v18 = vld [vmem:[%s543_s25] sm:$0xff] (!%p1370_p6)  ;;  %v660_v19 = vunpack.c.h.bf16 (!%p1370_p6), %v546_v16 }
  0xb1   : > { %1441 = vmatpush3.bf16.msra.mxu0 (!%p1370_p6), %v1639_v9 }
  0xb2   : > { %1442 = vmatprep.subr.bf16.mxu0 (!%p1370_p6), %v1856_v7  ;;  %v661_v22 = vmul.f32 (!%p1370_p6), %v659_v17, %v544_v18  ;;  %v662_v27 = vmul.f32 (!%p1370_p6), %v660_v19, %v545_v21 }
  0xb3   : > { %s540_s30 = scalar_lea.vmem %s2337_s29, %s1371_s23 }
  0xb4   : > { %v541_v20 = vld [vmem:[%s540_s30] sm:$0xff]  ;;  %v542_v24 = vld [vmem:[%s540_s30 + $0x8] sm:$0xff] }
  0xb5   : > { %1443 = vmatpush3.bf16.msra.mxu0 %v1640_v10 }
  0xb6   : > { %1444 = vmatprep.subr.bf16.mxu0 %v1856_v7 }
  0xb9   : > { %1445 = vmatpush3.bf16.msra.mxu0 %v1641_v11 }
  0xba   : > { %1446 = vmatprep.subr.bf16.mxu0 %v1856_v7 }
  0xbd   : > { %1447 = vmatpush3.bf16.msra.mxu0 %v1642_v12 }
  0xbe   : > { %1448 = vmatprep.subr.bf16.mxu0 %v1856_v7 }
  0xc1   : > { %1449 = vmatpush3.bf16.msra.mxu0 %v1643_v13 }
  0xc2   : > { %1450 = vmatprep.subr.bf16.mxu0 %v1856_v7 }
  0xc5   : > { %1451 = vmatpush3.bf16.msra.mxu0 %v1644_v14 }
  0xc6   : > { %1452 = vmatprep.subr.bf16.mxu0 %v1856_v7 }
  0xc9   : > { %1453 = vmatpush3.bf16.msra.mxu0 %v1645_v15 }
  0xcc   : > { %1455 = vmatmul.mubr.bf16.vlgmr.msra.gmra.mrb[0].mxu0 %v546_v16 }
 0x19f   : > { %v652_v23 = vpop.f32.mrb[0].mxu0 }
 0x1a0   : > { %v663_v25 = vmul.f32 %v652_v23, %v541_v20  ;;  %v1456_v26 = vpop.f32.mrb[1].mxu0 }
 0x1a1   : > { %v655_v28 = vpop.f32.mrb[2].mxu0 }
 0x1a2   : > { %v665_v29 = vadd.f32 %v663_v25, %v661_v22  ;;  %v664_v30 = vmul.f32 %v655_v28, %v542_v24  ;;  %v1457_v31 = vpop.f32.mrb[3].mxu0 }
 0x1a4   : > { %v666_v32 = vadd.f32 %v664_v30, %v662_v27 }
 0x1a6   : > { %v667_v33 = vpack.c.bf16 %v666_v32, %v665_v29 }
 0x1a8   : > { %668 = vst [vmem:[#allocation2] sm:$0xff] %v667_v33 }
 0x1a9 PF: > { %v1648_v34 = vld [vmem:[#allocation14] sm:$0xff]   ;;  %v1859_v35 = vmov 0.0   ;;  %v1649_v36 = vld [vmem:[#allocation14 + $0x8] sm:$0xff]   ;;  %vm1860_vm2 = vmmov 0   ;;  %v1650_v37 = vld [vmem:[#allocation14 + $0x10] sm:$0xff]   ;;  %s1381_s27 = sshll.u32 %s2169_s13, 4  ;;  %p1391_p3 = scmp.ge.s32.totalorder %s2169_s13, %s2167_s11 }
 0x1aa   : > { %1458 = vmatprep.subr.bf16.mxu0 %v1859_v35  ;;  %1478 = vmatprep.subr.bf16.mxu1 %v1859_v35  ;;  %v1651_v38 = vld [vmem:[#allocation14 + $0x18] sm:$0xff]   ;;  %v1652_v39 = vld [vmem:[#allocation14 + $0x20] sm:$0xff]   ;;  %v1653_v40 = vld [vmem:[#allocation14 + $0x28] sm:$0xff]   ;;  %s2338_s9 = sld [smem:[#allocation32_spill]]  ;;  %s680_s20 = scalar_lea.vmem [#allocation12], %s1381_s27  ;;  %vm855_vm3 = vcmask (!%p1391_p3), 130048  }
 0x1ab   : > { %1459 = vmatpush3.bf16.msra.mxu0 %v1648_v34  ;;  %1474 = vmatprep.mubr.msk.bf16.mxu0 %vm1860_vm2, %v1859_v35  ;;  %v1654_v41 = vld [vmem:[#allocation14 + $0x30] sm:$0xff]   ;;  %v1655_v42 = vld [vmem:[#allocation14 + $0x38] sm:$0xff]   ;;  %v2184_v44 = vld [vmem:[%s480_s8] sm:$0xf]  ;;  %v1861_v6 = vmov (!%p1391_p3), 0   ;;  %vm898_vm4 = vcmask (!%p1391_p3), 7168  }
 0x1ac   : > { %1460 = vmatprep.subr.bf16.mxu0 %v1859_v35  ;;  %1480 = vmatprep.mubr.msk.bf16.mxu1 %vm1860_vm2, %v1859_v35  ;;  %v683_v43 = vld [vmem:[%s473_s26] sm:$0xff]   ;;  %v2188_v45 = vld [vmem:[%s480_s8 + $0x4] sm:$0xf]  ;;  %v1862_v16 = vmov (!%p1391_p3), 0.0   ;;  %vm1863_vm5 = vmmov (!%p1391_p3), 0  }
 0x1ad   : > { %v796_v46 = vunpack.c.l.bf16 %v683_v43  ;;  %v681_v47 = vld [vmem:[%s680_s20] sm:$0xff]  ;;  %v797_v48 = vunpack.c.h.bf16 %v683_v43  ;;  %v682_v50 = vld [vmem:[%s680_s20 + $0x8] sm:$0xff]  ;;  %1658 = vset.pattern.permute.xlu1 (!%p1391_p3), %v1861_v6  ;;  %1659 = vset.pattern.permute.xlu0 (!%p1391_p3), %v1861_v6  ;;  %v854_v10 = vld [vmem:[#allocation3 + $0x8] sm:$0xff] (!%p1391_p3)  ;;  %v1392_v15 = vcombine.low (!%p1391_p3), %v2184_v44, %v2188_v45 }
 0x1ae   : > { %v853_v7 = vld [vmem:[#allocation3] sm:$0xff] (!%p1391_p3)  ;;  %v886_v32 = vld [vmem:[#allocation4] sm:$0xff] (!%p1391_p3) }
 0x1af   : > { %1461 = vmatpush3.bf16.msra.mxu0 %v1649_v36  ;;  %v798_v51 = vmul.f32 %v796_v46, %v681_v47  ;;  %v799_v56 = vmul.f32 %v797_v48, %v682_v50  ;;  %v807_v63 = vld [vmem:[#allocation2] sm:$0xff] }
 0x1b0   : > { %1462 = vmatprep.subr.bf16.mxu0 %v1859_v35  ;;  %s677_s15 = scalar_lea.vmem %s2338_s9, %s1381_s27 }
 0x1b1   : > { %v678_v49 = vld [vmem:[%s677_s15] sm:$0xff]  ;;  %v679_v53 = vld [vmem:[%s677_s15 + $0x8] sm:$0xff] }
 0x1b3   : > { %1463 = vmatpush3.bf16.msra.mxu0 %v1650_v37 }
 0x1b4   : > { %1464 = vmatprep.subr.bf16.mxu0 %v1859_v35 }
 0x1b7   : > { %1465 = vmatpush3.bf16.msra.mxu0 %v1651_v38 }
 0x1b8   : > { %1466 = vmatprep.subr.bf16.mxu0 %v1859_v35 }
 0x1bb   : > { %1467 = vmatpush3.bf16.msra.mxu0 %v1652_v39 }
 0x1bc   : > { %1468 = vmatprep.subr.bf16.mxu0 %v1859_v35 }
 0x1bf   : > { %1469 = vmatpush3.bf16.msra.mxu0 %v1653_v40  ;;  %v901_v40 = vld [vmem:[#allocation5] sm:$0xff] (!%p1391_p3) }
 0x1c0   : > { %1470 = vmatprep.subr.bf16.mxu0 %v1859_v35 }
 0x1c3   : > { %1471 = vmatpush3.bf16.msra.mxu0 %v1654_v41 }
 0x1c4   : > { %1472 = vmatprep.subr.bf16.mxu0 %v1859_v35  ;;  %v887_v35 = vld [vmem:[#allocation4 + $0x8] sm:$0xff] (!%p1391_p3) }
 0x1c7   : > { %1473 = vmatpush3.bf16.msra.mxu0 %v1655_v42  ;;  %v902_v42 = vld [vmem:[#allocation5 + $0x8] sm:$0xff] (!%p1391_p3) }
 0x1c8   : > { %1484 = vmatprep.subr.bf16.mxu0 (!%p1391_p3), %v1862_v16 }
 0x1ca   : > { %1475 = vmatmul.mubr.bf16.vlgmr.msra.gmra.mrb[0].mxu0 %v683_v43 }
 0x1cb   : > { %1486 = vmatprep.mubr.msk.bf16.mxu0 (!%p1391_p3), %vm1863_vm5, %v1862_v16  ;;  %1485 = vmatpush3.bf16.msra.mxu0 (!%p1391_p3), %v1392_v15 }
 0x29d   : > { %v789_v52 = vpop.f32.mrb[0].mxu0 }
 0x29e   : > { %v800_v54 = vmul.f32 %v789_v52, %v678_v49  ;;  %v1476_v55 = vpop.f32.mrb[1].mxu0 }
 0x29f   : > { %v792_v57 = vpop.f32.mrb[2].mxu0 }
 0x2a0   : > { %v802_v58 = vadd.f32 %v800_v54, %v798_v51  ;;  %v801_v59 = vmul.f32 %v792_v57, %v679_v53  ;;  %v1477_v60 = vpop.f32.mrb[3].mxu0 }
 0x2a2   : > { %v803_v61 = vadd.f32 %v801_v59, %v799_v56 }
 0x2a4   : > { %v804_v62 = vpack.c.bf16 %v803_v61, %v802_v58 }
 0x2a6   : > { %1479 = vmatpush3.bf16.xpose.msra.mxu1 %v804_v62 }
 0x2ad   : > { %1481 = vmatmul.mubr.bf16.vlgmr.msra.gmra.mrb[0].mxu1 %v807_v63 }
 0x37d   : > { %852 = sbr.rel (%p1391_p3) target bundleno = 1408 (0x580), region = 183 }
 0x380   : > { %v2194_v0 = vpop.f32.mrb[0].mxu1 }
 0x381   : > { %v1482_v1 = vpop.f32.mrb[1].mxu1  ;;  %v856_v4 = vsel (!%p1391_p3), %vm855_vm3, %v2194_v0, -inf }
 0x382   : > { %v2196_v2 = vpop.f32.mrb[2].mxu1  ;;  %857 = vmax.xlane.f32.xlu0 (!%p1391_p3), %v856_v4 }
 0x383   : > { %v1483_v3 = vpop.f32.mrb[3].mxu1  ;;  %v859_v5 = vsel (!%p1391_p3), %vm855_vm3, %v2196_v2, -inf }
 0x386   : > { %860 = vmax.xlane.f32.xlu0 %v859_v5 }
 0x40f   : > { %v858_v8 = vpop.xlane.xlu0 %857 }
 0x410   : > { %v862_v9 = vmax.f32 %v853_v7, %v858_v8 }
 0x412   : > { %v864_v11 = vsub.f32 %v853_v7, %v862_v9  ;;  %970 = vst.msk [vmem:[#allocation3] sm:$0xff] %vm898_vm4, %v862_v9  ;;  %872 = vperm.xlu1 %1658, %v862_v9  }
 0x413   : > { %v861_v12 = vpop.xlane.xlu0 %860 }
 0x414   : > { %v863_v13 = vmax.f32 %v854_v10, %v861_v12  ;;  %v866_v29 = vmul.f32 1.442695, %v864_v11 }
 0x416   : > { %v865_v14 = vsub.f32 %v854_v10, %v863_v13  ;;  %971 = vst.msk [vmem:[#allocation3 + $0x8] sm:$0xff] %vm898_vm4, %v863_v13  ;;  %877 = vperm.xlu1 %1658, %v863_v13  }
 0x418   : > { %v868_v28 = vmul.f32 1.442695, %v865_v14 }
 0x491   : > { %v873_v17 = vpop.permute.xlu1 %872 }
 0x492   : > { %v880_v18 = vsub.f32 %v2194_v0, %v873_v17 }
 0x494   : > { %v882_v19 = vmul.f32 1.442695, %v880_v18 }
 0x495   : > { %v878_v20 = vpop.permute.xlu1 %877 }
 0x496   : > { %1660 = vpow2.f32 %v882_v19  ;;  %v881_v21 = vsub.f32 %v2196_v2, %v878_v20 }
 0x498   : > { %v884_v22 = vmul.f32 1.442695, %v881_v21 }
 0x49a   : > { %1662 = vpow2.f32 %v884_v22 }
 0x49b   : > { %1664 = vpow2.f32 %v868_v28 }
 0x49c   : > { %1666 = vpow2.f32 %v866_v29 }
 0x4a0   : > { %v1661_v23 = vpop.eup %1660 }
 0x4a1   : > { %v890_v24 = vsel %vm855_vm3, %v1661_v23, 0.0 }
 0x4a2   : > { %891 = vadd.xlane.f32.xlu0 %v890_v24 }
 0x4a4   : > { %v1663_v25 = vpop.eup %1662 }
 0x4a5   : > { %v893_v26 = vsel %vm855_vm3, %v1663_v25, 0.0  ;;  %v915_v27 = vpack.c.bf16 %v1663_v25, %v1661_v23  ;;  %v1665_v30 = vpop.eup %1664 }
 0x4a6   : > { %894 = vadd.xlane.f32.xlu1 %v893_v26  ;;  %v1667_v31 = vpop.eup %1666  ;;  %v889_v37 = vmul.f32 %v1665_v30, %v887_v35 }
 0x4a7   : > { %1487 = vmatmul.mubr.msk.bf16.vlgmr.msra.gmra.mrb[0].mxu0 %vm855_vm3, %v915_v27  ;;  %v888_v33 = vmul.f32 %v1667_v31, %v886_v32 }
 0x4b7   : > { %910 = vperm.xlu1 %1658, %v1665_v30  }
 0x4b8   : > { %905 = vperm.xlu0 %1659, %v1667_v31  }
 0x52f   : > { %v892_v34 = vpop.xlane.xlu0 %891 }
 0x530   : > { %v896_v36 = vadd.f32 %v892_v34, %v888_v33 }
 0x532   : > { %899 = vst.msk [vmem:[#allocation4] sm:$0xff] %vm898_vm4, %v896_v36 }
 0x533   : > { %v895_v38 = vpop.xlane.xlu1 %894 }
 0x534   : > { %v897_v39 = vadd.f32 %v895_v38, %v889_v37 }
 0x536   : > { %900 = vst.msk [vmem:[#allocation4 + $0x8] sm:$0xff] %vm898_vm4, %v897_v39 }
 0x537   : > { %v906_v41 = vpop.permute.xlu0 %905  ;;  %v911_v43 = vpop.permute.xlu1 %910 }
 0x538   : > { %v913_v46 = vmul.f32 %v906_v41, %v901_v40  ;;  %v914_v48 = vmul.f32 %v911_v43, %v902_v42 }
 0x57a   : > { %v959_v47 = vpop.f32.mrb[0].mxu0 }
 0x57b   : > { %v966_v49 = vadd.f32 %v959_v47, %v913_v46  ;;  %v1488_v50 = vpop.f32.mrb[1].mxu0 }
 0x57c   : > { %v962_v51 = vpop.f32.mrb[2].mxu0 }
 0x57d   : > { %968 = vst [vmem:[#allocation5] sm:$0xff] %v966_v49  ;;  %v967_v52 = vadd.f32 %v962_v51, %v914_v48  ;;  %v1489_v53 = vpop.f32.mrb[3].mxu0 }
 0x57f   : > { %969 = vst [vmem:[#allocation5 + $0x8] sm:$0xff] %v967_v52 }
 0x580 PF: > { %p1394_p9 = scmp.ne.s32.totalorder %s2169_s13, %s2167_s11 }
 0x581   : > { %v976_v54 = vlaneseq (!%p1394_p9)  ;;  %vm987_vm6 = vcmask (!%p1394_p9), 130048   ;;  %v1864_v62 = vmov (!%p1394_p9), 0   ;;  %v985_v63 = vld [vmem:[#allocation3] sm:$0xff] (!%p1394_p9)  ;;  %vm1030_vm9 = vcmask (!%p1394_p9), 7168   ;;  %v986_v4 = vld [vmem:[#allocation3 + $0x8] sm:$0xff] (!%p1394_p9)  ;;  %v1018_v22 = vld [vmem:[#allocation4] sm:$0xff] (!%p1394_p9) }
 0x582   : > { %975 = sbr.rel (%p1394_p9) target bundleno = 2004 (0x7d4), region = 187  ;;  %1668 = vset.pattern.permute.xlu1 (!%p1394_p9), %v1864_v62  ;;  %1669 = vset.pattern.permute.xlu0 (!%p1394_p9), %v1864_v62  ;;  %v1865_v8 = vmov (!%p1394_p9), 0.0   ;;  %vm1866_vm10 = vmmov (!%p1394_p9), 0   ;;  %v1019_v25 = vld [vmem:[#allocation4 + $0x8] sm:$0xff] (!%p1394_p9) }
 0x583   : > { %v977_v55 = vshrl.u32 (!%p1394_p9), %v976_v54, 7  ;;  %v980_v56 = vand.u32 (!%p1394_p9), 127, %v976_v54  ;;  %1490 = vmatprep.subr.bf16.mxu0 (!%p1394_p9), %v1865_v8  ;;  %1492 = vmatprep.mubr.msk.bf16.mxu0 (!%p1394_p9), %vm1866_vm10, %v1865_v8 }
 0x584   : > { %v1033_v34 = vld [vmem:[#allocation5] sm:$0xff] (!%p1394_p9) }
 0x585   : > { %vm981_vm7 = vcmp.le.s32.totalorder (!%p1394_p9), %v980_v56, %v977_v55  ;;  %v978_v57 = vadd.s32 (!%p1394_p9), 8, %v977_v55 }
 0x586   : > { %v983_v58 = vsel (!%p1394_p9), %vm981_vm7, %v2194_v0, -1e+09  ;;  %v1034_v36 = vld [vmem:[#allocation5 + $0x8] sm:$0xff] (!%p1394_p9) }
 0x587   : > { %v988_v59 = vsel (!%p1394_p9), %vm987_vm6, %v983_v58, -inf  ;;  %vm982_vm8 = vcmp.le.s32.totalorder (!%p1394_p9), %v980_v56, %v978_v57 }
 0x588   : > { %989 = vmax.xlane.f32.xlu0 (!%p1394_p9), %v988_v59  ;;  %v984_v60 = vsel (!%p1394_p9), %vm982_vm8, %v2196_v2, -1e+09  ;;  %v1395_v2 = vcombine.low (!%p1394_p9), %v2184_v44, %v2188_v45 }
 0x589   : > { %v991_v61 = vsel %vm987_vm6, %v984_v60, -inf }
 0x58a   : > { %1491 = vmatpush3.bf16.msra.mxu0 %v1395_v2 }
 0x58c   : > { %992 = vmax.xlane.f32.xlu0 %v991_v61 }
 0x615   : > { %v990_v1 = vpop.xlane.xlu0 %989 }
 0x616   : > { %v994_v3 = vmax.f32 %v985_v63, %v990_v1 }
 0x618   : > { %v996_v5 = vsub.f32 %v985_v63, %v994_v3  ;;  %1102 = vst.msk [vmem:[#allocation3] sm:$0xff] %vm1030_vm9, %v994_v3  ;;  %1004 = vperm.xlu1 %1668, %v994_v3  }
 0x619   : > { %v993_v0 = vpop.xlane.xlu0 %992 }
 0x61a   : > { %v995_v6 = vmax.f32 %v986_v4, %v993_v0  ;;  %v998_v19 = vmul.f32 1.442695, %v996_v5 }
 0x61c   : > { %v997_v7 = vsub.f32 %v986_v4, %v995_v6  ;;  %1103 = vst.msk [vmem:[#allocation3 + $0x8] sm:$0xff] %vm1030_vm9, %v995_v6  ;;  %1009 = vperm.xlu1 %1668, %v995_v6  }
 0x61e   : > { %v1000_v18 = vmul.f32 1.442695, %v997_v7 }
 0x697   : > { %v1005_v9 = vpop.permute.xlu1 %1004 }
 0x698   : > { %v1012_v10 = vsub.f32 %v983_v58, %v1005_v9 }
 0x69a   : > { %v1014_v11 = vmul.f32 1.442695, %v1012_v10 }
 0x69b   : > { %v1010_v12 = vpop.permute.xlu1 %1009 }
 0x69c   : > { %1670 = vpow2.f32 %v1014_v11  ;;  %v1013_v13 = vsub.f32 %v984_v60, %v1010_v12 }
 0x69e   : > { %v1016_v14 = vmul.f32 1.442695, %v1013_v13 }
 0x6a0   : > { %1672 = vpow2.f32 %v1016_v14 }
 0x6a1   : > { %1674 = vpow2.f32 %v1000_v18 }
 0x6a2   : > { %1676 = vpow2.f32 %v998_v19 }
 0x6a6   : > { %v1671_v15 = vpop.eup %1670 }
 0x6a7   : > { %v1022_v16 = vsel %vm987_vm6, %v1671_v15, 0.0 }
 0x6a8   : > { %1023 = vadd.xlane.f32.xlu0 %v1022_v16 }
 0x6aa   : > { %v1673_v17 = vpop.eup %1672 }
 0x6ab   : > { %v1025_v44 = vsel %vm987_vm6, %v1673_v17, 0.0  ;;  %v1047_v45 = vpack.c.bf16 %v1673_v17, %v1671_v15  ;;  %v1675_v20 = vpop.eup %1674 }
 0x6ac   : > { %1026 = vadd.xlane.f32.xlu1 %v1025_v44  ;;  %v1677_v21 = vpop.eup %1676  ;;  %v1021_v27 = vmul.f32 %v1675_v20, %v1019_v25 }
 0x6ad   : > { %1493 = vmatmul.mubr.msk.bf16.vlgmr.msra.gmra.mrb[0].mxu0 %vm987_vm6, %v1047_v45  ;;  %v1020_v23 = vmul.f32 %v1677_v21, %v1018_v22 }
 0x6bd   : > { %1042 = vperm.xlu1 %1668, %v1675_v20  }
 0x6be   : > { %1037 = vperm.xlu0 %1669, %v1677_v21  }
 0x735   : > { %v1024_v24 = vpop.xlane.xlu0 %1023 }
 0x736   : > { %v1028_v26 = vadd.f32 %v1024_v24, %v1020_v23 }
 0x738   : > { %1031 = vst.msk [vmem:[#allocation4] sm:$0xff] %vm1030_vm9, %v1028_v26 }
 0x739   : > { %v1027_v28 = vpop.xlane.xlu1 %1026 }
 0x73a   : > { %v1029_v29 = vadd.f32 %v1027_v28, %v1021_v27 }
 0x73c   : > { %1032 = vst.msk [vmem:[#allocation4 + $0x8] sm:$0xff] %vm1030_vm9, %v1029_v29 }
 0x73d   : > { %v1038_v35 = vpop.permute.xlu0 %1037  ;;  %v1043_v37 = vpop.permute.xlu1 %1042 }
 0x73e   : > { %v1045_v38 = vmul.f32 %v1038_v35, %v1033_v34  ;;  %v1046_v40 = vmul.f32 %v1043_v37, %v1034_v36 }
 0x73f   : > { %v1104_v30 = vld [vmem:[#allocation4] sm:$0xff] }
 0x740   : > { %1678 = vrcp.f32 %v1104_v30 }
 0x743   : > { %v1105_v31 = vld [vmem:[#allocation4 + $0x8] sm:$0xff] }
 0x744   : > { %1680 = vrcp.f32 %v1105_v31 }
 0x74a   : > { %v1679_v32 = vpop.eup %1678 }
 0x74b   : > { %1112 = vperm.xlu0 %1669, %v1679_v32  }
 0x74e   : > { %v1681_v33 = vpop.eup %1680 }
 0x74f   : > { %1117 = vperm.xlu0 %1669, %v1681_v33  }
 0x780   : > { %v1091_v39 = vpop.f32.mrb[0].mxu0 }
 0x781   : > { %v1098_v41 = vadd.f32 %v1091_v39, %v1045_v38  ;;  %v1494_v42 = vpop.f32.mrb[1].mxu0 }
 0x782   : > { %v1094_v43 = vpop.f32.mrb[2].mxu0 }
 0x783   : > { %1100 = vst [vmem:[#allocation5] sm:$0xff] %v1098_v41  ;;  %v1099_v46 = vadd.f32 %v1094_v43, %v1046_v40  ;;  %v1495_v47 = vpop.f32.mrb[3].mxu0 }
 0x785   : > { %1101 = vst [vmem:[#allocation5 + $0x8] sm:$0xff] %v1099_v46 }
 0x7ca   : > { %v1113_v48 = vpop.permute.xlu0 %1112 }
 0x7cb   : > { %v1120_v50 = vmul.f32 %v1113_v48, %v1098_v41 }
 0x7ce   : > { %v1118_v49 = vpop.permute.xlu0 %1117 }
 0x7cf   : > { %v1121_v51 = vmul.f32 %v1118_v49, %v1099_v46 }
 0x7d1   : > { %v1412_v52 = vpack.c.bf16 %v1121_v51, %v1120_v50 }
 0x7d3   : > { %1413 = vst [vmem:[%s2171_s1] sm:$0xff] %v1412_v52  }
 0x7d4 PF: > { %s2339_s22 = sld [smem:[#allocation30_spill]] }
 0x7da   : > { %p2340_p12 = scmp.ne.s32.totalorder %s2339_s22, 0 }
 0x7db   : > { %s1139_s28 = sld [smem:[#allocation7]] (%p2340_p12)  ;;  %s2341_s26 = sld [smem:[#allocation23_spill]] (%p2340_p12)  ;;  %v1162_v53 = vld [vmem:[%s2171_s1] sm:$0xf] (%p2340_p12)  ;;  %v1164_v54 = vld [vmem:[%s2171_s1 + $0x4] sm:$0xf] (%p2340_p12) }
 0x7dc   : > { %1138 = sbr.rel (!%p2340_p12) target bundleno = 2023 (0x7e7), region = 191  ;;  %s2342_s8 = sld [smem:[#allocation22_spill]] (%p2340_p12) }
 0x7dd   : > { %s2343_s30 = sld [smem:[#allocation33_spill]] (%p2340_p12) }
 0x7e1   : > { %s1402_s11 = sshll.u32 (%p2340_p12), %s2341_s26, 2  ;;  %s1408_s13 = sshll.u32 (%p2340_p12), %s1139_s28, 2 }
 0x7e2   : > { %s1142_s16 = sadd.s32 (%p2340_p12), %s2342_s8, %s1408_s13 }
 0x7e3   : > { %s1144_s23 = sadd.s32 %s1402_s11, %s1142_s16 }
 0x7e4   : > { %s1403_s10 = sshll.u32 %s1144_s23, 2 }
 0x7e5   : > { %s1146_s25 = scalar_lea.vmem %s2343_s30, %s1403_s10 }
 0x7e6   : > { %1163 = vst [vmem:[%s1146_s25] sm:$0xf] %v1162_v53  ;;  %1165 = vst [vmem:[%s1146_s25 + $0x8] sm:$0xf] %v1164_v54 }
 0x7e7 PF: > { %s22_s19 = sadd.s32 1, %s1848_s19   ;;  %s2345_s9 = sld [smem:[#allocation20_spill]] }
 0x7e8   : > { %p2241_p13 = scmp.ge.s32.totalorder %s22_s19, 6   ;;  %s2346_s10 = sld [smem:[#allocation29_spill]] }
 0x7e9   : > { %s2347_s21 = sld [smem:[#allocation28_spill]]  ;;  %s2348_s1 = sld [smem:[#allocation27_spill]] }
 0x7ea   : > { %s2349_s24 = sld [smem:[#allocation26_spill]]  ;;  %s2350_s20 = sld [smem:[#allocation24_spill]] }
 0x7eb   : > { %s2351_s22 = sld [smem:[#allocation25_spill]]  ;;  %s2352_s11 = smov %s1812_s12 }
 0x7ec   : > { %s2354_s13 = smov %s1820_s14  ;;  %s2356_s15 = smov %s1828_s0 }
 0x7ed   : > { %s2358_s16 = smov %s1840_s17  ;;  %21 = sbr.rel (!%p2241_p13) target bundleno = 13 (0xd), region = 284 }
 0x7ef   : > { %s2353_s12 = smov %s2347_s21  ;;  %s2355_s14 = smov %s2348_s1 }
 0x7f0   : > { %s2357_s0 = smov %s2349_s24  ;;  %s2359_s1 = smov %s1844_s18 }
 0x7f1   : > { %s2360_s17 = smov %s2350_s20  ;;  %s2361_s18 = smov %s2351_s22 }
 0x7f4   :  { %1202 = vsyncpa [#allocation13], 1 }
 0x7f5   :  { %1204 = vsyncpa [#allocation13 + $0x1], 1 }
 0x7f6   :  { %1205 = vsyncpa [#allocation15], 1 }

// kernel: progen_block_forward.9
= control target key start
LH: loop header
LB: loop body
LE: loop exit
PB: predicated region body
PF: predicated region fallthrough
CT: control target
= control target key end

     0   :  { %12 = vsyncpa [#allocation5], 0  ;;  %s3212_s0 = inlined_call_operand.vmem [shape: bf16[32,256], index: 0, kind: input, shape index: {}]   ;;  %s3213_s1 = inlined_call_operand.vmem [shape: bf16[256,1024], index: 1, kind: input, shape index: {}]   ;;  %s3214_s2 = inlined_call_operand.vmem [shape: f32[1,1024], index: 2, kind: input, shape index: {}]   ;;  %s3215_s3 = inlined_call_operand.hbm [shape: bf16[1024,256], index: 3, kind: input, shape index: {}]   ;;  %s3216_s4 = inlined_call_operand.vmem [shape: f32[1,256], index: 4, kind: input, shape index: {}]   ;;  %s3217_s5 = inlined_call_operand.vmem [shape: bf16[32,256], index: 5, kind: input, shape index: {}]   ;;  %s3218_s6 = inlined_call_operand.vmem [shape: f32[32,256], index: 6, kind: input, shape index: {}]   ;;  %s3219_s7 = inlined_call_operand.hbm [shape: f32[32,256], index: 7, kind: output, shape index: {}]  }
   0x1   :  { %14 = vsyncpa [#allocation5 + $0x1], 0 }
   0x2   :  { %15 = vsyncpa [#allocation6], 0  ;;  %s2617_s24 = smov 0   ;;  %s2619_s25 = smov 0  }
   0x3   :  { %s2621_s26 = smov 0   ;;  %s2623_s27 = smov 0  }
   0x4   :  { %s2625_s28 = smov 0   ;;  %s2627_s29 = smov 0  }
   0x5 LB: > { %s2002_s30 = sadd.s32 4294967295, %s2568_s29   ;;  %s30_s8 = sadd.s32 1, %s2564_s28  ;;  %s2568_s29 = sphi %s2627_s29, %s21_s29   ;;  %s2564_s28 = sphi %s2625_s28, %s3227_s28   ;;  %s2560_s27 = sphi %s2623_s27, %s3226_s27   ;;  %s2556_s26 = sphi %s2621_s26, %s3225_s26   ;;  %s2552_s25 = sphi %s2619_s25, %s3224_s25   ;;  %s2548_s24 = sphi %s2617_s24, %s3223_s24  }
   0x6   : > { %p31_p0 = scmp.ge.s32.totalorder %s30_s8, 2  ;;  %s66_s9 = sadd.s32 1, %s2556_s26 }
   0x7   : > { %p73_p1 = scmp.ne.s32.totalorder %s2556_s26, %s2552_s25  ;;  %p74_p2 = scmp.eq.s32.totalorder %s2568_s29, 0 }
   0x8   : > { %s3229_s8 = smov (%p31_p0, %s30_s8), 0  ;;  %p131_p4 = scmp.ne.s32.totalorder %s2552_s25, %s2548_s24 }
   0x9   : > { %p2653_p3 = por %p74_p2, %p73_p1  ;;  %s63_s11 = ssub.s32 %s2564_s28, %s3229_s8 }
   0xa   : > { %p132_p5 = scmp.eq.s32.totalorder %s2002_s30, 0  ;;  %p64_p6 = scmp.eq.s32.totalorder %s63_s11, 0 }
   0xb   : > { %p2007_p8 = scmp.ge.s32.totalorder %s2568_s29, 2 }
   0xc   : > { %p2662_p7 = por %p132_p5, %p131_p4 }
   0xd   : > { %s2667_s13 = scalar_select %p64_p6, %s2556_s26, %s66_s9  }
   0xe   : > { %283 = sbr.rel (%p2007_p8) target bundleno = 83 (0x53), region = 32 }
  0x15   : > { %286 = sbr.rel (!%p2653_p3) target bundleno = 57 (0x39), region = 36  ;;  %s288_s14 = sand.u32 (%p2653_p3), 1, %s2556_s26  }
  0x16   : > { %s2157_s15 = sshll.u32 (%p2653_p3), %s2564_s28, 4  ;;  %s2008_s16 = sshll.u32 (%p2653_p3), %s288_s14, 9 }
  0x17   : > { %s2677_s19 = scalar_lea.vmem (%p2653_p3), %s3213_s1, %s2157_s15  ;;  %s2682_s20 = scalar_lea.vmem (%p2653_p3), [#allocation3], %s2008_s16 }
  0x18   : > { %v306_v0 = vld [vmem:[%s2677_s19] sm:$0xff] (%p2653_p3)  ;;  %v308_v1 = vld [vmem:[%s2677_s19 + $0x8] sm:$0xff] (%p2653_p3) }
  0x19   : > { %v310_v2 = vld [vmem:[%s2677_s19 + $0x20] sm:$0xff] (%p2653_p3)  ;;  %307 = vst [vmem:[%s2682_s20] sm:$0xff] (%p2653_p3), %v306_v0  ;;  %309 = vst [vmem:[%s2682_s20 + $0x8] sm:$0xff] (%p2653_p3), %v308_v1  ;;  %v312_v3 = vld [vmem:[%s2677_s19 + $0x28] sm:$0xff] (%p2653_p3) }
  0x1a   : > { %311 = vst [vmem:[%s2682_s20 + $0x10] sm:$0xff] (%p2653_p3), %v310_v2  ;;  %v314_v4 = vld [vmem:[%s2677_s19 + $0x40] sm:$0xff] (%p2653_p3)  ;;  %v316_v5 = vld [vmem:[%s2677_s19 + $0x48] sm:$0xff] (%p2653_p3)  ;;  %313 = vst [vmem:[%s2682_s20 + $0x18] sm:$0xff] (%p2653_p3), %v312_v3 }
  0x1b   : > { %315 = vst [vmem:[%s2682_s20 + $0x20] sm:$0xff] (%p2653_p3), %v314_v4  ;;  %317 = vst [vmem:[%s2682_s20 + $0x28] sm:$0xff] (%p2653_p3), %v316_v5  ;;  %v318_v6 = vld [vmem:[%s2677_s19 + $0x60] sm:$0xff] (%p2653_p3)  ;;  %v320_v7 = vld [vmem:[%s2677_s19 + $0x68] sm:$0xff] (%p2653_p3) }
  0x1c   : > { %v322_v8 = vld [vmem:[%s2677_s19 + $0x80] sm:$0xff]  ;;  %319 = vst [vmem:[%s2682_s20 + $0x30] sm:$0xff] %v318_v6  ;;  %321 = vst [vmem:[%s2682_s20 + $0x38] sm:$0xff] %v320_v7  ;;  %v324_v9 = vld [vmem:[%s2677_s19 + $0x88] sm:$0xff] }
  0x1d   : > { %323 = vst [vmem:[%s2682_s20 + $0x40] sm:$0xff] %v322_v8  ;;  %v326_v10 = vld [vmem:[%s2677_s19 + $0xa0] sm:$0xff]  ;;  %v328_v11 = vld [vmem:[%s2677_s19 + $0xa8] sm:$0xff]  ;;  %325 = vst [vmem:[%s2682_s20 + $0x48] sm:$0xff] %v324_v9 }
  0x1e   : > { %327 = vst [vmem:[%s2682_s20 + $0x50] sm:$0xff] %v326_v10  ;;  %329 = vst [vmem:[%s2682_s20 + $0x58] sm:$0xff] %v328_v11  ;;  %v330_v12 = vld [vmem:[%s2677_s19 + $0xc0] sm:$0xff]  ;;  %v332_v13 = vld [vmem:[%s2677_s19 + $0xc8] sm:$0xff] }
  0x1f   : > { %v334_v14 = vld [vmem:[%s2677_s19 + $0xe0] sm:$0xff]  ;;  %331 = vst [vmem:[%s2682_s20 + $0x60] sm:$0xff] %v330_v12  ;;  %333 = vst [vmem:[%s2682_s20 + $0x68] sm:$0xff] %v332_v13  ;;  %v336_v15 = vld [vmem:[%s2677_s19 + $0xe8] sm:$0xff] }
  0x20   : > { %335 = vst [vmem:[%s2682_s20 + $0x70] sm:$0xff] %v334_v14  ;;  %v338_v16 = vld [vmem:[%s2677_s19 + $0x100] sm:$0xff]  ;;  %v340_v17 = vld [vmem:[%s2677_s19 + $0x108] sm:$0xff]  ;;  %337 = vst [vmem:[%s2682_s20 + $0x78] sm:$0xff] %v336_v15 }
  0x21   : > { %339 = vst [vmem:[%s2682_s20 + $0x80] sm:$0xff] %v338_v16  ;;  %341 = vst [vmem:[%s2682_s20 + $0x88] sm:$0xff] %v340_v17  ;;  %v342_v18 = vld [vmem:[%s2677_s19 + $0x120] sm:$0xff]  ;;  %v344_v19 = vld [vmem:[%s2677_s19 + $0x128] sm:$0xff] }
  0x22   : > { %v346_v20 = vld [vmem:[%s2677_s19 + $0x140] sm:$0xff]  ;;  %343 = vst [vmem:[%s2682_s20 + $0x90] sm:$0xff] %v342_v18  ;;  %345 = vst [vmem:[%s2682_s20 + $0x98] sm:$0xff] %v344_v19  ;;  %v348_v21 = vld [vmem:[%s2677_s19 + $0x148] sm:$0xff] }
  0x23   : > { %347 = vst [vmem:[%s2682_s20 + $0xa0] sm:$0xff] %v346_v20  ;;  %v350_v22 = vld [vmem:[%s2677_s19 + $0x160] sm:$0xff]  ;;  %v352_v23 = vld [vmem:[%s2677_s19 + $0x168] sm:$0xff]  ;;  %349 = vst [vmem:[%s2682_s20 + $0xa8] sm:$0xff] %v348_v21 }
  0x24   : > { %351 = vst [vmem:[%s2682_s20 + $0xb0] sm:$0xff] %v350_v22  ;;  %353 = vst [vmem:[%s2682_s20 + $0xb8] sm:$0xff] %v352_v23  ;;  %v354_v24 = vld [vmem:[%s2677_s19 + $0x180] sm:$0xff]  ;;  %v356_v25 = vld [vmem:[%s2677_s19 + $0x188] sm:$0xff] }
  0x25   : > { %v358_v26 = vld [vmem:[%s2677_s19 + $0x1a0] sm:$0xff]  ;;  %355 = vst [vmem:[%s2682_s20 + $0xc0] sm:$0xff] %v354_v24  ;;  %357 = vst [vmem:[%s2682_s20 + $0xc8] sm:$0xff] %v356_v25  ;;  %v360_v27 = vld [vmem:[%s2677_s19 + $0x1a8] sm:$0xff] }
  0x26   : > { %359 = vst [vmem:[%s2682_s20 + $0xd0] sm:$0xff] %v358_v26  ;;  %v362_v28 = vld [vmem:[%s2677_s19 + $0x1c0] sm:$0xff]  ;;  %v364_v29 = vld [vmem:[%s2677_s19 + $0x1c8] sm:$0xff]  ;;  %361 = vst [vmem:[%s2682_s20 + $0xd8] sm:$0xff] %v360_v27 }
  0x27   : > { %363 = vst [vmem:[%s2682_s20 + $0xe0] sm:$0xff] %v362_v28  ;;  %365 = vst [vmem:[%s2682_s20 + $0xe8] sm:$0xff] %v364_v29  ;;  %v366_v30 = vld [vmem:[%s2677_s19 + $0x1e0] sm:$0xff]  ;;  %v368_v31 = vld [vmem:[%s2677_s19 + $0x1e8] sm:$0xff] }
  0x28   : > { %v370_v32 = vld [vmem:[%s2677_s19 + $0x200] sm:$0xff]  ;;  %367 = vst [vmem:[%s2682_s20 + $0xf0] sm:$0xff] %v366_v30  ;;  %369 = vst [vmem:[%s2682_s20 + $0xf8] sm:$0xff] %v368_v31  ;;  %v372_v33 = vld [vmem:[%s2677_s19 + $0x208] sm:$0xff] }
  0x29   : > { %371 = vst [vmem:[%s2682_s20 + $0x100] sm:$0xff] %v370_v32  ;;  %v374_v34 = vld [vmem:[%s2677_s19 + $0x220] sm:$0xff]  ;;  %v376_v35 = vld [vmem:[%s2677_s19 + $0x228] sm:$0xff]  ;;  %373 = vst [vmem:[%s2682_s20 + $0x108] sm:$0xff] %v372_v33 }
  0x2a   : > { %375 = vst [vmem:[%s2682_s20 + $0x110] sm:$0xff] %v374_v34  ;;  %377 = vst [vmem:[%s2682_s20 + $0x118] sm:$0xff] %v376_v35  ;;  %v378_v36 = vld [vmem:[%s2677_s19 + $0x240] sm:$0xff]  ;;  %v380_v37 = vld [vmem:[%s2677_s19 + $0x248] sm:$0xff] }
  0x2b   : > { %v382_v38 = vld [vmem:[%s2677_s19 + $0x260] sm:$0xff]  ;;  %379 = vst [vmem:[%s2682_s20 + $0x120] sm:$0xff] %v378_v36  ;;  %381 = vst [vmem:[%s2682_s20 + $0x128] sm:$0xff] %v380_v37  ;;  %v384_v39 = vld [vmem:[%s2677_s19 + $0x268] sm:$0xff] }
  0x2c   : > { %383 = vst [vmem:[%s2682_s20 + $0x130] sm:$0xff] %v382_v38  ;;  %v386_v40 = vld [vmem:[%s2677_s19 + $0x280] sm:$0xff]  ;;  %v388_v41 = vld [vmem:[%s2677_s19 + $0x288] sm:$0xff]  ;;  %385 = vst [vmem:[%s2682_s20 + $0x138] sm:$0xff] %v384_v39 }
  0x2d   : > { %387 = vst [vmem:[%s2682_s20 + $0x140] sm:$0xff] %v386_v40  ;;  %389 = vst [vmem:[%s2682_s20 + $0x148] sm:$0xff] %v388_v41  ;;  %v390_v42 = vld [vmem:[%s2677_s19 + $0x2a0] sm:$0xff]  ;;  %v392_v43 = vld [vmem:[%s2677_s19 + $0x2a8] sm:$0xff] }
  0x2e   : > { %v394_v44 = vld [vmem:[%s2677_s19 + $0x2c0] sm:$0xff]  ;;  %391 = vst [vmem:[%s2682_s20 + $0x150] sm:$0xff] %v390_v42  ;;  %393 = vst [vmem:[%s2682_s20 + $0x158] sm:$0xff] %v392_v43  ;;  %v396_v45 = vld [vmem:[%s2677_s19 + $0x2c8] sm:$0xff] }
  0x2f   : > { %395 = vst [vmem:[%s2682_s20 + $0x160] sm:$0xff] %v394_v44  ;;  %v398_v46 = vld [vmem:[%s2677_s19 + $0x2e0] sm:$0xff]  ;;  %v400_v47 = vld [vmem:[%s2677_s19 + $0x2e8] sm:$0xff]  ;;  %397 = vst [vmem:[%s2682_s20 + $0x168] sm:$0xff] %v396_v45 }
  0x30   : > { %399 = vst [vmem:[%s2682_s20 + $0x170] sm:$0xff] %v398_v46  ;;  %401 = vst [vmem:[%s2682_s20 + $0x178] sm:$0xff] %v400_v47  ;;  %v402_v48 = vld [vmem:[%s2677_s19 + $0x300] sm:$0xff]  ;;  %v404_v49 = vld [vmem:[%s2677_s19 + $0x308] sm:$0xff] }
  0x31   : > { %v406_v50 = vld [vmem:[%s2677_s19 + $0x320] sm:$0xff]  ;;  %403 = vst [vmem:[%s2682_s20 + $0x180] sm:$0xff] %v402_v48  ;;  %405 = vst [vmem:[%s2682_s20 + $0x188] sm:$0xff] %v404_v49  ;;  %v408_v51 = vld [vmem:[%s2677_s19 + $0x328] sm:$0xff] }
  0x32   : > { %407 = vst [vmem:[%s2682_s20 + $0x190] sm:$0xff] %v406_v50  ;;  %v410_v52 = vld [vmem:[%s2677_s19 + $0x340] sm:$0xff]  ;;  %v412_v53 = vld [vmem:[%s2677_s19 + $0x348] sm:$0xff]  ;;  %409 = vst [vmem:[%s2682_s20 + $0x198] sm:$0xff] %v408_v51 }
  0x33   : > { %411 = vst [vmem:[%s2682_s20 + $0x1a0] sm:$0xff] %v410_v52  ;;  %413 = vst [vmem:[%s2682_s20 + $0x1a8] sm:$0xff] %v412_v53  ;;  %v414_v54 = vld [vmem:[%s2677_s19 + $0x360] sm:$0xff]  ;;  %v416_v55 = vld [vmem:[%s2677_s19 + $0x368] sm:$0xff] }
  0x34   : > { %v418_v56 = vld [vmem:[%s2677_s19 + $0x380] sm:$0xff]  ;;  %415 = vst [vmem:[%s2682_s20 + $0x1b0] sm:$0xff] %v414_v54  ;;  %417 = vst [vmem:[%s2682_s20 + $0x1b8] sm:$0xff] %v416_v55  ;;  %v420_v57 = vld [vmem:[%s2677_s19 + $0x388] sm:$0xff] }
  0x35   : > { %419 = vst [vmem:[%s2682_s20 + $0x1c0] sm:$0xff] %v418_v56  ;;  %v422_v58 = vld [vmem:[%s2677_s19 + $0x3a0] sm:$0xff]  ;;  %v424_v59 = vld [vmem:[%s2677_s19 + $0x3a8] sm:$0xff]  ;;  %421 = vst [vmem:[%s2682_s20 + $0x1c8] sm:$0xff] %v420_v57 }
  0x36   : > { %423 = vst [vmem:[%s2682_s20 + $0x1d0] sm:$0xff] %v422_v58  ;;  %425 = vst [vmem:[%s2682_s20 + $0x1d8] sm:$0xff] %v424_v59  ;;  %v426_v60 = vld [vmem:[%s2677_s19 + $0x3c0] sm:$0xff]  ;;  %v428_v61 = vld [vmem:[%s2677_s19 + $0x3c8] sm:$0xff] }
  0x37   : > { %v430_v62 = vld [vmem:[%s2677_s19 + $0x3e0] sm:$0xff]  ;;  %427 = vst [vmem:[%s2682_s20 + $0x1e0] sm:$0xff] %v426_v60  ;;  %429 = vst [vmem:[%s2682_s20 + $0x1e8] sm:$0xff] %v428_v61  ;;  %v432_v63 = vld [vmem:[%s2677_s19 + $0x3e8] sm:$0xff] }
  0x38   : > { %431 = vst [vmem:[%s2682_s20 + $0x1f0] sm:$0xff] %v430_v62  ;;  %433 = vst [vmem:[%s2682_s20 + $0x1f8] sm:$0xff] %v432_v63 }
  0x39 PF: > { %s448_s21 = sand.u32 1, %s2556_s26   ;;  %s2159_s22 = sshll.u32 %s2564_s28, 13 }
  0x3a   : > { %s2011_s23 = sshll.u32 %s448_s21, 9  ;;  %s2814_s11 = scalar_lea.hbm %s3215_s3, %s2159_s22 }
  0x3b   : > { %s452_s14 = scalar_lea.vmem [#allocation4], %s2011_s23  ;;  %s2818_s16 = scalar_lea.sflag [#allocation5], %s448_s21 }
  0x3c   : > { %s460_s15 = sshll.u32 %s452_s14, 4  ;;  %s2460_s17 = scalar_lea.hbm %s2814_s11, 8192  ;;  %s2816_s15 = int_to_ptr.vmem [resolvable:$true] %s460_s15 }
  0x3d   : > { %p2461_p9 = scmp.ne.s32.totalorder %s2814_s11, %s2460_s17  ;;  %s2464_s20 = scalar_lea.hbm %s3215_s3, 16384 }
  0x3e   : > { %p2465_p12 = scmp.lt.u32.totalorder %s2814_s11, %s3215_s3  ;;  %p2466_p13 = scmp.lt.u32.totalorder %s2464_s20, %s2460_s17 }
  0x3f   : > { %p2462_p10 = pnand %p2461_p9, %p2653_p3  ;;  %p2468_p1 = scmp.lt.u32.totalorder %s2460_s17, %s2814_s11 }
  0x40   : > { %p2467_p0 = por %p2466_p13, %p2465_p12 }
  0x41   : > { %p2463_p11 = pneg %p2462_p10 }
  0x42   : > { %p2469_p2 = por %p2468_p1, %p2467_p0 }
  0x44   : > { %p2470_p4 = pnand %p2469_p2, %p2463_p11 }
  0x46   : > { %2473 = shalt.err (!%p2470_p4)
}
  0x47   : > { %s2474_s21 = scalar_lea.vmem %s2816_s15, 8192  ;;  %s2570_s23 = smov [#allocation4]  }
  0x48   : > { %p2475_p5 = scmp.ne.s32.totalorder %s2816_s15, %s2474_s21  ;;  %s2478_s9 = sshll.u32 %s2570_s23, 4  ;;  %s2479_s9 = int_to_ptr.vmem [resolvable:$false] %s2478_s9 }
  0x49   : > { %s2480_s14 = scalar_lea.vmem %s2479_s9, 16384  ;;  %p2481_p9 = scmp.lt.s32.totalorder %s2816_s15, %s2479_s9 }
  0x4a   : > { %p2476_p6 = pnand %p2475_p5, %p2653_p3  ;;  %p2482_p10 = scmp.lt.s32.totalorder %s2480_s14, %s2474_s21 }
  0x4c   : > { %p2477_p8 = pneg %p2476_p6  ;;  %p2483_p12 = por %p2482_p10, %p2481_p9 }
  0x4e   : > { %p2484_p13 = pnand %p2483_p12, %p2477_p8 }
  0x50   : > { %2487 = shalt.err (!%p2484_p13)
}
  0x51   : > { %s2571_s17 = smov 128   ;;  %s2572_s18 = smov 8  }
  0x52   : > { %2168 = dma.hbm_to_vmem [thread:$0]  (%p2653_p3), %s2814_s11, 8192, %s2816_s15, %s2818_s16, %s2571_s17, %s2571_s17, %s2572_s18  }
  0x53 PF: > { %p2015_p11 = scmp.ge.s32.totalorder %s2568_s29, 1  ;;  %p468_p0 = scmp.lt.s32.totalorder %s2568_s29, 3 }
  0x55   : > { %p469_p1 = pnand %p2015_p11, %p468_p0 }
  0x56   : > { %s475_s19 = sand.u32 (!%p469_p1), 1, %s2552_s25  }
  0x57   : > { %472 = sbr.rel (%p469_p1) target bundleno = 744 (0x2e8), region = 67  ;;  %s2016_s20 = sshll.u32 (!%p469_p1), %s475_s19, 9 }
  0x58   : > { %s2845_s22 = scalar_lea.vmem (!%p469_p1), [#allocation3], %s2016_s20  ;;  %s482_s24 = scalar_lea.sflag (!%p469_p1), [#allocation5], %s475_s19 }
  0x59   : > { %s2847_s21 = scalar_lea.vmem (!%p469_p1), [#allocation4], %s2016_s20 }
  0x5e   : > { %2539 = dma.done.wait (%p2662_p7), %s482_s24, 8192  }
  0x5f   : > { %2541 = vsyncadd (%p2662_p7), %s482_s24, 4294959104  ;;  %s2018_s10 = sshll.u32 %s2560_s27, 2  ;;  %p2019_p2 = scmp.ne.s32.totalorder %s2560_s27, 0 }
  0x60   : > { %p546_p3 = scmp.lt.s32.totalorder %s2018_s10, 7  ;;  %v2573_v0 = vmov (!%p2019_p2), 0.0  }
  0x61   : > { %569 = sbr.rel (%p2019_p2) target bundleno = 104 (0x68), region = 79  ;;  %570 = vst [vmem:[#allocation2] sm:$0xff] (!%p2019_p2), %v2573_v0  ;;  %571 = vst [vmem:[#allocation2 + $0x8] sm:$0xff] (!%p2019_p2), %v2573_v0 }
  0x62   : > { %s3231_s10 = smov (!%p546_p3, %s2018_s10), 7  ;;  %572 = vst [vmem:[#allocation2 + $0x10] sm:$0xff] (!%p2019_p2), %v2573_v0  ;;  %573 = vst [vmem:[#allocation2 + $0x18] sm:$0xff] (!%p2019_p2), %v2573_v0 }
  0x63   : > { %s548_s16 = scalar_lea.vmem %s3214_s2, %s3231_s10  ;;  %574 = vst [vmem:[#allocation2 + $0x20] sm:$0xff] (!%p2019_p2), %v2573_v0  ;;  %575 = vst [vmem:[#allocation2 + $0x28] sm:$0xff] (!%p2019_p2), %v2573_v0 }
  0x64   : > { %576 = vst [vmem:[#allocation2 + $0x30] sm:$0xff] (!%p2019_p2), %v2573_v0  ;;  %577 = vst [vmem:[#allocation2 + $0x38] sm:$0xff] (!%p2019_p2), %v2573_v0 }
  0x68 PF: > { %v2230_v1 = vld [vmem:[%s2845_s22 + $0x4] ss:$16 sps:$4 sm:$0xff]   ;;  %v2232_v2 = vld [vmem:[%s2845_s22] ss:$16 sps:$4 sm:$0xff]   ;;  %v2283_v43 = vld [vmem:[%s2845_s22 + $0xc] ss:$16 sps:$4 sm:$0xff]  }
  0x69   : > { %1008 = vmatprep.subr.bf16.mxu1 %v2230_v1  ;;  %v2233_v3 = vld [vmem:[%s2845_s22 + $0x24] ss:$16 sps:$4 sm:$0xff]   ;;  %v2235_v4 = vld [vmem:[%s2845_s22 + $0x20] ss:$16 sps:$4 sm:$0xff]   ;;  %v2281_v47 = vld [vmem:[%s2845_s22 + $0x8] ss:$16 sps:$4 sm:$0xff]  }
  0x6a   : > { %1009 = vmatpush1.bf16.msra.mxu1 %v2232_v2  ;;  %v2236_v5 = vld [vmem:[%s2845_s22 + $0x44] ss:$16 sps:$4 sm:$0xff]   ;;  %v2238_v6 = vld [vmem:[%s2845_s22 + $0x40] ss:$16 sps:$4 sm:$0xff]   ;;  %v2286_v49 = vld [vmem:[%s2845_s22 + $0x2c] ss:$16 sps:$4 sm:$0xff]  }
  0x6b   : > { %1010 = vmatprep.subr.bf16.mxu1 %v2233_v3  ;;  %v2239_v7 = vld [vmem:[%s2845_s22 + $0x64] ss:$16 sps:$4 sm:$0xff]   ;;  %v2241_v8 = vld [vmem:[%s2845_s22 + $0x60] ss:$16 sps:$4 sm:$0xff]   ;;  %v2284_v52 = vld [vmem:[%s2845_s22 + $0x28] ss:$16 sps:$4 sm:$0xff]  }
  0x6c   : > { %v2242_v9 = vld [vmem:[%s2845_s22 + $0x84] ss:$16 sps:$4 sm:$0xff]   ;;  %v2244_v10 = vld [vmem:[%s2845_s22 + $0x80] ss:$16 sps:$4 sm:$0xff]   ;;  %v2289_v53 = vld [vmem:[%s2845_s22 + $0x4c] ss:$16 sps:$4 sm:$0xff]  }
  0x6d   : > { %v2245_v11 = vld [vmem:[%s2845_s22 + $0xa4] ss:$16 sps:$4 sm:$0xff]   ;;  %v2247_v12 = vld [vmem:[%s2845_s22 + $0xa0] ss:$16 sps:$4 sm:$0xff]   ;;  %v2287_v57 = vld [vmem:[%s2845_s22 + $0x48] ss:$16 sps:$4 sm:$0xff]  }
  0x6e   : > { %1011 = vmatpush1.bf16.msra.mxu1 %v2235_v4  ;;  %v2248_v13 = vld [vmem:[%s2845_s22 + $0xc4] ss:$16 sps:$4 sm:$0xff]   ;;  %v2250_v15 = vld [vmem:[%s2845_s22 + $0xc0] ss:$16 sps:$4 sm:$0xff]   ;;  %v2292_v58 = vld [vmem:[%s2845_s22 + $0x6c] ss:$16 sps:$4 sm:$0xff]  }
  0x6f   : > { %1012 = vmatprep.subr.bf16.mxu1 %v2236_v5  ;;  %v2877_v14 = vld [vmem:[%s3212_s0 + $0x4] ss:$8 sps:$4 sm:$0xff]   ;;  %v2253_v17 = vld [vmem:[%s2845_s22 + $0xe0] ss:$16 sps:$4 sm:$0xff]   ;;  %v2335_v30 = vld [vmem:[%s2847_s21 + $0x14] ss:$8 sps:$4 sm:$0xff]  }
  0x70   : > { %v2251_v16 = vld [vmem:[%s2845_s22 + $0xe4] ss:$16 sps:$4 sm:$0xff]   ;;  %1040 = vmatprep.mubr.bf16.mxu1 %v2877_v14  ;;  %v2256_v19 = vld [vmem:[%s2845_s22 + $0x100] ss:$16 sps:$4 sm:$0xff]   ;;  %v2290_v60 = vld [vmem:[%s2845_s22 + $0x68] ss:$16 sps:$4 sm:$0xff]  }
  0x71   : > { %v2254_v18 = vld [vmem:[%s2845_s22 + $0x104] ss:$16 sps:$4 sm:$0xff]   ;;  %v2259_v21 = vld [vmem:[%s2845_s22 + $0x120] ss:$16 sps:$4 sm:$0xff]   ;;  %v2295_v61 = vld [vmem:[%s2845_s22 + $0x8c] ss:$16 sps:$4 sm:$0xff]  }
  0x72   : > { %1013 = vmatpush1.bf16.msra.mxu1 %v2238_v6  ;;  %v2257_v20 = vld [vmem:[%s2845_s22 + $0x124] ss:$16 sps:$4 sm:$0xff]   ;;  %v2262_v23 = vld [vmem:[%s2845_s22 + $0x140] ss:$16 sps:$4 sm:$0xff]   ;;  %v2293_v62 = vld [vmem:[%s2845_s22 + $0x88] ss:$16 sps:$4 sm:$0xff]  }
  0x73   : > { %1014 = vmatprep.subr.bf16.mxu1 %v2239_v7  ;;  %v2260_v22 = vld [vmem:[%s2845_s22 + $0x144] ss:$16 sps:$4 sm:$0xff]   ;;  %v2265_v25 = vld [vmem:[%s2845_s22 + $0x160] ss:$16 sps:$4 sm:$0xff]   ;;  %v2298_v63 = vld [vmem:[%s2845_s22 + $0xac] ss:$16 sps:$4 sm:$0xff]  }
  0x74   : > { %v2263_v24 = vld [vmem:[%s2845_s22 + $0x164] ss:$16 sps:$4 sm:$0xff]   ;;  %v2334_v28 = vld [vmem:[%s2847_s21] ss:$8 sps:$4 sm:$0xff]   ;;  %v2337_v32 = vld [vmem:[%s2847_s21 + $0x10] ss:$8 sps:$4 sm:$0xff]  }
  0x75   : > { %v2266_v26 = vld [vmem:[%s2845_s22 + $0x184] ss:$16 sps:$4 sm:$0xff]   ;;  %v2268_v29 = vld [vmem:[%s2845_s22 + $0x180] ss:$16 sps:$4 sm:$0xff]   ;;  %v2296_v0 = vld [vmem:[%s2845_s22 + $0xa8] ss:$16 sps:$4 sm:$0xff]  }
  0x76   : > { %1015 = vmatpush1.bf16.msra.mxu1 %v2241_v8  ;;  %v2332_v27 = vld [vmem:[%s2847_s21 + $0x4] ss:$8 sps:$4 sm:$0xff]   ;;  %v2271_v34 = vld [vmem:[%s2845_s22 + $0x1a0] ss:$16 sps:$4 sm:$0xff]   ;;  %v2341_v38 = vld [vmem:[%s2847_s21 + $0x34] ss:$8 sps:$4 sm:$0xff]  }
  0x77   : > { %1016 = vmatprep.subr.bf16.mxu1 %v2242_v9  ;;  %v2269_v31 = vld [vmem:[%s2845_s22 + $0x1a4] ss:$16 sps:$4 sm:$0xff]   ;;  %1658 = vmatprep.subr.bf16.mxu0 %v2332_v27  ;;  %v2340_v36 = vld [vmem:[%s2847_s21 + $0x20] ss:$8 sps:$4 sm:$0xff]   ;;  %v2343_v40 = vld [vmem:[%s2847_s21 + $0x30] ss:$8 sps:$4 sm:$0xff]  }
  0x78   : > { %1659 = vmatpush1.bf16.msra.mxu0 %v2334_v28  ;;  %v2338_v33 = vld [vmem:[%s2847_s21 + $0x24] ss:$8 sps:$4 sm:$0xff]   ;;  %v2274_v37 = vld [vmem:[%s2845_s22 + $0x1c0] ss:$16 sps:$4 sm:$0xff]   ;;  %v2347_v46 = vld [vmem:[%s2847_s21 + $0x54] ss:$8 sps:$4 sm:$0xff]  }
  0x79   : > { %1660 = vmatprep.subr.bf16.mxu0 %v2335_v30  ;;  %v2272_v35 = vld [vmem:[%s2845_s22 + $0x1c4] ss:$16 sps:$4 sm:$0xff]   ;;  %v2277_v42 = vld [vmem:[%s2845_s22 + $0x1e0] ss:$16 sps:$4 sm:$0xff]   ;;  %v2301_v1 = vld [vmem:[%s2845_s22 + $0xcc] ss:$16 sps:$4 sm:$0xff]  }
  0x7a   : > { %1017 = vmatpush1.bf16.msra.mxu1 %v2244_v10  ;;  %v2275_v39 = vld [vmem:[%s2845_s22 + $0x1e4] ss:$16 sps:$4 sm:$0xff]   ;;  %v2346_v44 = vld [vmem:[%s2847_s21 + $0x40] ss:$8 sps:$4 sm:$0xff]   ;;  %v2349_v50 = vld [vmem:[%s2847_s21 + $0x50] ss:$8 sps:$4 sm:$0xff]  }
  0x7b   : > { %1018 = vmatprep.subr.bf16.mxu1 %v2245_v11  ;;  %v2344_v41 = vld [vmem:[%s2847_s21 + $0x44] ss:$8 sps:$4 sm:$0xff]   ;;  %v2913_v45 = vld [vmem:[%s3212_s0] ss:$8 sps:$4 sm:$0xff]   ;;  %v2920_v48 = vld [vmem:[%s3212_s0 + $0x14] ss:$8 sps:$4 sm:$0xff]  }
  0x7c   : > { %1661 = vmatpush1.bf16.msra.mxu0 %v2337_v32  ;;  %v2350_v51 = vld [vmem:[%s2847_s21 + $0x64] ss:$8 sps:$4 sm:$0xff]   ;;  %v2352_v54 = vld [vmem:[%s2847_s21 + $0x60] ss:$8 sps:$4 sm:$0xff]   ;;  %v2933_v55 = vld [vmem:[%s3212_s0 + $0x10] ss:$8 sps:$4 sm:$0xff]  }
  0x7d   : > { %1662 = vmatprep.subr.bf16.mxu0 %v2338_v33  ;;  %v2353_v56 = vld [vmem:[%s2847_s21 + $0x74] ss:$8 sps:$4 sm:$0xff]   ;;  %v2355_v59 = vld [vmem:[%s2847_s21 + $0x70] ss:$8 sps:$4 sm:$0xff]   ;;  %v2370_v30 = vld [vmem:[%s2847_s21 + $0xc0] ss:$8 sps:$4 sm:$0xff]  }
  0x7e   : > { %1019 = vmatpush1.bf16.msra.mxu1 %v2247_v12  ;;  %v2299_v2 = vld [vmem:[%s2845_s22 + $0xc8] ss:$16 sps:$4 sm:$0xff]   ;;  %v2304_v3 = vld [vmem:[%s2845_s22 + $0xec] ss:$16 sps:$4 sm:$0xff]   ;;  %p2152_p7 = scmp.ne.s32.totalorder %s2560_s27, 1 }
  0x7f   : > { %1020 = vmatprep.subr.bf16.mxu1 %v2248_v13  ;;  %v2302_v4 = vld [vmem:[%s2845_s22 + $0xe8] ss:$16 sps:$4 sm:$0xff]   ;;  %v2310_v5 = vld [vmem:[%s2845_s22 + $0x10c] ss:$16 sps:$4 sm:$0xff]  }
  0x80   : > { %1663 = vmatpush1.bf16.msra.mxu0 %v2340_v36  ;;  %v2308_v6 = vld [vmem:[%s2845_s22 + $0x108] ss:$16 sps:$4 sm:$0xff]   ;;  %v2313_v7 = vld [vmem:[%s2845_s22 + $0x12c] ss:$16 sps:$4 sm:$0xff]  }
  0x81   : > { %1664 = vmatprep.subr.bf16.mxu0 %v2341_v38  ;;  %v2311_v8 = vld [vmem:[%s2845_s22 + $0x128] ss:$16 sps:$4 sm:$0xff]   ;;  %v2316_v9 = vld [vmem:[%s2845_s22 + $0x14c] ss:$16 sps:$4 sm:$0xff]   ;;  %v648_v38 = vlaneseq }
  0x82   : > { %1021 = vmatpush1.bf16.msra.mxu1 %v2250_v15  ;;  %v2314_v10 = vld [vmem:[%s2845_s22 + $0x148] ss:$16 sps:$4 sm:$0xff]   ;;  %v2319_v11 = vld [vmem:[%s2845_s22 + $0x16c] ss:$16 sps:$4 sm:$0xff]  }
  0x83   : > { %1022 = vmatprep.subr.bf16.mxu1 %v2251_v16  ;;  %v2317_v12 = vld [vmem:[%s2845_s22 + $0x168] ss:$16 sps:$4 sm:$0xff]   ;;  %v2322_v13 = vld [vmem:[%s2845_s22 + $0x18c] ss:$16 sps:$4 sm:$0xff]  }
  0x84   : > { %1665 = vmatpush1.bf16.msra.mxu0 %v2343_v40  ;;  %v2325_v15 = vld [vmem:[%s2845_s22 + $0x1ac] ss:$16 sps:$4 sm:$0xff]   ;;  %v2323_v16 = vld [vmem:[%s2845_s22 + $0x1a8] ss:$16 sps:$4 sm:$0xff]  }
  0x85   : > { %1666 = vmatprep.subr.bf16.mxu0 %v2344_v41  ;;  %v2365_v27 = vld [vmem:[%s2847_s21 + $0xb4] ss:$8 sps:$4 sm:$0xff]   ;;  %v2367_v28 = vld [vmem:[%s2847_s21 + $0xb0] ss:$8 sps:$4 sm:$0xff]   ;;  %v2374_v33 = vld [vmem:[%s2847_s21 + $0xe4] ss:$8 sps:$4 sm:$0xff]  }
  0x86   : > { %1023 = vmatpush1.bf16.msra.mxu1 %v2253_v17  ;;  %v2328_v17 = vld [vmem:[%s2845_s22 + $0x1cc] ss:$16 sps:$4 sm:$0xff]   ;;  %v2373_v32 = vld [vmem:[%s2847_s21 + $0xd0] ss:$8 sps:$4 sm:$0xff]   ;;  %v2994_v41 = vld [vmem:[%s548_s16] sm:$0xf] }
  0x87   : > { %1024 = vmatprep.subr.bf16.mxu1 %v2254_v18  ;;  %v2326_v18 = vld [vmem:[%s2845_s22 + $0x1c8] ss:$16 sps:$4 sm:$0xff]  }
  0x88   : > { %1667 = vmatpush1.bf16.msra.mxu0 %v2346_v44  ;;  %v2379_v36 = vld [vmem:[%s2847_s21 + $0xf0] ss:$8 sps:$4 sm:$0xff]  }
  0x89   : > { %1668 = vmatprep.subr.bf16.mxu0 %v2347_v46 }
  0x8a   : > { %1025 = vmatpush1.bf16.msra.mxu1 %v2256_v19  ;;  %v2331_v19 = vld [vmem:[%s2845_s22 + $0x1ec] ss:$16 sps:$4 sm:$0xff]  }
  0x8b   : > { %1026 = vmatprep.subr.bf16.mxu1 %v2257_v20  ;;  %v2329_v20 = vld [vmem:[%s2845_s22 + $0x1e8] ss:$16 sps:$4 sm:$0xff]  }
  0x8c   : > { %1669 = vmatpush1.bf16.msra.mxu0 %v2349_v50 }
  0x8d   : > { %1670 = vmatprep.subr.bf16.mxu0 %v2350_v51 }
  0x8e   : > { %1027 = vmatpush1.bf16.msra.mxu1 %v2259_v21  ;;  %v2356_v21 = vld [vmem:[%s2847_s21 + $0x84] ss:$8 sps:$4 sm:$0xff]  }
  0x8f   : > { %1028 = vmatprep.subr.bf16.mxu1 %v2260_v22  ;;  %v2358_v22 = vld [vmem:[%s2847_s21 + $0x80] ss:$8 sps:$4 sm:$0xff]  }
  0x90   : > { %1671 = vmatpush1.bf16.msra.mxu0 %v2352_v54 }
  0x91   : > { %1672 = vmatprep.subr.bf16.mxu0 %v2353_v56 }
  0x92   : > { %1029 = vmatpush1.bf16.msra.mxu1 %v2262_v23  ;;  %v2359_v23 = vld [vmem:[%s2847_s21 + $0x94] ss:$8 sps:$4 sm:$0xff]  }
  0x93   : > { %1030 = vmatprep.subr.bf16.mxu1 %v2263_v24  ;;  %v2361_v24 = vld [vmem:[%s2847_s21 + $0x90] ss:$8 sps:$4 sm:$0xff]  }
  0x94   : > { %1673 = vmatpush1.bf16.msra.mxu0 %v2355_v59 }
  0x95   : > { %1674 = vmatprep.subr.bf16.mxu0 %v2356_v21 }
  0x96   : > { %1031 = vmatpush1.bf16.msra.mxu1 %v2265_v25  ;;  %v2362_v25 = vld [vmem:[%s2847_s21 + $0xa4] ss:$8 sps:$4 sm:$0xff]  }
  0x97   : > { %1032 = vmatprep.subr.bf16.mxu1 %v2266_v26  ;;  %v2364_v26 = vld [vmem:[%s2847_s21 + $0xa0] ss:$8 sps:$4 sm:$0xff]  }
  0x98   : > { %1675 = vmatpush1.bf16.msra.mxu0 %v2358_v22 }
  0x99   : > { %1676 = vmatprep.subr.bf16.mxu0 %v2359_v23 }
  0x9a   : > { %1033 = vmatpush1.bf16.msra.mxu1 %v2268_v29  ;;  %v2368_v29 = vld [vmem:[%s2847_s21 + $0xc4] ss:$8 sps:$4 sm:$0xff]  }
  0x9b   : > { %1034 = vmatprep.subr.bf16.mxu1 %v2269_v31  ;;  %v2371_v31 = vld [vmem:[%s2847_s21 + $0xd4] ss:$8 sps:$4 sm:$0xff]  }
  0x9c   : > { %1677 = vmatpush1.bf16.msra.mxu0 %v2361_v24 }
  0x9d   : > { %1678 = vmatprep.subr.bf16.mxu0 %v2362_v25 }
  0x9e   : > { %1035 = vmatpush1.bf16.msra.mxu1 %v2271_v34  ;;  %v2376_v34 = vld [vmem:[%s2847_s21 + $0xe0] ss:$8 sps:$4 sm:$0xff]  }
  0x9f   : > { %1036 = vmatprep.subr.bf16.mxu1 %v2272_v35  ;;  %v2377_v35 = vld [vmem:[%s2847_s21 + $0xf4] ss:$8 sps:$4 sm:$0xff]  }
  0xa0   : > { %1679 = vmatpush1.bf16.msra.mxu0 %v2364_v26 }
  0xa1   : > { %1680 = vmatprep.subr.bf16.mxu0 %v2365_v27 }
  0xa2   : > { %1037 = vmatpush1.bf16.msra.mxu1 %v2274_v37  ;;  %v2382_v37 = vld [vmem:[%s2847_s21 + $0x104] ss:$8 sps:$4 sm:$0xff]  }
  0xa3   : > { %1038 = vmatprep.subr.bf16.mxu1 %v2275_v39  ;;  %v2986_v39 = vshrl.u32 %v648_v38, 7 }
  0xa4   : > { %1681 = vmatpush1.bf16.msra.mxu0 %v2367_v28 }
  0xa5   : > { %1682 = vmatprep.subr.bf16.mxu0 %v2368_v29  ;;  %v650_v40 = vsub.s32 0, %v2986_v39 }
  0xa6   : > { %1039 = vmatpush1.bf16.msra.mxu1 %v2277_v42  ;;  %v654_v42 = vsub.s32 1, %v2986_v39 }
  0xa7   : > { %1061 = vmatprep.subr.bf16.mxu1 %v2283_v43  ;;  %v651_v43 = vrot.slane %v2994_v41, %v650_v40 }
  0xa8   : > { %1683 = vmatpush1.bf16.msra.mxu0 %v2370_v30  ;;  %v655_v44 = vrot.slane %v2994_v41, %v654_v42 }
  0xa9   : > { %1041 = vmatmul.mubr.bf16.vlgmr.msra.gmra.mrb[0].mxu1 %v2913_v45  ;;  %1684 = vmatprep.subr.bf16.mxu0 %v2371_v31 }
  0xaa   : > { %1062 = vmatpush1.bf16.msra.mxu1 %v2281_v47  ;;  %1050 = vmatprep.mubr.bf16.mxu1 %v2920_v48 }
  0xab   : > { %1063 = vmatprep.subr.bf16.mxu1 %v2286_v49 }
  0xac   : > { %1685 = vmatpush1.bf16.msra.mxu0 %v2373_v32 }
  0xad   : > { %1686 = vmatprep.subr.bf16.mxu0 %v2374_v33 }
  0xae   : > { %1064 = vmatpush1.bf16.msra.mxu1 %v2284_v52 }
  0xaf   : > { %1065 = vmatprep.subr.bf16.mxu1 %v2289_v53 }
  0xb0   : > { %1687 = vmatpush1.bf16.msra.mxu0 %v2376_v34 }
  0xb1   : > { %1051 = vmatmul.mubr.bf16.gmra.mrb[4].mxu1 %v2933_v55  ;;  %1688 = vmatprep.subr.bf16.mxu0 %v2377_v35 }
  0xb2   : > { %1066 = vmatpush1.bf16.msra.mxu1 %v2287_v57  ;;  %1093 = vmatprep.mubr.bf16.mxu1 %v2877_v14  ;;  %v2320_v14 = vld [vmem:[%s2845_s22 + $0x188] ss:$16 sps:$4 sm:$0xff]  }
  0xb3   : > { %1067 = vmatprep.subr.bf16.mxu1 %v2292_v58 }
  0xb4   : > { %1689 = vmatpush1.bf16.msra.mxu0 %v2379_v36 }
  0xb5   : > { %1711 = vmatprep.subr.bf16.mxu0 %v2382_v37 }
  0xb6   : > { %1068 = vmatpush1.bf16.msra.mxu1 %v2290_v60 }
  0xb7   : > { %1069 = vmatprep.subr.bf16.mxu1 %v2295_v61 }
  0xba   : > { %1070 = vmatpush1.bf16.msra.mxu1 %v2293_v62 }
  0xbb   : > { %1071 = vmatprep.subr.bf16.mxu1 %v2298_v63 }
  0xbe   : > { %1072 = vmatpush1.bf16.msra.mxu1 %v2296_v0 }
  0xbf   : > { %1073 = vmatprep.subr.bf16.mxu1 %v2301_v1 }
  0xc2   : > { %1074 = vmatpush1.bf16.msra.mxu1 %v2299_v2 }
  0xc3   : > { %1075 = vmatprep.subr.bf16.mxu1 %v2304_v3 }
  0xc6   : > { %1076 = vmatpush1.bf16.msra.mxu1 %v2302_v4 }
  0xc7   : > { %1077 = vmatprep.subr.bf16.mxu1 %v2310_v5 }
  0xca   : > { %1078 = vmatpush1.bf16.msra.mxu1 %v2308_v6 }
  0xcb   : > { %1079 = vmatprep.subr.bf16.mxu1 %v2313_v7 }
  0xce   : > { %1080 = vmatpush1.bf16.msra.mxu1 %v2311_v8 }
  0xcf   : > { %1081 = vmatprep.subr.bf16.mxu1 %v2316_v9 }
  0xd2   : > { %1082 = vmatpush1.bf16.msra.mxu1 %v2314_v10 }
  0xd3   : > { %1083 = vmatprep.subr.bf16.mxu1 %v2319_v11 }
  0xd6   : > { %1084 = vmatpush1.bf16.msra.mxu1 %v2317_v12 }
  0xd7   : > { %1085 = vmatprep.subr.bf16.mxu1 %v2322_v13 }
  0xda   : > { %1086 = vmatpush1.bf16.msra.mxu1 %v2320_v14 }
  0xdb   : > { %1087 = vmatprep.subr.bf16.mxu1 %v2325_v15 }
  0xde   : > { %1088 = vmatpush1.bf16.msra.mxu1 %v2323_v16 }
  0xdf   : > { %1089 = vmatprep.subr.bf16.mxu1 %v2328_v17 }
  0xe2   : > { %1090 = vmatpush1.bf16.msra.mxu1 %v2326_v18 }
  0xe3   : > { %1091 = vmatprep.subr.bf16.mxu1 %v2331_v19 }
  0xe6   : > { %1092 = vmatpush1.bf16.msra.mxu1 %v2329_v20 }
  0xe9   : > { %1094 = vmatmul.mubr.bf16.vlgmr.msra.gmra.mrb[8].mxu1 %v2913_v45 }
  0xea   : > { %1103 = vmatprep.mubr.bf16.mxu1 %v2920_v48 }
  0xf1   : > { %1104 = vmatmul.mubr.bf16.gmra.mrb[12].mxu1 %v2933_v55 }
 0x17c   : > { %v1042_v45 = vpop.f32.mrb[0].mxu1 }
 0x17d   : > { %v3003_v46 = vadd.f32 %v1042_v45, %v651_v43  ;;  %v1044_v47 = vpop.f32.mrb[1].mxu1 }
 0x17e   : > { %v3005_v48 = vadd.f32 %v1044_v47, %v655_v44  ;;  %v1046_v49 = vpop.f32.mrb[2].mxu1 }
 0x17f   : > { %v1130_v50 = vmul.f32 0.044715, %v3003_v46  ;;  %v3008_v51 = vadd.f32 %v1046_v49, %v651_v43  ;;  %v1048_v52 = vpop.f32.mrb[3].mxu1  ;;  %v1114_v49 = vmul.f32 0.5, %v3003_v46 }
 0x180   : > { %v1131_v53 = vmul.f32 0.044715, %v3005_v48  ;;  %v3011_v54 = vadd.f32 %v1048_v52, %v655_v44 }
 0x181   : > { %v1146_v55 = vmul.f32 %v1130_v50, %v3003_v46  ;;  %v1134_v56 = vmul.f32 0.044715, %v3008_v51  ;;  %v1118_v50 = vmul.f32 0.5, %v3008_v51 }
 0x182   : > { %v1135_v57 = vmul.f32 0.044715, %v3011_v54  ;;  %v1147_v58 = vmul.f32 %v1131_v53, %v3005_v48  ;;  %v1115_v53 = vmul.f32 0.5, %v3005_v48 }
 0x183   : > { %v1162_v59 = vmul.f32 %v1146_v55, %v3003_v46  ;;  %v1150_v60 = vmul.f32 %v1134_v56, %v3008_v51  ;;  %v1119_v55 = vmul.f32 0.5, %v3011_v54 }
 0x184   : > { %v1052_v61 = vpop.f32.mrb[4].mxu1  ;;  %v1151_v62 = vmul.f32 %v1135_v57, %v3011_v54  ;;  %v1163_v63 = vmul.f32 %v1147_v58, %v3005_v48 }
 0x185   : > { %v1166_v0 = vmul.f32 %v1150_v60, %v3008_v51  ;;  %v1053_v1 = vadd.f32 %v1052_v61, %v651_v43  ;;  %v1054_v2 = vpop.f32.mrb[5].mxu1  ;;  %v1178_v3 = vadd.f32 %v1162_v59, %v3003_v46 }
 0x186   : > { %v1055_v4 = vadd.f32 %v1054_v2, %v655_v44  ;;  %v1056_v5 = vpop.f32.mrb[6].mxu1  ;;  %v1167_v6 = vmul.f32 %v1151_v62, %v3011_v54  ;;  %v1179_v7 = vadd.f32 %v1163_v63, %v3005_v48  ;;  %v2380_v2 = vld [vmem:[%s2847_s21 + $0x100] ss:$8 sps:$4 sm:$0xff]  }
 0x187   : > { %v1138_v8 = vmul.f32 0.044715, %v1053_v1  ;;  %v1057_v9 = vadd.f32 %v1056_v5, %v651_v43  ;;  %v1058_v10 = vpop.f32.mrb[7].mxu1  ;;  %v1182_v11 = vadd.f32 %v1166_v0, %v3008_v51  ;;  %v1194_v12 = vmul.f32 0.7978846, %v1178_v3 }
 0x188   : > { %v1139_v13 = vmul.f32 0.044715, %v1055_v4  ;;  %v1183_v14 = vadd.f32 %v1167_v6, %v3011_v54  ;;  %v1195_v15 = vmul.f32 0.7978846, %v1179_v7  ;;  %v1059_v16 = vadd.f32 %v1058_v10, %v655_v44  ;;  %v2385_v51 = vld [vmem:[%s2847_s21 + $0x114] ss:$8 sps:$4 sm:$0xff]  }
 0x189   : > { %v1154_v17 = vmul.f32 %v1138_v8, %v1053_v1  ;;  %v1142_v18 = vmul.f32 0.044715, %v1057_v9  ;;  %v1198_v19 = vmul.f32 0.7978846, %v1182_v11  ;;  %2428 = vtanh.f32 %v1194_v12  ;;  %v2383_v11 = vld [vmem:[%s2847_s21 + $0x110] ss:$8 sps:$4 sm:$0xff]  }
 0x18a   : > { %v1155_v20 = vmul.f32 %v1139_v13, %v1055_v4  ;;  %v1199_v21 = vmul.f32 0.7978846, %v1183_v14  ;;  %2430 = vtanh.f32 %v1195_v15  ;;  %v1143_v22 = vmul.f32 0.044715, %v1059_v16  ;;  %v2388_v13 = vld [vmem:[%s2847_s21 + $0x124] ss:$8 sps:$4 sm:$0xff]  }
 0x18b   : > { %v1170_v23 = vmul.f32 %v1154_v17, %v1053_v1  ;;  %v1158_v24 = vmul.f32 %v1142_v18, %v1057_v9  ;;  %2432 = vtanh.f32 %v1198_v19  ;;  %v1122_v62 = vmul.f32 0.5, %v1053_v1  ;;  %v2391_v18 = vld [vmem:[%s2847_s21 + $0x134] ss:$8 sps:$4 sm:$0xff]   ;;  %v2389_v19 = vld [vmem:[%s2847_s21 + $0x130] ss:$8 sps:$4 sm:$0xff]  }
 0x18c   : > { %v1171_v25 = vmul.f32 %v1155_v20, %v1055_v4  ;;  %2434 = vtanh.f32 %v1199_v21  ;;  %v1159_v26 = vmul.f32 %v1143_v22, %v1059_v16  ;;  %v1123_v46 = vmul.f32 0.5, %v1055_v4  ;;  %v2394_v20 = vld [vmem:[%s2847_s21 + $0x144] ss:$8 sps:$4 sm:$0xff]   ;;  %v2392_v21 = vld [vmem:[%s2847_s21 + $0x140] ss:$8 sps:$4 sm:$0xff]  }
 0x18d   : > { %v1174_v27 = vmul.f32 %v1158_v24, %v1057_v9  ;;  %v1186_v28 = vadd.f32 %v1170_v23, %v1053_v1  ;;  %v1126_v5 = vmul.f32 0.5, %v1057_v9  ;;  %v1127_v54 = vmul.f32 0.5, %v1059_v16  ;;  %v2397_v22 = vld [vmem:[%s2847_s21 + $0x154] ss:$8 sps:$4 sm:$0xff]   ;;  %v2395_v23 = vld [vmem:[%s2847_s21 + $0x150] ss:$8 sps:$4 sm:$0xff]  }
 0x18e   : > { %v1175_v29 = vmul.f32 %v1159_v26, %v1059_v16  ;;  %v1187_v30 = vadd.f32 %v1171_v25, %v1055_v4  ;;  %v2400_v24 = vld [vmem:[%s2847_s21 + $0x164] ss:$8 sps:$4 sm:$0xff]   ;;  %v2398_v25 = vld [vmem:[%s2847_s21 + $0x160] ss:$8 sps:$4 sm:$0xff]   ;;  %v2403_v26 = vld [vmem:[%s2847_s21 + $0x174] ss:$8 sps:$4 sm:$0xff]  }
 0x18f   : > { %v1190_v31 = vadd.f32 %v1174_v27, %v1057_v9  ;;  %v1202_v32 = vmul.f32 0.7978846, %v1186_v28  ;;  %v658_v27 = vsub.s32 2, %v2986_v39  ;;  %v662_v28 = vsub.s32 3, %v2986_v39 }
 0x190   : > { %v1191_v33 = vadd.f32 %v1175_v29, %v1059_v16  ;;  %v1203_v34 = vmul.f32 0.7978846, %v1187_v30  ;;  %v2386_v16 = vld [vmem:[%s2847_s21 + $0x120] ss:$8 sps:$4 sm:$0xff]   ;;  %v2401_v29 = vld [vmem:[%s2847_s21 + $0x170] ss:$8 sps:$4 sm:$0xff]  }
 0x191   : > { %v1206_v35 = vmul.f32 0.7978846, %v1190_v31  ;;  %2436 = vtanh.f32 %v1202_v32  ;;  %v2406_v30 = vld [vmem:[%s2847_s21 + $0x184] ss:$8 sps:$4 sm:$0xff]   ;;  %v659_v31 = vrot.slane %v2994_v41, %v658_v27  ;;  %v663_v32 = vrot.slane %v2994_v41, %v662_v28  ;;  %v2407_v41 = vld [vmem:[%s2847_s21 + $0x190] ss:$8 sps:$4 sm:$0xff]  }
 0x192   : > { %v1207_v36 = vmul.f32 0.7978846, %v1191_v33  ;;  %2438 = vtanh.f32 %v1203_v34  ;;  %v2404_v33 = vld [vmem:[%s2847_s21 + $0x180] ss:$8 sps:$4 sm:$0xff]   ;;  %v2421_v27 = vld [vmem:[%s2847_s21 + $0x1d4] ss:$8 sps:$4 sm:$0xff]  }
 0x193   : > { %v2429_v37 = vpop.eup %2428  ;;  %2440 = vtanh.f32 %v1206_v35  ;;  %v2409_v35 = vld [vmem:[%s2847_s21 + $0x194] ss:$8 sps:$4 sm:$0xff]  }
 0x194   : > { %v2431_v38 = vpop.eup %2430  ;;  %v1226_v43 = vadd.f32 1.0, %v2429_v37  ;;  %2442 = vtanh.f32 %v1207_v36 }
 0x195   : > { %v2433_v44 = vpop.eup %2432  ;;  %v1227_v45 = vadd.f32 1.0, %v2431_v38 }
 0x196   : > { %v2435_v47 = vpop.eup %2434  ;;  %v1230_v52 = vadd.f32 1.0, %v2433_v44  ;;  %v1242_v57 = vmul.f32 %v1226_v43, %v1114_v49 }
 0x197   : > { %v1231_v56 = vadd.f32 1.0, %v2435_v47  ;;  %v1243_v59 = vmul.f32 %v1227_v45, %v1115_v53 }
 0x198   : > { %v1246_v58 = vmul.f32 %v1230_v52, %v1118_v50  ;;  %v2412_v52 = vld [vmem:[%s2847_s21 + $0x1a4] ss:$8 sps:$4 sm:$0xff]  }
 0x199   : > { %v1247_v60 = vmul.f32 %v1231_v56, %v1119_v55 }
 0x19a   : > { %v1266_v61 = vpack.c.bf16 %v1246_v58, %v1242_v57 }
 0x19b   : > { %v2437_v63 = vpop.eup %2436  ;;  %v1267_v0 = vpack.c.bf16 %v1247_v60, %v1243_v59  ;;  %v2410_v60 = vld [vmem:[%s2847_s21 + $0x1a0] ss:$8 sps:$4 sm:$0xff]  }
 0x19c   : > { %v2439_v3 = vpop.eup %2438  ;;  %v1234_v6 = vadd.f32 1.0, %v2437_v63 }
 0x19d   : > { %v2441_v48 = vpop.eup %2440  ;;  %1690 = vmatprep.mubr.bf16.mxu0 %v1267_v0  ;;  %v1235_v7 = vadd.f32 1.0, %v2439_v3  ;;  %v2415_v0 = vld [vmem:[%s2847_s21 + $0x1b4] ss:$8 sps:$4 sm:$0xff]  }
 0x19e   : > { %v2443_v8 = vpop.eup %2442  ;;  %1691 = vmatmul.mubr.bf16.vlgmr.msra.gmra.mrb[0].mxu0 %v1266_v61  ;;  %v1238_v10 = vadd.f32 1.0, %v2441_v48  ;;  %v1250_v1 = vmul.f32 %v1234_v6, %v1122_v62 }
 0x19f   : > { %1712 = vmatpush1.bf16.msra.mxu0 %v2380_v2  ;;  %v1239_v12 = vadd.f32 1.0, %v2443_v8  ;;  %v1251_v4 = vmul.f32 %v1235_v7, %v1123_v46 }
 0x1a0   : > { %1713 = vmatprep.subr.bf16.mxu0 %v2385_v51  ;;  %v1254_v9 = vmul.f32 %v1238_v10, %v1126_v5 }
 0x1a1   : > { %v1255_v14 = vmul.f32 %v1239_v12, %v1127_v54  ;;  %v2413_v54 = vld [vmem:[%s2847_s21 + $0x1b0] ss:$8 sps:$4 sm:$0xff]  }
 0x1a2   : > { %v1270_v15 = vpack.c.bf16 %v1254_v9, %v1250_v1  ;;  %v2418_v9 = vld [vmem:[%s2847_s21 + $0x1c4] ss:$8 sps:$4 sm:$0xff]  }
 0x1a3   : > { %1714 = vmatpush1.bf16.msra.mxu0 %v2383_v11  ;;  %v1271_v17 = vpack.c.bf16 %v1255_v14, %v1251_v4 }
 0x1a4   : > { %1715 = vmatprep.subr.bf16.mxu0 %v2388_v13 }
 0x1a5   : > { %1700 = vmatprep.mubr.bf16.mxu0 %v1271_v17 }
 0x1a6   : > { %1701 = vmatmul.mubr.bf16.gmra.mrb[4].mxu0 %v1270_v15 }
 0x1a7   : > { %1716 = vmatpush1.bf16.msra.mxu0 %v2386_v16 }
 0x1a8   : > { %1717 = vmatprep.subr.bf16.mxu0 %v2391_v18 }
 0x1ab   : > { %1718 = vmatpush1.bf16.msra.mxu0 %v2389_v19 }
 0x1ac   : > { %1719 = vmatprep.subr.bf16.mxu0 %v2394_v20 }
 0x1af   : > { %1720 = vmatpush1.bf16.msra.mxu0 %v2392_v21 }
 0x1b0   : > { %1721 = vmatprep.subr.bf16.mxu0 %v2397_v22 }
 0x1b3   : > { %1722 = vmatpush1.bf16.msra.mxu0 %v2395_v23 }
 0x1b4   : > { %1723 = vmatprep.subr.bf16.mxu0 %v2400_v24  ;;  %v2416_v24 = vld [vmem:[%s2847_s21 + $0x1c0] ss:$8 sps:$4 sm:$0xff]  }
 0x1b7   : > { %1724 = vmatpush1.bf16.msra.mxu0 %v2398_v25 }
 0x1b8   : > { %1725 = vmatprep.subr.bf16.mxu0 %v2403_v26 }
 0x1bb   : > { %1726 = vmatpush1.bf16.msra.mxu0 %v2401_v29 }
 0x1bc   : > { %v1095_v34 = vpop.f32.mrb[8].mxu1  ;;  %1727 = vmatprep.subr.bf16.mxu0 %v2406_v30 }
 0x1bd   : > { %v3053_v36 = vadd.f32 %v1095_v34, %v659_v31  ;;  %v1097_v37 = vpop.f32.mrb[9].mxu1 }
 0x1be   : > { %v3055_v38 = vadd.f32 %v1097_v37, %v663_v32  ;;  %v1099_v43 = vpop.f32.mrb[10].mxu1 }
 0x1bf   : > { %v1132_v44 = vmul.f32 0.044715, %v3053_v36  ;;  %v3058_v45 = vadd.f32 %v1099_v43, %v659_v31  ;;  %v1101_v47 = vpop.f32.mrb[11].mxu1  ;;  %1728 = vmatpush1.bf16.msra.mxu0 %v2404_v33 }
 0x1c0   : > { %v1133_v49 = vmul.f32 0.044715, %v3055_v38  ;;  %v3062_v50 = vadd.f32 %v1101_v47, %v663_v32  ;;  %1729 = vmatprep.subr.bf16.mxu0 %v2409_v35  ;;  %v2424_v35 = vld [vmem:[%s2847_s21 + $0x1e4] ss:$8 sps:$4 sm:$0xff]  }
 0x1c1   : > { %v1148_v53 = vmul.f32 %v1132_v44, %v3053_v36  ;;  %v1136_v55 = vmul.f32 0.044715, %v3058_v45 }
 0x1c2   : > { %v1149_v56 = vmul.f32 %v1133_v49, %v3055_v38  ;;  %v1137_v57 = vmul.f32 0.044715, %v3062_v50  ;;  %v2422_v49 = vld [vmem:[%s2847_s21 + $0x1e0] ss:$8 sps:$4 sm:$0xff]  }
 0x1c3   : > { %v1164_v58 = vmul.f32 %v1148_v53, %v3053_v36  ;;  %v1152_v59 = vmul.f32 %v1136_v55, %v3058_v45  ;;  %1730 = vmatpush1.bf16.msra.mxu0 %v2407_v41  ;;  %v2427_v53 = vld [vmem:[%s2847_s21 + $0x1f4] ss:$8 sps:$4 sm:$0xff]  }
 0x1c4   : > { %v1165_v61 = vmul.f32 %v1149_v56, %v3055_v38  ;;  %v1153_v62 = vmul.f32 %v1137_v57, %v3062_v50  ;;  %v1105_v63 = vpop.f32.mrb[12].mxu1  ;;  %1731 = vmatprep.subr.bf16.mxu0 %v2412_v52 }
 0x1c5   : > { %v1180_v2 = vadd.f32 %v1164_v58, %v3053_v36  ;;  %v1168_v46 = vmul.f32 %v1152_v59, %v3058_v45  ;;  %v3077_v3 = vadd.f32 %v1105_v63, %v659_v31  ;;  %v1107_v51 = vpop.f32.mrb[13].mxu1  ;;  %v1116_v59 = vmul.f32 0.5, %v3053_v36 }
 0x1c6   : > { %v1169_v5 = vmul.f32 %v1153_v62, %v3062_v50  ;;  %v3080_v6 = vadd.f32 %v1107_v51, %v663_v32  ;;  %v1109_v48 = vpop.f32.mrb[14].mxu1  ;;  %v1181_v7 = vadd.f32 %v1165_v61, %v3055_v38  ;;  %v2425_v62 = vld [vmem:[%s2847_s21 + $0x1f0] ss:$8 sps:$4 sm:$0xff]   ;;  %v1117_v63 = vmul.f32 0.5, %v3055_v38 }
 0x1c7   : > { %v1196_v8 = vmul.f32 0.7978846, %v1180_v2  ;;  %v1184_v10 = vadd.f32 %v1168_v46, %v3058_v45  ;;  %v1140_v1 = vmul.f32 0.044715, %v3077_v3  ;;  %v3086_v11 = vadd.f32 %v1109_v48, %v659_v31  ;;  %v1111_v12 = vpop.f32.mrb[15].mxu1  ;;  %1732 = vmatpush1.bf16.msra.mxu0 %v2410_v60 }
 0x1c8   : > { %v1141_v4 = vmul.f32 0.044715, %v3080_v6  ;;  %v3089_v13 = vadd.f32 %v1111_v12, %v663_v32  ;;  %1733 = vmatprep.subr.bf16.mxu0 %v2415_v0  ;;  %v1185_v14 = vadd.f32 %v1169_v5, %v3062_v50  ;;  %v1197_v15 = vmul.f32 0.7978846, %v1181_v7  ;;  %v2419_v32 = vld [vmem:[%s2847_s21 + $0x1d0] ss:$8 sps:$4 sm:$0xff]  }
 0x1c9   : > { %2444 = vtanh.f32 %v1196_v8  ;;  %v1200_v16 = vmul.f32 0.7978846, %v1184_v10  ;;  %v1156_v17 = vmul.f32 %v1140_v1, %v3077_v3  ;;  %v1144_v18 = vmul.f32 0.044715, %v3086_v11 }
 0x1ca   : > { %v1157_v19 = vmul.f32 %v1141_v4, %v3080_v6  ;;  %v1145_v20 = vmul.f32 0.044715, %v3089_v13  ;;  %v1201_v21 = vmul.f32 0.7978846, %v1185_v14  ;;  %2446 = vtanh.f32 %v1197_v15 }
 0x1cb   : > { %2448 = vtanh.f32 %v1200_v16  ;;  %v1172_v22 = vmul.f32 %v1156_v17, %v3077_v3  ;;  %v1160_v23 = vmul.f32 %v1144_v18, %v3086_v11  ;;  %1734 = vmatpush1.bf16.msra.mxu0 %v2413_v54  ;;  %v1120_v60 = vmul.f32 0.5, %v3058_v45 }
 0x1cc   : > { %v1173_v25 = vmul.f32 %v1157_v19, %v3080_v6  ;;  %v1161_v26 = vmul.f32 %v1145_v20, %v3089_v13  ;;  %1735 = vmatprep.subr.bf16.mxu0 %v2418_v9  ;;  %2450 = vtanh.f32 %v1201_v21  ;;  %v1121_v0 = vmul.f32 0.5, %v3062_v50 }
 0x1cd   : > { %v1176_v28 = vmul.f32 %v1160_v23, %v3086_v11  ;;  %v1188_v29 = vadd.f32 %v1172_v22, %v3077_v3  ;;  %v1124_v38 = vmul.f32 0.5, %v3077_v3  ;;  %v1128_v50 = vmul.f32 0.5, %v3086_v11  ;;  %v1258_v22 = vld [vmem:[#allocation2] sm:$0xff]  ;;  %v1259_v23 = vld [vmem:[#allocation2 + $0x8] sm:$0xff]  ;;  %v1260_v3 = vld [vmem:[#allocation2 + $0x10] sm:$0xff] }
 0x1ce   : > { %v1177_v30 = vmul.f32 %v1161_v26, %v3089_v13  ;;  %v1189_v31 = vadd.f32 %v1173_v25, %v3080_v6  ;;  %v1125_v9 = vmul.f32 0.5, %v3080_v6  ;;  %v1129_v14 = vmul.f32 0.5, %v3089_v13  ;;  %v1261_v26 = vld [vmem:[#allocation2 + $0x18] sm:$0xff] }
 0x1cf   : > { %1736 = vmatpush1.bf16.msra.mxu0 %v2416_v24  ;;  %v1192_v33 = vadd.f32 %v1176_v28, %v3086_v11  ;;  %v1204_v34 = vmul.f32 0.7978846, %v1188_v29 }
 0x1d0   : > { %1737 = vmatprep.subr.bf16.mxu0 %v2421_v27  ;;  %v1193_v37 = vadd.f32 %v1177_v30, %v3089_v13  ;;  %v1205_v43 = vmul.f32 0.7978846, %v1189_v31  ;;  %v1262_v30 = vld [vmem:[#allocation2 + $0x20] sm:$0xff]  ;;  %v1263_v31 = vld [vmem:[#allocation2 + $0x28] sm:$0xff] }
 0x1d1   : > { %v1208_v44 = vmul.f32 0.7978846, %v1192_v33  ;;  %2452 = vtanh.f32 %v1204_v34  ;;  %v1264_v33 = vld [vmem:[#allocation2 + $0x30] sm:$0xff] }
 0x1d2   : > { %v1209_v47 = vmul.f32 0.7978846, %v1193_v37  ;;  %2454 = vtanh.f32 %v1205_v43  ;;  %v1265_v37 = vld [vmem:[#allocation2 + $0x38] sm:$0xff] }
 0x1d3   : > { %v2445_v41 = vpop.eup %2444  ;;  %1738 = vmatpush1.bf16.msra.mxu0 %v2419_v32  ;;  %2456 = vtanh.f32 %v1208_v44 }
 0x1d4   : > { %v2447_v52 = vpop.eup %2446  ;;  %1739 = vmatprep.subr.bf16.mxu0 %v2424_v35  ;;  %v1228_v55 = vadd.f32 1.0, %v2445_v41  ;;  %2458 = vtanh.f32 %v1209_v47 }
 0x1d5   : > { %v2449_v56 = vpop.eup %2448  ;;  %v1229_v57 = vadd.f32 1.0, %v2447_v52 }
 0x1d6   : > { %v2451_v58 = vpop.eup %2450  ;;  %v1232_v61 = vadd.f32 1.0, %v2449_v56  ;;  %v1244_v46 = vmul.f32 %v1228_v55, %v1116_v59  ;;  %v1812_v55 = vld [vmem:[%s3217_s5] sm:$0xff] (!%p2152_p7) }
 0x1d7   : > { %1740 = vmatpush1.bf16.msra.mxu0 %v2422_v49  ;;  %v1233_v2 = vadd.f32 1.0, %v2451_v58  ;;  %v1245_v5 = vmul.f32 %v1229_v57, %v1117_v63  ;;  %v1816_v57 = vunpack.c.l.bf16 (!%p2152_p7), %v1812_v55  ;;  %v1813_v63 = vld [vmem:[%s3217_s5 + $0x8] sm:$0xff] (!%p2152_p7) }
 0x1d8   : > { %1741 = vmatprep.subr.bf16.mxu0 %v2427_v53  ;;  %v1248_v51 = vmul.f32 %v1232_v61, %v1120_v60  ;;  %v1792_v53 = vld [vmem:[%s3216_s4] sm:$0x3] (!%p2152_p7)  ;;  %v1817_v60 = vunpack.c.h.bf16 (!%p2152_p7), %v1812_v55 }
 0x1d9   : > { %v1249_v48 = vmul.f32 %v1233_v2, %v1121_v0  ;;  %v1797_v56 = vrot.slane (!%p2152_p7), %v1792_v53, %v650_v40  ;;  %v1801_v59 = vrot.slane (!%p2152_p7), %v1792_v53, %v654_v42  ;;  %v1832_v61 = vld [vmem:[%s3218_s6] sm:$0xff] (!%p2152_p7)  ;;  %v1833_v40 = vld [vmem:[%s3218_s6 + $0x8] sm:$0xff] (!%p2152_p7) }
 0x1da   : > { %v1268_v54 = vpack.c.bf16 %v1248_v51, %v1244_v46  ;;  %v1818_v51 = vunpack.c.l.bf16 (!%p2152_p7), %v1813_v63 }
 0x1db   : > { %v2453_v7 = vpop.eup %2452  ;;  %1742 = vmatpush1.bf16.msra.mxu0 %v2425_v62  ;;  %v1269_v8 = vpack.c.bf16 %v1249_v48, %v1245_v5  ;;  %v1834_v5 = vld [vmem:[%s3218_s6 + $0x10] sm:$0xff] (!%p2152_p7) }
 0x1dc   : > { %v2455_v36 = vpop.eup %2454  ;;  %v1236_v10 = vadd.f32 1.0, %v2453_v7 }
 0x1dd   : > { %v2457_v45 = vpop.eup %2456  ;;  %1743 = vmatprep.mubr.bf16.mxu0 %v1269_v8  ;;  %v1237_v1 = vadd.f32 1.0, %v2455_v36  ;;  %v1814_v8 = vld [vmem:[%s3217_s5 + $0x10] sm:$0xff] (!%p2152_p7) }
 0x1de   : > { %v2459_v12 = vpop.eup %2458  ;;  %1744 = vmatmul.mubr.bf16.vlgmr.msra.gmra.mrb[0].mxu0 %v1268_v54  ;;  %v1240_v4 = vadd.f32 1.0, %v2457_v45  ;;  %v1252_v16 = vmul.f32 %v1236_v10, %v1124_v38  ;;  %v1819_v54 = vunpack.c.h.bf16 (!%p2152_p7), %v1813_v63  ;;  %v1820_v38 = vunpack.c.l.bf16 (!%p2152_p7), %v1814_v8 }
 0x1df   : > { %v1241_v15 = vadd.f32 1.0, %v2459_v12  ;;  %v1253_v18 = vmul.f32 %v1237_v1, %v1125_v9  ;;  %v1835_v12 = vld [vmem:[%s3218_s6 + $0x18] sm:$0xff] (!%p2152_p7) }
 0x1e0   : > { %v1256_v17 = vmul.f32 %v1240_v4, %v1128_v50  ;;  %v1815_v4 = vld [vmem:[%s3217_s5 + $0x18] sm:$0xff] (!%p2152_p7) }
 0x1e1   : > { %v1257_v19 = vmul.f32 %v1241_v15, %v1129_v14  ;;  %v1836_v14 = vld [vmem:[%s3218_s6 + $0x20] sm:$0xff] (!%p2152_p7) }
 0x1e2   : > { %v1272_v20 = vpack.c.bf16 %v1256_v17, %v1252_v16  ;;  %v1821_v16 = vunpack.c.h.bf16 (!%p2152_p7), %v1814_v8 }
 0x1e3   : > { %v1273_v21 = vpack.c.bf16 %v1257_v19, %v1253_v18 }
 0x1e5   : > { %1753 = vmatprep.mubr.bf16.mxu0 %v1273_v21 }
 0x1e6   : > { %1754 = vmatmul.mubr.bf16.gmra.mrb[4].mxu0 %v1272_v20 }
 0x2b1   : > { %v1745_v24 = vpop.f32.mrb[0].mxu0 }
 0x2b2   : > { %v1764_v25 = vadd.f32 %v1745_v24, %v1258_v22  ;;  %v1747_v11 = vpop.f32.mrb[1].mxu0 }
 0x2b3   : > { %v1765_v27 = vadd.f32 %v1747_v11, %v1259_v23  ;;  %v1749_v6 = vpop.f32.mrb[2].mxu0  ;;  %v1837_v23 = vld [vmem:[%s3218_s6 + $0x28] sm:$0xff] (!%p2152_p7) }
 0x2b4   : > { %1772 = vst [vmem:[#allocation2] sm:$0xff] %v1764_v25  ;;  %v1766_v13 = vadd.f32 %v1749_v6, %v1260_v3  ;;  %v1751_v28 = vpop.f32.mrb[3].mxu0  ;;  %v1822_v25 = vunpack.c.l.bf16 (!%p2152_p7), %v1815_v4  ;;  %v1823_v6 = vunpack.c.h.bf16 (!%p2152_p7), %v1815_v4 }
 0x2b5   : > { %1773 = vst [vmem:[#allocation2 + $0x8] sm:$0xff] %v1765_v27  ;;  %v1767_v29 = vadd.f32 %v1751_v28, %v1261_v26  ;;  %v1838_v27 = vld [vmem:[%s3218_s6 + $0x30] sm:$0xff] (!%p2152_p7) }
 0x2b6   : > { %1774 = vst [vmem:[#allocation2 + $0x10] sm:$0xff] %v1766_v13 }
 0x2b7   : > { %1775 = vst [vmem:[#allocation2 + $0x18] sm:$0xff] %v1767_v29  ;;  %v1839_v29 = vld [vmem:[%s3218_s6 + $0x38] sm:$0xff] (!%p2152_p7) }
 0x2b9   : > { %v1755_v32 = vpop.f32.mrb[4].mxu0  ;;  %1783 = sbr.rel (%p2152_p7) target bundleno = 718 (0x2ce), region = 83 }
 0x2ba   : > { %v1768_v34 = vadd.f32 %v1755_v32, %v1262_v30  ;;  %v1757_v35 = vpop.f32.mrb[5].mxu0 }
 0x2bb   : > { %v1769_v43 = vadd.f32 %v1757_v35, %v1263_v31  ;;  %v1759_v44 = vpop.f32.mrb[6].mxu0  ;;  %v1784_v52 = vld [vmem:[#allocation2] sm:$0xff] (!%p2152_p7) }
 0x2bc   : > { %1776 = vst [vmem:[#allocation2 + $0x20] sm:$0xff] %v1768_v34  ;;  %v1770_v47 = vadd.f32 %v1759_v44, %v1264_v33  ;;  %v1761_v41 = vpop.f32.mrb[7].mxu0  ;;  %v1785_v58 = vld [vmem:[#allocation2 + $0x8] sm:$0xff] (!%p2152_p7)  ;;  %v1804_v0 = vadd.f32 (!%p2152_p7), %v1797_v56, %v1784_v52 }
 0x2bd   : > { %1777 = vst [vmem:[#allocation2 + $0x28] sm:$0xff] %v1769_v43  ;;  %v1771_v49 = vadd.f32 %v1761_v41, %v1265_v37  ;;  %v1786_v62 = vld [vmem:[#allocation2 + $0x10] sm:$0xff] (!%p2152_p7)  ;;  %v1805_v2 = vadd.f32 (!%p2152_p7), %v1801_v59, %v1785_v58 }
 0x2be   : > { %1778 = vst [vmem:[#allocation2 + $0x30] sm:$0xff] %v1770_v47  ;;  %v1806_v46 = vadd.f32 (!%p2152_p7), %v1797_v56, %v1786_v62  ;;  %v1787_v39 = vld [vmem:[#allocation2 + $0x18] sm:$0xff] (!%p2152_p7)  ;;  %v1824_v10 = vadd.f32 (!%p2152_p7), %v1816_v57, %v1804_v0 }
 0x2bf   : > { %1779 = vst [vmem:[#allocation2 + $0x38] sm:$0xff] %v1771_v49  ;;  %v1807_v48 = vadd.f32 (!%p2152_p7), %v1801_v59, %v1787_v39  ;;  %v1825_v45 = vadd.f32 (!%p2152_p7), %v1817_v60, %v1805_v2 }
 0x2c0   : > { %v1826_v1 = vadd.f32 %v1818_v51, %v1806_v46  ;;  %v1840_v19 = vadd.f32 %v1832_v61, %v1824_v10 }
 0x2c1   : > { %v1827_v9 = vadd.f32 %v1819_v54, %v1807_v48  ;;  %v1841_v20 = vadd.f32 %v1833_v40, %v1825_v45 }
 0x2c2   : > { %v1842_v21 = vadd.f32 %v1834_v5, %v1826_v1  ;;  %1848 = vst [vmem:[#allocation7] sm:$0xff] %v1840_v19 }
 0x2c3   : > { %v1788_v42 = vld [vmem:[#allocation2 + $0x20] sm:$0xff]  ;;  %v1843_v24 = vadd.f32 %v1835_v12, %v1827_v9  ;;  %1849 = vst [vmem:[#allocation7 + $0x8] sm:$0xff] %v1841_v20 }
 0x2c4   : > { %v1808_v7 = vadd.f32 %v1797_v56, %v1788_v42  ;;  %v1789_v36 = vld [vmem:[#allocation2 + $0x28] sm:$0xff]  ;;  %1850 = vst [vmem:[#allocation7 + $0x10] sm:$0xff] %v1842_v21 }
 0x2c5   : > { %v1790_v50 = vld [vmem:[#allocation2 + $0x30] sm:$0xff]  ;;  %v1809_v15 = vadd.f32 %v1801_v59, %v1789_v36  ;;  %1851 = vst [vmem:[#allocation7 + $0x18] sm:$0xff] %v1843_v24 }
 0x2c6   : > { %v1810_v17 = vadd.f32 %v1797_v56, %v1790_v50  ;;  %v1791_v18 = vld [vmem:[#allocation2 + $0x38] sm:$0xff]  ;;  %v1828_v22 = vadd.f32 %v1820_v38, %v1808_v7 }
 0x2c7   : > { %v1829_v3 = vadd.f32 %v1821_v16, %v1809_v15  ;;  %v1811_v11 = vadd.f32 %v1801_v59, %v1791_v18 }
 0x2c8   : > { %v1844_v26 = vadd.f32 %v1836_v14, %v1828_v22  ;;  %v1830_v28 = vadd.f32 %v1822_v25, %v1810_v17 }
 0x2c9   : > { %v1845_v13 = vadd.f32 %v1837_v23, %v1829_v3  ;;  %v1831_v30 = vadd.f32 %v1823_v6, %v1811_v11 }
 0x2ca   : > { %1852 = vst [vmem:[#allocation7 + $0x20] sm:$0xff] %v1844_v26  ;;  %v1846_v31 = vadd.f32 %v1838_v27, %v1830_v28 }
 0x2cb   : > { %1853 = vst [vmem:[#allocation7 + $0x28] sm:$0xff] %v1845_v13  ;;  %v1847_v32 = vadd.f32 %v1839_v29, %v1831_v30 }
 0x2cc   : > { %1854 = vst [vmem:[#allocation7 + $0x30] sm:$0xff] %v1846_v31 }
 0x2cd   : > { %1855 = vst [vmem:[#allocation7 + $0x38] sm:$0xff] %v1847_v32 }
 0x2ce PF: > { %p3168_p4 = scmp.eq.s32.totalorder %s2002_s30, 1  ;;  %s2574_s18 = smov [#allocation7]  }
 0x2cf   : > { %s1866_s19 = sshll.u32 %s2574_s18, 4  ;;  %s1867_s19 = int_to_ptr.vmem [resolvable:$true] %s1866_s19 }
 0x2d0   : > { %s2488_s20 = scalar_lea.vmem %s1867_s19, 1024  ;;  %p2495_p9 = scmp.lt.s32.totalorder %s1867_s19, %s1867_s19 }
 0x2d1   : > { %p2489_p5 = scmp.ne.s32.totalorder %s1867_s19, %s2488_s20  ;;  %p2496_p10 = scmp.lt.s32.totalorder %s2488_s20, %s2488_s20 }
 0x2d3   : > { %p2490_p6 = pnand %p2489_p5, %p3168_p4  ;;  %p2497_p12 = por %p2496_p10, %p2495_p9 }
 0x2d5   : > { %p2491_p8 = pneg %p2490_p6 }
 0x2d7   : > { %p2498_p13 = pnand %p2497_p12, %p2491_p8 }
 0x2d9   : > { %2501 = shalt.err (!%p2498_p13)
}
 0x2da   : > { %s2502_s30 = scalar_lea.hbm %s3219_s7, 1024 }
 0x2db   : > { %p2503_p11 = scmp.ne.s32.totalorder %s3219_s7, %s2502_s30  ;;  %p2508_p3 = scmp.lt.u32.totalorder %s2502_s30, %s3219_s7 }
 0x2dd   : > { %p2504_p0 = pnand %p2503_p11, %p3168_p4 }
 0x2df   : > { %p2505_p1 = pneg %p2504_p0 }
 0x2e1   : > { %p2510_p2 = pnand %p2508_p3, %p2505_p1 }
 0x2e3   : > { %2513 = shalt.err (!%p2510_p2)
}
 0x2e4   : > { %s2575_s27 = smov 256   ;;  %s2576_s16 = smov 16  }
 0x2e5   : > { %2171 = dma.vmem_to_hbm [thread:$0]  (%p3168_p4), %s1867_s19, 1024, %s3219_s7, [#allocation6], %s2575_s27, %s2575_s27, %s2576_s16  }
 0x2e6   : > { %2543 = dma.done.wait (%p3168_p4), [#allocation6], 1024  }
 0x2e7   : > { %2545 = vsyncadd (%p3168_p4), [#allocation6], 4294966272 }
 0x2e8 PF: > { %s21_s29 = sadd.s32 1, %s2568_s29   ;;  %s3223_s24 = smov %s2552_s25 }
 0x2e9   : > { %p18_p7 = scmp.ge.s32.totalorder %s21_s29, 4   ;;  %s3224_s25 = smov %s2556_s26 }
 0x2ea   : > { %s3225_s26 = smov %s2667_s13  ;;  %s3226_s27 = smov %s2564_s28 }
 0x2eb   : > { %s3227_s28 = smov %s3229_s8  ;;  %20 = sbr.rel (!%p18_p7) target bundleno = 5 (0x5), region = 137 }
 0x2f2   :  { %1882 = vsyncpa [#allocation5], 1 }
 0x2f3   :  { %1884 = vsyncpa [#allocation5 + $0x1], 1 }
 0x2f4   :  { %1885 = vsyncpa [#allocation6], 1 }
 0x2f5   :  { %1887 = vsyncpa [#allocation6 + $0x1], 1 }

</bundles_post_ra>
